<compile_context>
chip_gen: v7x
topology: tpu7x:2x2x1
jax: 0.10.0
libtpu: 0.0.40
codegen_flags: <defaults>
</compile_context>

<pallas_src>
import numpy as np

import jax
import jax.numpy as jnp
from jax import lax
from jax.experimental import pallas as pl
from jax.experimental.pallas import tpu as pltpu


# ---------------------------------------------------------------------------
# Layer configuration of the PyTorch Decoder
# ---------------------------------------------------------------------------
_LAYER_CFG = [
    # (C_in, C_out, K, stride, padding, tanh)
    (64, 512, 4, 1, 0, True),
    (512, 256, 4, 2, 1, True),
    (256, 128, 4, 2, 1, True),
    (128, 64, 4, 2, 1, True),
    (64, 32, 4, 2, 1, True),
    (32, 1, 4, 2, 1, False),
]


def _layer_lengths(l_in):
    """Static per-layer sequence lengths [L_in, L1, ..., L6]."""
    ls = [l_in]
    for (_, _, k, s, p, _) in _LAYER_CFG:
        ls.append((ls[-1] - 1) * s - 2 * p + k)
    return ls


# ---------------------------------------------------------------------------
# Parameters (raw PyTorch layout) + one-time MXU-ready preparation
# ---------------------------------------------------------------------------
def init_decoder_params(key):
    """Raw PyTorch-layout parameters: w (C_in, C_out, K), b (C_out,)."""
    params = []
    for (c_in, c_out, k, _, _, _) in _LAYER_CFG:
        key, kw, kb = jax.random.split(key, 3)
        w = jax.random.normal(kw, (c_in, c_out, k), jnp.float32) * 0.05
        b = jax.random.normal(kb, (c_out,), jnp.float32) * 0.05
        params.append((w, b))
    return params


def prepare_decoder_params(params, l_in):
    """Hoisted weight prep (done once, not per forward).

    Per layer i we pass three arrays to the kernel:
      w_cat : (C_in, K*C_out)   with w_cat[c, t*C_out + o] = w[c, o, t]
      b_row : (1, C_out)
      S     : (K, L_out, L_in)  0/1 scatter matrix, S[t, p, l] = 1 iff
                                p == l*stride - padding + t
              (for the final C_out==1 layer we instead pass G[t] = S[t].T,
               shape (K, L_in, L_out), used by the lane-dense VPU path)
    """
    ls = _layer_lengths(l_in)
    n_layers = len(_LAYER_CFG)
    flat = []
    for i, ((w, b), (c_in, c_out, k, stride, pad, _)) in enumerate(
            zip(params, _LAYER_CFG)):
        l_i, l_o = ls[i], ls[i + 1]
        w_cat = jnp.transpose(w, (0, 2, 1)).reshape(c_in, k * c_out)
        w_cat = w_cat.astype(jnp.float32)
        b_row = b.reshape(1, c_out).astype(jnp.float32)
        s = np.zeros((k, l_o, l_i), np.float32)
        for t in range(k):
            for l in range(l_i):
                p = l * stride - pad + t
                if 0 <= p < l_o:
                    s[t, p, l] = 1.0
        if i == n_layers - 1:
            assert c_out == 1, "final lane-dense path assumes C_out == 1"
            s_arr = jnp.asarray(np.transpose(s, (0, 2, 1)))  # G: (K, L_in, L_out)
        else:
            s_arr = jnp.asarray(s)                           # S: (K, L_out, L_in)
        flat += [w_cat, b_row, s_arr]
    return flat


# ---------------------------------------------------------------------------
# Fused whole-decoder Pallas kernel (one grid step = one batch element)
# ---------------------------------------------------------------------------
def _build_decoder_kernel(l_in):
    ls = _layer_lengths(l_in)
    n_layers = len(_LAYER_CFG)

    def kernel(x_ref, *refs):
        o_ref = refs[-1]
        lrefs = refs[:-1]

        x = x_ref[0]                            # (L_in, C_in) lane-dense NLC
        for i, (c_in, c_out, k, stride, pad, do_tanh) in enumerate(_LAYER_CFG):
            w_ref, b_ref, s_ref = lrefs[3 * i:3 * i + 3]
            l_i = ls[i]
            last = i == n_layers - 1

            # Stage 1: one MXU matmul covering all K taps (no zero-insertion).
            z = jnp.dot(x, w_ref[...], preferred_element_type=jnp.float32)
            # z: (l_i, K*c_out); tap t lives in lanes [t*c_out, (t+1)*c_out).

            if not last:
                # Stage 2: overlap-add of taps onto output positions via tiny
                # constant 0/1 scatter matrices (pure MXU work).
                y = None
                for t in range(k):
                    z_t = z[:, t * c_out:(t + 1) * c_out]       # (l_i, c_out)
                    s_t = s_ref[t]                              # (l_o, l_i)
                    if l_i == 1:
                        contrib = s_t * z_t     # (l_o,1)*(1,c_out) broadcast
                    else:
                        contrib = jnp.dot(
                            s_t, z_t, preferred_element_type=jnp.float32)
                    y = contrib if y is None else y + contrib
                y = y + b_ref[...]
                if do_tanh:
                    y = jnp.tanh(y)
                x = y
            else:
                # Final layer (C_out == 1): VPU multiply + sublane reduction
                # producing a lane-dense (1, L_out) row written directly in
                # NCL form (no lane-sparse stores, no transpose).
                acc = None
                for t in range(k):
                    z_t = z[:, t:t + 1]                         # (l_i, 1)
                    g_t = s_ref[t]                              # (l_i, l_o)
                    contrib = g_t * z_t
                    acc = contrib if acc is None else acc + contrib
                row = jnp.sum(acc, axis=0, keepdims=True) + b_ref[...]
                if do_tanh:
                    row = jnp.tanh(row)
                o_ref[0] = row.astype(o_ref.dtype)

    return kernel


def decoder_forward(x, prepared):
    """x: (N, 64, L_in) PyTorch NCL -> (N, 1, L_out) NCL."""
    n, c0, l0 = x.shape
    ls = _layer_lengths(l0)
    l_final = ls[-1]

    # One tiny NCL -> NLC layout change of the network input; everything
    # downstream stays lane-dense NLC and the kernel writes NCL output.
    x_nlc = jnp.transpose(x, (0, 2, 1))                     # (N, L_in, 64)

    in_specs = [pl.BlockSpec((1, l0, c0), lambda b: (b, 0, 0))]
    for arr in prepared:
        if arr.ndim == 2:
            in_specs.append(pl.BlockSpec(arr.shape, lambda b: (0, 0)))
        else:
            in_specs.append(pl.BlockSpec(arr.shape, lambda b: (0, 0, 0)))

    return pl.pallas_call(
        _build_decoder_kernel(l0),
        out_shape=jax.ShapeDtypeStruct((n, 1, l_final), x.dtype),
        grid=(n,),                          # batch-parallel (2 TCs on v7x)
        in_specs=in_specs,
        out_specs=pl.BlockSpec((1, 1, l_final), lambda b: (b, 0, 0)),
        compiler_params=pltpu.CompilerParams(
            dimension_semantics=("parallel",)),
    )(x_nlc, *prepared)


# ---------------------------------------------------------------------------
# Pure-JAX reference (lax dilated conv) for correctness check
# ---------------------------------------------------------------------------
def _ref_layer(x, w, b, *, stride, padding, apply_tanh):
    c_in, c_out, k = w.shape
    rhs = jnp.transpose(w[:, :, ::-1], (1, 0, 2))           # (O, I, K)
    y = lax.conv_general_dilated(
        x, rhs,
        window_strides=(1,),
        padding=[(k - 1 - padding, k - 1 - padding)],
        lhs_dilation=(stride,),
        dimension_numbers=("NCH", "OIH", "NCH"),
    ) + b.reshape(1, c_out, 1)
    return jnp.tanh(y) if apply_tanh else y


def decoder_reference(x, params):
    out = x
    for (w, b), (_, _, _, stride, padding, do_tanh) in zip(params, _LAYER_CFG):
        out = _ref_layer(out, w, b, stride=stride, padding=padding,
                         apply_tanh=do_tanh)
    return out


# ---------------------------------------------------------------------------
if __name__ == "__main__":
    key = jax.random.PRNGKey(0)
    key, kx = jax.random.split(key)

    # ConvTranspose1d(64, ...) -> NCL input with C=64; small latent length 1.
    x = jax.random.normal(kx, (2, 64, 1), jnp.float32)

    params = init_decoder_params(key)
    prepared = prepare_decoder_params(params, x.shape[2])   # hoisted, once

    fwd = jax.jit(decoder_forward)
    y = jax.block_until_ready(fwd(x, prepared))

    assert y.shape == (2, 1, 128), y.shape

    y_ref = decoder_reference(x, params)
    assert jnp.allclose(y, y_ref, atol=1e-4, rtol=1e-4), (
        float(jnp.max(jnp.abs(y - y_ref))))

    print("KERNEL_OK")
</pallas_src>

<mosaic_0001>
module attributes {stable_mosaic.version = 11 : i64} {
  func.func @kernel(%arg0: i32, %arg1: memref<1x1x64xf32, #tpu.memory_space<vmem>>, %arg2: memref<64x2048xf32, #tpu.memory_space<vmem>>, %arg3: memref<1x512xf32, #tpu.memory_space<vmem>>, %arg4: memref<4x4x1xf32, #tpu.memory_space<vmem>>, %arg5: memref<512x1024xf32, #tpu.memory_space<vmem>>, %arg6: memref<1x256xf32, #tpu.memory_space<vmem>>, %arg7: memref<4x8x4xf32, #tpu.memory_space<vmem>>, %arg8: memref<256x512xf32, #tpu.memory_space<vmem>>, %arg9: memref<1x128xf32, #tpu.memory_space<vmem>>, %arg10: memref<4x16x8xf32, #tpu.memory_space<vmem>>, %arg11: memref<128x256xf32, #tpu.memory_space<vmem>>, %arg12: memref<1x64xf32, #tpu.memory_space<vmem>>, %arg13: memref<4x32x16xf32, #tpu.memory_space<vmem>>, %arg14: memref<64x128xf32, #tpu.memory_space<vmem>>, %arg15: memref<1x32xf32, #tpu.memory_space<vmem>>, %arg16: memref<4x64x32xf32, #tpu.memory_space<vmem>>, %arg17: memref<32x4xf32, #tpu.memory_space<vmem>>, %arg18: memref<1x1xf32, #tpu.memory_space<vmem>>, %arg19: memref<4x64x128xf32, #tpu.memory_space<vmem>>, %arg20: memref<1x1x128xf32, #tpu.memory_space<vmem>>) attributes {dimension_semantics = [#tpu.dimension_semantics<parallel>], iteration_bounds = array<i64: 2>, scalar_prefetch = 0 : i64, scratch_operands = 0 : i64, tpu.core_type = #tpu.core_type<tc>, window_params = [{transform_indices = @transform_0, window_bounds = array<i64: 1, 1, 64>}, {pipeline_mode = #tpu.pipeline_mode<synchronous>, transform_indices = @transform_1, window_bounds = array<i64: 64, 2048>}, {pipeline_mode = #tpu.pipeline_mode<synchronous>, transform_indices = @transform_2, window_bounds = array<i64: 1, 512>}, {pipeline_mode = #tpu.pipeline_mode<synchronous>, transform_indices = @transform_3, window_bounds = array<i64: 4, 4, 1>}, {pipeline_mode = #tpu.pipeline_mode<synchronous>, transform_indices = @transform_4, window_bounds = array<i64: 512, 1024>}, {pipeline_mode = #tpu.pipeline_mode<synchronous>, transform_indices = @transform_5, window_bounds = array<i64: 1, 256>}, {pipeline_mode = #tpu.pipeline_mode<synchronous>, transform_indices = @transform_6, window_bounds = array<i64: 4, 8, 4>}, {pipeline_mode = #tpu.pipeline_mode<synchronous>, transform_indices = @transform_7, window_bounds = array<i64: 256, 512>}, {pipeline_mode = #tpu.pipeline_mode<synchronous>, transform_indices = @transform_8, window_bounds = array<i64: 1, 128>}, {pipeline_mode = #tpu.pipeline_mode<synchronous>, transform_indices = @transform_9, window_bounds = array<i64: 4, 16, 8>}, {pipeline_mode = #tpu.pipeline_mode<synchronous>, transform_indices = @transform_10, window_bounds = array<i64: 128, 256>}, {pipeline_mode = #tpu.pipeline_mode<synchronous>, transform_indices = @transform_11, window_bounds = array<i64: 1, 64>}, {pipeline_mode = #tpu.pipeline_mode<synchronous>, transform_indices = @transform_12, window_bounds = array<i64: 4, 32, 16>}, {pipeline_mode = #tpu.pipeline_mode<synchronous>, transform_indices = @transform_13, window_bounds = array<i64: 64, 128>}, {pipeline_mode = #tpu.pipeline_mode<synchronous>, transform_indices = @transform_14, window_bounds = array<i64: 1, 32>}, {pipeline_mode = #tpu.pipeline_mode<synchronous>, transform_indices = @transform_15, window_bounds = array<i64: 4, 64, 32>}, {pipeline_mode = #tpu.pipeline_mode<synchronous>, transform_indices = @transform_16, window_bounds = array<i64: 32, 4>}, {pipeline_mode = #tpu.pipeline_mode<synchronous>, transform_indices = @transform_17, window_bounds = array<i64: 1, 1>}, {pipeline_mode = #tpu.pipeline_mode<synchronous>, transform_indices = @transform_18, window_bounds = array<i64: 4, 64, 128>}, {transform_indices = @transform_19, window_bounds = array<i64: 1, 1, 128>}]} {
    %c0 = arith.constant 0 : index
    %c0_0 = arith.constant 0 : index
    %c0_1 = arith.constant 0 : index
    %0 = vector.load %arg1[%c0, %c0_0, %c0_1] : memref<1x1x64xf32, #tpu.memory_space<vmem>>, vector<1x1x64xf32>
    %1 = vector.shape_cast %0 : vector<1x1x64xf32> to vector<1x64xf32>
    %c0_2 = arith.constant 0 : index
    %c0_3 = arith.constant 0 : index
    %2 = vector.load %arg2[%c0_2, %c0_3] : memref<64x2048xf32, #tpu.memory_space<vmem>>, vector<64x2048xf32>
    %cst = arith.constant dense<0.000000e+00> : vector<1x2048xf32>
    %3 = tpu.matmul %1, %2, %cst {dimension_numbers = #tpu.dot_dimension_numbers<[1], [0], [0], [1], [0, 0, 1, 1], [], []>} : vector<1x64xf32>, vector<64x2048xf32>, vector<1x2048xf32> -> vector<1x2048xf32>
    %4 = vector.extract_strided_slice %3 {offsets = [0, 0], sizes = [1, 512], strides = [1, 1]} : vector<1x2048xf32> to vector<1x512xf32>
    %c0_4 = arith.constant 0 : index
    %c0_5 = arith.constant 0 : index
    %c0_6 = arith.constant 0 : index
    %5 = vector.load %arg4[%c0_4, %c0_5, %c0_6] : memref<4x4x1xf32, #tpu.memory_space<vmem>>, vector<1x4x1xf32>
    %6 = vector.shape_cast %5 : vector<1x4x1xf32> to vector<4x1xf32>
    %7 = vector.broadcast %6 : vector<4x1xf32> to vector<4x512xf32>
    %8 = vector.broadcast %4 : vector<1x512xf32> to vector<4x512xf32>
    %9 = arith.mulf %7, %8 : vector<4x512xf32>
    %10 = vector.extract_strided_slice %3 {offsets = [0, 512], sizes = [1, 512], strides = [1, 1]} : vector<1x2048xf32> to vector<1x512xf32>
    %c1 = arith.constant 1 : index
    %c0_7 = arith.constant 0 : index
    %c0_8 = arith.constant 0 : index
    %11 = vector.load %arg4[%c1, %c0_7, %c0_8] : memref<4x4x1xf32, #tpu.memory_space<vmem>>, vector<1x4x1xf32>
    %12 = vector.shape_cast %11 : vector<1x4x1xf32> to vector<4x1xf32>
    %13 = vector.broadcast %12 : vector<4x1xf32> to vector<4x512xf32>
    %14 = vector.broadcast %10 : vector<1x512xf32> to vector<4x512xf32>
    %15 = arith.mulf %13, %14 : vector<4x512xf32>
    %16 = arith.addf %9, %15 : vector<4x512xf32>
    %17 = vector.extract_strided_slice %3 {offsets = [0, 1024], sizes = [1, 512], strides = [1, 1]} : vector<1x2048xf32> to vector<1x512xf32>
    %c2 = arith.constant 2 : index
    %c0_9 = arith.constant 0 : index
    %c0_10 = arith.constant 0 : index
    %18 = vector.load %arg4[%c2, %c0_9, %c0_10] : memref<4x4x1xf32, #tpu.memory_space<vmem>>, vector<1x4x1xf32>
    %19 = vector.shape_cast %18 : vector<1x4x1xf32> to vector<4x1xf32>
    %20 = vector.broadcast %19 : vector<4x1xf32> to vector<4x512xf32>
    %21 = vector.broadcast %17 : vector<1x512xf32> to vector<4x512xf32>
    %22 = arith.mulf %20, %21 : vector<4x512xf32>
    %23 = arith.addf %16, %22 : vector<4x512xf32>
    %24 = vector.extract_strided_slice %3 {offsets = [0, 1536], sizes = [1, 512], strides = [1, 1]} : vector<1x2048xf32> to vector<1x512xf32>
    %c3 = arith.constant 3 : index
    %c0_11 = arith.constant 0 : index
    %c0_12 = arith.constant 0 : index
    %25 = vector.load %arg4[%c3, %c0_11, %c0_12] : memref<4x4x1xf32, #tpu.memory_space<vmem>>, vector<1x4x1xf32>
    %26 = vector.shape_cast %25 : vector<1x4x1xf32> to vector<4x1xf32>
    %27 = vector.broadcast %26 : vector<4x1xf32> to vector<4x512xf32>
    %28 = vector.broadcast %24 : vector<1x512xf32> to vector<4x512xf32>
    %29 = arith.mulf %27, %28 : vector<4x512xf32>
    %30 = arith.addf %23, %29 : vector<4x512xf32>
    %c0_13 = arith.constant 0 : index
    %c0_14 = arith.constant 0 : index
    %31 = vector.load %arg3[%c0_13, %c0_14] : memref<1x512xf32, #tpu.memory_space<vmem>>, vector<1x512xf32>
    %32 = vector.broadcast %31 : vector<1x512xf32> to vector<4x512xf32>
    %33 = arith.addf %30, %32 : vector<4x512xf32>
    %34 = math.tanh %33 : vector<4x512xf32>
    %c0_15 = arith.constant 0 : index
    %c0_16 = arith.constant 0 : index
    %35 = vector.load %arg5[%c0_15, %c0_16] : memref<512x1024xf32, #tpu.memory_space<vmem>>, vector<512x1024xf32>
    %cst_17 = arith.constant dense<0.000000e+00> : vector<4x1024xf32>
    %36 = tpu.matmul %34, %35, %cst_17 {dimension_numbers = #tpu.dot_dimension_numbers<[1], [0], [0], [1], [0, 0, 1, 1], [], []>} : vector<4x512xf32>, vector<512x1024xf32>, vector<4x1024xf32> -> vector<4x1024xf32>
    %37 = vector.extract_strided_slice %36 {offsets = [0, 0], sizes = [4, 256], strides = [1, 1]} : vector<4x1024xf32> to vector<4x256xf32>
    %c0_18 = arith.constant 0 : index
    %c0_19 = arith.constant 0 : index
    %c0_20 = arith.constant 0 : index
    %38 = vector.load %arg7[%c0_18, %c0_19, %c0_20] : memref<4x8x4xf32, #tpu.memory_space<vmem>>, vector<1x8x4xf32>
    %39 = vector.shape_cast %38 : vector<1x8x4xf32> to vector<8x4xf32>
    %cst_21 = arith.constant dense<0.000000e+00> : vector<8x256xf32>
    %40 = tpu.matmul %39, %37, %cst_21 {dimension_numbers = #tpu.dot_dimension_numbers<[1], [0], [0], [1], [0, 0, 1, 1], [], []>} : vector<8x4xf32>, vector<4x256xf32>, vector<8x256xf32> -> vector<8x256xf32>
    %41 = vector.extract_strided_slice %36 {offsets = [0, 256], sizes = [4, 256], strides = [1, 1]} : vector<4x1024xf32> to vector<4x256xf32>
    %c1_22 = arith.constant 1 : index
    %c0_23 = arith.constant 0 : index
    %c0_24 = arith.constant 0 : index
    %42 = vector.load %arg7[%c1_22, %c0_23, %c0_24] : memref<4x8x4xf32, #tpu.memory_space<vmem>>, vector<1x8x4xf32>
    %43 = vector.shape_cast %42 : vector<1x8x4xf32> to vector<8x4xf32>
    %cst_25 = arith.constant dense<0.000000e+00> : vector<8x256xf32>
    %44 = tpu.matmul %43, %41, %cst_25 {dimension_numbers = #tpu.dot_dimension_numbers<[1], [0], [0], [1], [0, 0, 1, 1], [], []>} : vector<8x4xf32>, vector<4x256xf32>, vector<8x256xf32> -> vector<8x256xf32>
    %45 = arith.addf %40, %44 : vector<8x256xf32>
    %46 = vector.extract_strided_slice %36 {offsets = [0, 512], sizes = [4, 256], strides = [1, 1]} : vector<4x1024xf32> to vector<4x256xf32>
    %c2_26 = arith.constant 2 : index
    %c0_27 = arith.constant 0 : index
    %c0_28 = arith.constant 0 : index
    %47 = vector.load %arg7[%c2_26, %c0_27, %c0_28] : memref<4x8x4xf32, #tpu.memory_space<vmem>>, vector<1x8x4xf32>
    %48 = vector.shape_cast %47 : vector<1x8x4xf32> to vector<8x4xf32>
    %cst_29 = arith.constant dense<0.000000e+00> : vector<8x256xf32>
    %49 = tpu.matmul %48, %46, %cst_29 {dimension_numbers = #tpu.dot_dimension_numbers<[1], [0], [0], [1], [0, 0, 1, 1], [], []>} : vector<8x4xf32>, vector<4x256xf32>, vector<8x256xf32> -> vector<8x256xf32>
    %50 = arith.addf %45, %49 : vector<8x256xf32>
    %51 = vector.extract_strided_slice %36 {offsets = [0, 768], sizes = [4, 256], strides = [1, 1]} : vector<4x1024xf32> to vector<4x256xf32>
    %c3_30 = arith.constant 3 : index
    %c0_31 = arith.constant 0 : index
    %c0_32 = arith.constant 0 : index
    %52 = vector.load %arg7[%c3_30, %c0_31, %c0_32] : memref<4x8x4xf32, #tpu.memory_space<vmem>>, vector<1x8x4xf32>
    %53 = vector.shape_cast %52 : vector<1x8x4xf32> to vector<8x4xf32>
    %cst_33 = arith.constant dense<0.000000e+00> : vector<8x256xf32>
    %54 = tpu.matmul %53, %51, %cst_33 {dimension_numbers = #tpu.dot_dimension_numbers<[1], [0], [0], [1], [0, 0, 1, 1], [], []>} : vector<8x4xf32>, vector<4x256xf32>, vector<8x256xf32> -> vector<8x256xf32>
    %55 = arith.addf %50, %54 : vector<8x256xf32>
    %c0_34 = arith.constant 0 : index
    %c0_35 = arith.constant 0 : index
    %56 = vector.load %arg6[%c0_34, %c0_35] : memref<1x256xf32, #tpu.memory_space<vmem>>, vector<1x256xf32>
    %57 = vector.broadcast %56 : vector<1x256xf32> to vector<8x256xf32>
    %58 = arith.addf %55, %57 : vector<8x256xf32>
    %59 = math.tanh %58 : vector<8x256xf32>
    %c0_36 = arith.constant 0 : index
    %c0_37 = arith.constant 0 : index
    %60 = vector.load %arg8[%c0_36, %c0_37] : memref<256x512xf32, #tpu.memory_space<vmem>>, vector<256x512xf32>
    %cst_38 = arith.constant dense<0.000000e+00> : vector<8x512xf32>
    %61 = tpu.matmul %59, %60, %cst_38 {dimension_numbers = #tpu.dot_dimension_numbers<[1], [0], [0], [1], [0, 0, 1, 1], [], []>} : vector<8x256xf32>, vector<256x512xf32>, vector<8x512xf32> -> vector<8x512xf32>
    %62 = vector.extract_strided_slice %61 {offsets = [0, 0], sizes = [8, 128], strides = [1, 1]} : vector<8x512xf32> to vector<8x128xf32>
    %c0_39 = arith.constant 0 : index
    %c0_40 = arith.constant 0 : index
    %c0_41 = arith.constant 0 : index
    %63 = vector.load %arg10[%c0_39, %c0_40, %c0_41] : memref<4x16x8xf32, #tpu.memory_space<vmem>>, vector<1x16x8xf32>
    %64 = vector.shape_cast %63 : vector<1x16x8xf32> to vector<16x8xf32>
    %cst_42 = arith.constant dense<0.000000e+00> : vector<16x128xf32>
    %65 = tpu.matmul %64, %62, %cst_42 {dimension_numbers = #tpu.dot_dimension_numbers<[1], [0], [0], [1], [0, 0, 1, 1], [], []>} : vector<16x8xf32>, vector<8x128xf32>, vector<16x128xf32> -> vector<16x128xf32>
    %66 = vector.extract_strided_slice %61 {offsets = [0, 128], sizes = [8, 128], strides = [1, 1]} : vector<8x512xf32> to vector<8x128xf32>
    %c1_43 = arith.constant 1 : index
    %c0_44 = arith.constant 0 : index
    %c0_45 = arith.constant 0 : index
    %67 = vector.load %arg10[%c1_43, %c0_44, %c0_45] : memref<4x16x8xf32, #tpu.memory_space<vmem>>, vector<1x16x8xf32>
    %68 = vector.shape_cast %67 : vector<1x16x8xf32> to vector<16x8xf32>
    %cst_46 = arith.constant dense<0.000000e+00> : vector<16x128xf32>
    %69 = tpu.matmul %68, %66, %cst_46 {dimension_numbers = #tpu.dot_dimension_numbers<[1], [0], [0], [1], [0, 0, 1, 1], [], []>} : vector<16x8xf32>, vector<8x128xf32>, vector<16x128xf32> -> vector<16x128xf32>
    %70 = arith.addf %65, %69 : vector<16x128xf32>
    %71 = vector.extract_strided_slice %61 {offsets = [0, 256], sizes = [8, 128], strides = [1, 1]} : vector<8x512xf32> to vector<8x128xf32>
    %c2_47 = arith.constant 2 : index
    %c0_48 = arith.constant 0 : index
    %c0_49 = arith.constant 0 : index
    %72 = vector.load %arg10[%c2_47, %c0_48, %c0_49] : memref<4x16x8xf32, #tpu.memory_space<vmem>>, vector<1x16x8xf32>
    %73 = vector.shape_cast %72 : vector<1x16x8xf32> to vector<16x8xf32>
    %cst_50 = arith.constant dense<0.000000e+00> : vector<16x128xf32>
    %74 = tpu.matmul %73, %71, %cst_50 {dimension_numbers = #tpu.dot_dimension_numbers<[1], [0], [0], [1], [0, 0, 1, 1], [], []>} : vector<16x8xf32>, vector<8x128xf32>, vector<16x128xf32> -> vector<16x128xf32>
    %75 = arith.addf %70, %74 : vector<16x128xf32>
    %76 = vector.extract_strided_slice %61 {offsets = [0, 384], sizes = [8, 128], strides = [1, 1]} : vector<8x512xf32> to vector<8x128xf32>
    %c3_51 = arith.constant 3 : index
    %c0_52 = arith.constant 0 : index
    %c0_53 = arith.constant 0 : index
    %77 = vector.load %arg10[%c3_51, %c0_52, %c0_53] : memref<4x16x8xf32, #tpu.memory_space<vmem>>, vector<1x16x8xf32>
    %78 = vector.shape_cast %77 : vector<1x16x8xf32> to vector<16x8xf32>
    %cst_54 = arith.constant dense<0.000000e+00> : vector<16x128xf32>
    %79 = tpu.matmul %78, %76, %cst_54 {dimension_numbers = #tpu.dot_dimension_numbers<[1], [0], [0], [1], [0, 0, 1, 1], [], []>} : vector<16x8xf32>, vector<8x128xf32>, vector<16x128xf32> -> vector<16x128xf32>
    %80 = arith.addf %75, %79 : vector<16x128xf32>
    %c0_55 = arith.constant 0 : index
    %c0_56 = arith.constant 0 : index
    %81 = vector.load %arg9[%c0_55, %c0_56] : memref<1x128xf32, #tpu.memory_space<vmem>>, vector<1x128xf32>
    %82 = vector.broadcast %81 : vector<1x128xf32> to vector<16x128xf32>
    %83 = arith.addf %80, %82 : vector<16x128xf32>
    %84 = math.tanh %83 : vector<16x128xf32>
    %c0_57 = arith.constant 0 : index
    %c0_58 = arith.constant 0 : index
    %85 = vector.load %arg11[%c0_57, %c0_58] : memref<128x256xf32, #tpu.memory_space<vmem>>, vector<128x256xf32>
    %cst_59 = arith.constant dense<0.000000e+00> : vector<16x256xf32>
    %86 = tpu.matmul %84, %85, %cst_59 {dimension_numbers = #tpu.dot_dimension_numbers<[1], [0], [0], [1], [0, 0, 1, 1], [], []>} : vector<16x128xf32>, vector<128x256xf32>, vector<16x256xf32> -> vector<16x256xf32>
    %87 = vector.extract_strided_slice %86 {offsets = [0, 0], sizes = [16, 64], strides = [1, 1]} : vector<16x256xf32> to vector<16x64xf32>
    %c0_60 = arith.constant 0 : index
    %c0_61 = arith.constant 0 : index
    %c0_62 = arith.constant 0 : index
    %88 = vector.load %arg13[%c0_60, %c0_61, %c0_62] : memref<4x32x16xf32, #tpu.memory_space<vmem>>, vector<1x32x16xf32>
    %89 = vector.shape_cast %88 : vector<1x32x16xf32> to vector<32x16xf32>
    %cst_63 = arith.constant dense<0.000000e+00> : vector<32x64xf32>
    %90 = tpu.matmul %89, %87, %cst_63 {dimension_numbers = #tpu.dot_dimension_numbers<[1], [0], [0], [1], [0, 0, 1, 1], [], []>} : vector<32x16xf32>, vector<16x64xf32>, vector<32x64xf32> -> vector<32x64xf32>
    %91 = vector.extract_strided_slice %86 {offsets = [0, 64], sizes = [16, 64], strides = [1, 1]} : vector<16x256xf32> to vector<16x64xf32>
    %c1_64 = arith.constant 1 : index
    %c0_65 = arith.constant 0 : index
    %c0_66 = arith.constant 0 : index
    %92 = vector.load %arg13[%c1_64, %c0_65, %c0_66] : memref<4x32x16xf32, #tpu.memory_space<vmem>>, vector<1x32x16xf32>
    %93 = vector.shape_cast %92 : vector<1x32x16xf32> to vector<32x16xf32>
    %cst_67 = arith.constant dense<0.000000e+00> : vector<32x64xf32>
    %94 = tpu.matmul %93, %91, %cst_67 {dimension_numbers = #tpu.dot_dimension_numbers<[1], [0], [0], [1], [0, 0, 1, 1], [], []>} : vector<32x16xf32>, vector<16x64xf32>, vector<32x64xf32> -> vector<32x64xf32>
    %95 = arith.addf %90, %94 : vector<32x64xf32>
    %96 = vector.extract_strided_slice %86 {offsets = [0, 128], sizes = [16, 64], strides = [1, 1]} : vector<16x256xf32> to vector<16x64xf32>
    %c2_68 = arith.constant 2 : index
    %c0_69 = arith.constant 0 : index
    %c0_70 = arith.constant 0 : index
    %97 = vector.load %arg13[%c2_68, %c0_69, %c0_70] : memref<4x32x16xf32, #tpu.memory_space<vmem>>, vector<1x32x16xf32>
    %98 = vector.shape_cast %97 : vector<1x32x16xf32> to vector<32x16xf32>
    %cst_71 = arith.constant dense<0.000000e+00> : vector<32x64xf32>
    %99 = tpu.matmul %98, %96, %cst_71 {dimension_numbers = #tpu.dot_dimension_numbers<[1], [0], [0], [1], [0, 0, 1, 1], [], []>} : vector<32x16xf32>, vector<16x64xf32>, vector<32x64xf32> -> vector<32x64xf32>
    %100 = arith.addf %95, %99 : vector<32x64xf32>
    %101 = vector.extract_strided_slice %86 {offsets = [0, 192], sizes = [16, 64], strides = [1, 1]} : vector<16x256xf32> to vector<16x64xf32>
    %c3_72 = arith.constant 3 : index
    %c0_73 = arith.constant 0 : index
    %c0_74 = arith.constant 0 : index
    %102 = vector.load %arg13[%c3_72, %c0_73, %c0_74] : memref<4x32x16xf32, #tpu.memory_space<vmem>>, vector<1x32x16xf32>
    %103 = vector.shape_cast %102 : vector<1x32x16xf32> to vector<32x16xf32>
    %cst_75 = arith.constant dense<0.000000e+00> : vector<32x64xf32>
    %104 = tpu.matmul %103, %101, %cst_75 {dimension_numbers = #tpu.dot_dimension_numbers<[1], [0], [0], [1], [0, 0, 1, 1], [], []>} : vector<32x16xf32>, vector<16x64xf32>, vector<32x64xf32> -> vector<32x64xf32>
    %105 = arith.addf %100, %104 : vector<32x64xf32>
    %c0_76 = arith.constant 0 : index
    %c0_77 = arith.constant 0 : index
    %106 = vector.load %arg12[%c0_76, %c0_77] : memref<1x64xf32, #tpu.memory_space<vmem>>, vector<1x64xf32>
    %107 = vector.broadcast %106 : vector<1x64xf32> to vector<32x64xf32>
    %108 = arith.addf %105, %107 : vector<32x64xf32>
    %109 = math.tanh %108 : vector<32x64xf32>
    %c0_78 = arith.constant 0 : index
    %c0_79 = arith.constant 0 : index
    %110 = vector.load %arg14[%c0_78, %c0_79] : memref<64x128xf32, #tpu.memory_space<vmem>>, vector<64x128xf32>
    %cst_80 = arith.constant dense<0.000000e+00> : vector<32x128xf32>
    %111 = tpu.matmul %109, %110, %cst_80 {dimension_numbers = #tpu.dot_dimension_numbers<[1], [0], [0], [1], [0, 0, 1, 1], [], []>} : vector<32x64xf32>, vector<64x128xf32>, vector<32x128xf32> -> vector<32x128xf32>
    %112 = vector.extract_strided_slice %111 {offsets = [0, 0], sizes = [32, 32], strides = [1, 1]} : vector<32x128xf32> to vector<32x32xf32>
    %c0_81 = arith.constant 0 : index
    %c0_82 = arith.constant 0 : index
    %c0_83 = arith.constant 0 : index
    %113 = vector.load %arg16[%c0_81, %c0_82, %c0_83] : memref<4x64x32xf32, #tpu.memory_space<vmem>>, vector<1x64x32xf32>
    %114 = vector.shape_cast %113 : vector<1x64x32xf32> to vector<64x32xf32>
    %cst_84 = arith.constant dense<0.000000e+00> : vector<64x32xf32>
    %115 = tpu.matmul %114, %112, %cst_84 {dimension_numbers = #tpu.dot_dimension_numbers<[1], [0], [0], [1], [0, 0, 1, 1], [], []>} : vector<64x32xf32>, vector<32x32xf32>, vector<64x32xf32> -> vector<64x32xf32>
    %116 = vector.extract_strided_slice %111 {offsets = [0, 32], sizes = [32, 32], strides = [1, 1]} : vector<32x128xf32> to vector<32x32xf32>
    %c1_85 = arith.constant 1 : index
    %c0_86 = arith.constant 0 : index
    %c0_87 = arith.constant 0 : index
    %117 = vector.load %arg16[%c1_85, %c0_86, %c0_87] : memref<4x64x32xf32, #tpu.memory_space<vmem>>, vector<1x64x32xf32>
    %118 = vector.shape_cast %117 : vector<1x64x32xf32> to vector<64x32xf32>
    %cst_88 = arith.constant dense<0.000000e+00> : vector<64x32xf32>
    %119 = tpu.matmul %118, %116, %cst_88 {dimension_numbers = #tpu.dot_dimension_numbers<[1], [0], [0], [1], [0, 0, 1, 1], [], []>} : vector<64x32xf32>, vector<32x32xf32>, vector<64x32xf32> -> vector<64x32xf32>
    %120 = arith.addf %115, %119 : vector<64x32xf32>
    %121 = vector.extract_strided_slice %111 {offsets = [0, 64], sizes = [32, 32], strides = [1, 1]} : vector<32x128xf32> to vector<32x32xf32>
    %c2_89 = arith.constant 2 : index
    %c0_90 = arith.constant 0 : index
    %c0_91 = arith.constant 0 : index
    %122 = vector.load %arg16[%c2_89, %c0_90, %c0_91] : memref<4x64x32xf32, #tpu.memory_space<vmem>>, vector<1x64x32xf32>
    %123 = vector.shape_cast %122 : vector<1x64x32xf32> to vector<64x32xf32>
    %cst_92 = arith.constant dense<0.000000e+00> : vector<64x32xf32>
    %124 = tpu.matmul %123, %121, %cst_92 {dimension_numbers = #tpu.dot_dimension_numbers<[1], [0], [0], [1], [0, 0, 1, 1], [], []>} : vector<64x32xf32>, vector<32x32xf32>, vector<64x32xf32> -> vector<64x32xf32>
    %125 = arith.addf %120, %124 : vector<64x32xf32>
    %126 = vector.extract_strided_slice %111 {offsets = [0, 96], sizes = [32, 32], strides = [1, 1]} : vector<32x128xf32> to vector<32x32xf32>
    %c3_93 = arith.constant 3 : index
    %c0_94 = arith.constant 0 : index
    %c0_95 = arith.constant 0 : index
    %127 = vector.load %arg16[%c3_93, %c0_94, %c0_95] : memref<4x64x32xf32, #tpu.memory_space<vmem>>, vector<1x64x32xf32>
    %128 = vector.shape_cast %127 : vector<1x64x32xf32> to vector<64x32xf32>
    %cst_96 = arith.constant dense<0.000000e+00> : vector<64x32xf32>
    %129 = tpu.matmul %128, %126, %cst_96 {dimension_numbers = #tpu.dot_dimension_numbers<[1], [0], [0], [1], [0, 0, 1, 1], [], []>} : vector<64x32xf32>, vector<32x32xf32>, vector<64x32xf32> -> vector<64x32xf32>
    %130 = arith.addf %125, %129 : vector<64x32xf32>
    %c0_97 = arith.constant 0 : index
    %c0_98 = arith.constant 0 : index
    %131 = vector.load %arg15[%c0_97, %c0_98] : memref<1x32xf32, #tpu.memory_space<vmem>>, vector<1x32xf32>
    %132 = vector.broadcast %131 : vector<1x32xf32> to vector<64x32xf32>
    %133 = arith.addf %130, %132 : vector<64x32xf32>
    %134 = math.tanh %133 : vector<64x32xf32>
    %c0_99 = arith.constant 0 : index
    %c0_100 = arith.constant 0 : index
    %135 = vector.load %arg17[%c0_99, %c0_100] : memref<32x4xf32, #tpu.memory_space<vmem>>, vector<32x4xf32>
    %cst_101 = arith.constant dense<0.000000e+00> : vector<64x4xf32>
    %136 = tpu.matmul %134, %135, %cst_101 {dimension_numbers = #tpu.dot_dimension_numbers<[1], [0], [0], [1], [0, 0, 1, 1], [], []>} : vector<64x32xf32>, vector<32x4xf32>, vector<64x4xf32> -> vector<64x4xf32>
    %137 = vector.extract_strided_slice %136 {offsets = [0, 0], sizes = [64, 1], strides = [1, 1]} : vector<64x4xf32> to vector<64x1xf32>
    %c0_102 = arith.constant 0 : index
    %c0_103 = arith.constant 0 : index
    %c0_104 = arith.constant 0 : index
    %138 = vector.load %arg19[%c0_102, %c0_103, %c0_104] : memref<4x64x128xf32, #tpu.memory_space<vmem>>, vector<1x64x128xf32>
    %139 = vector.shape_cast %138 : vector<1x64x128xf32> to vector<64x128xf32>
    %140 = vector.broadcast %137 : vector<64x1xf32> to vector<64x128xf32>
    %141 = arith.mulf %139, %140 : vector<64x128xf32>
    %142 = vector.extract_strided_slice %136 {offsets = [0, 1], sizes = [64, 1], strides = [1, 1]} : vector<64x4xf32> to vector<64x1xf32>
    %c1_105 = arith.constant 1 : index
    %c0_106 = arith.constant 0 : index
    %c0_107 = arith.constant 0 : index
    %143 = vector.load %arg19[%c1_105, %c0_106, %c0_107] : memref<4x64x128xf32, #tpu.memory_space<vmem>>, vector<1x64x128xf32>
    %144 = vector.shape_cast %143 : vector<1x64x128xf32> to vector<64x128xf32>
    %145 = vector.broadcast %142 : vector<64x1xf32> to vector<64x128xf32>
    %146 = arith.mulf %144, %145 : vector<64x128xf32>
    %147 = arith.addf %141, %146 : vector<64x128xf32>
    %148 = vector.extract_strided_slice %136 {offsets = [0, 2], sizes = [64, 1], strides = [1, 1]} : vector<64x4xf32> to vector<64x1xf32>
    %c2_108 = arith.constant 2 : index
    %c0_109 = arith.constant 0 : index
    %c0_110 = arith.constant 0 : index
    %149 = vector.load %arg19[%c2_108, %c0_109, %c0_110] : memref<4x64x128xf32, #tpu.memory_space<vmem>>, vector<1x64x128xf32>
    %150 = vector.shape_cast %149 : vector<1x64x128xf32> to vector<64x128xf32>
    %151 = vector.broadcast %148 : vector<64x1xf32> to vector<64x128xf32>
    %152 = arith.mulf %150, %151 : vector<64x128xf32>
    %153 = arith.addf %147, %152 : vector<64x128xf32>
    %154 = vector.extract_strided_slice %136 {offsets = [0, 3], sizes = [64, 1], strides = [1, 1]} : vector<64x4xf32> to vector<64x1xf32>
    %c3_111 = arith.constant 3 : index
    %c0_112 = arith.constant 0 : index
    %c0_113 = arith.constant 0 : index
    %155 = vector.load %arg19[%c3_111, %c0_112, %c0_113] : memref<4x64x128xf32, #tpu.memory_space<vmem>>, vector<1x64x128xf32>
    %156 = vector.shape_cast %155 : vector<1x64x128xf32> to vector<64x128xf32>
    %157 = vector.broadcast %154 : vector<64x1xf32> to vector<64x128xf32>
    %158 = arith.mulf %156, %157 : vector<64x128xf32>
    %159 = arith.addf %153, %158 : vector<64x128xf32>
    %cst_114 = arith.constant dense<0.000000e+00> : vector<128xf32>
    %160 = vector.multi_reduction <add>, %159, %cst_114 [0] : vector<64x128xf32> to vector<128xf32>
    %161 = vector.shape_cast %160 : vector<128xf32> to vector<1x128xf32>
    %c0_115 = arith.constant 0 : index
    %c0_116 = arith.constant 0 : index
    %162 = vector.load %arg18[%c0_115, %c0_116] : memref<1x1xf32, #tpu.memory_space<vmem>>, vector<1x1xf32>
    %163 = vector.broadcast %162 : vector<1x1xf32> to vector<1x128xf32>
    %164 = arith.addf %161, %163 : vector<1x128xf32>
    %c0_117 = arith.constant 0 : index
    %c0_118 = arith.constant 0 : index
    %c0_119 = arith.constant 0 : index
    %165 = vector.load %arg20[%c0_117, %c0_118, %c0_119] : memref<1x1x128xf32, #tpu.memory_space<vmem>>, vector<1x1x128xf32>
    %166 = vector.shape_cast %165 : vector<1x1x128xf32> to vector<1x128xf32>
    %167 = vector.shape_cast %164 : vector<1x128xf32> to vector<1x1x128xf32>
    tpu.vector_store %arg20[%c0_117, %c0_118, %c0_119], %167 {strides = array<i32>} : memref<1x1x128xf32, #tpu.memory_space<vmem>>, vector<1x1x128xf32>,
    return
  }
  func.func @transform_0(%arg0: i32) -> (i32, i32, i32) {
    %c0_i32 = arith.constant 0 : i32
    %c0_i32_0 = arith.constant 0 : i32
    %c0_i32_1 = arith.constant 0 : i32
    return %arg0, %c0_i32, %c0_i32_0 : i32, i32, i32
  }
  func.func @transform_1(%arg0: i32) -> (i32, i32) {
    %c0_i32 = arith.constant 0 : i32
    %c0_i32_0 = arith.constant 0 : i32
    %c0_i32_1 = arith.constant 0 : i32
    return %c0_i32, %c0_i32_0 : i32, i32
  }
  func.func @transform_2(%arg0: i32) -> (i32, i32) {
    %c0_i32 = arith.constant 0 : i32
    %c0_i32_0 = arith.constant 0 : i32
    %c0_i32_1 = arith.constant 0 : i32
    return %c0_i32, %c0_i32_0 : i32, i32
  }
  func.func @transform_3(%arg0: i32) -> (i32, i32, i32) {
    %c0_i32 = arith.constant 0 : i32
    %c0_i32_0 = arith.constant 0 : i32
    %c0_i32_1 = arith.constant 0 : i32
    %c0_i32_2 = arith.constant 0 : i32
    return %c0_i32, %c0_i32_0, %c0_i32_1 : i32, i32, i32
  }
  func.func @transform_4(%arg0: i32) -> (i32, i32) {
    %c0_i32 = arith.constant 0 : i32
    %c0_i32_0 = arith.constant 0 : i32
    %c0_i32_1 = arith.constant 0 : i32
    return %c0_i32, %c0_i32_0 : i32, i32
  }
  func.func @transform_5(%arg0: i32) -> (i32, i32) {
    %c0_i32 = arith.constant 0 : i32
    %c0_i32_0 = arith.constant 0 : i32
    %c0_i32_1 = arith.constant 0 : i32
    return %c0_i32, %c0_i32_0 : i32, i32
  }
  func.func @transform_6(%arg0: i32) -> (i32, i32, i32) {
    %c0_i32 = arith.constant 0 : i32
    %c0_i32_0 = arith.constant 0 : i32
    %c0_i32_1 = arith.constant 0 : i32
    %c0_i32_2 = arith.constant 0 : i32
    return %c0_i32, %c0_i32_0, %c0_i32_1 : i32, i32, i32
  }
  func.func @transform_7(%arg0: i32) -> (i32, i32) {
    %c0_i32 = arith.constant 0 : i32
    %c0_i32_0 = arith.constant 0 : i32
    %c0_i32_1 = arith.constant 0 : i32
    return %c0_i32, %c0_i32_0 : i32, i32
  }
  func.func @transform_8(%arg0: i32) -> (i32, i32) {
    %c0_i32 = arith.constant 0 : i32
    %c0_i32_0 = arith.constant 0 : i32
    %c0_i32_1 = arith.constant 0 : i32
    return %c0_i32, %c0_i32_0 : i32, i32
  }
  func.func @transform_9(%arg0: i32) -> (i32, i32, i32) {
    %c0_i32 = arith.constant 0 : i32
    %c0_i32_0 = arith.constant 0 : i32
    %c0_i32_1 = arith.constant 0 : i32
    %c0_i32_2 = arith.constant 0 : i32
    return %c0_i32, %c0_i32_0, %c0_i32_1 : i32, i32, i32
  }
  func.func @transform_10(%arg0: i32) -> (i32, i32) {
    %c0_i32 = arith.constant 0 : i32
    %c0_i32_0 = arith.constant 0 : i32
    %c0_i32_1 = arith.constant 0 : i32
    return %c0_i32, %c0_i32_0 : i32, i32
  }
  func.func @transform_11(%arg0: i32) -> (i32, i32) {
    %c0_i32 = arith.constant 0 : i32
    %c0_i32_0 = arith.constant 0 : i32
    %c0_i32_1 = arith.constant 0 : i32
    return %c0_i32, %c0_i32_0 : i32, i32
  }
  func.func @transform_12(%arg0: i32) -> (i32, i32, i32) {
    %c0_i32 = arith.constant 0 : i32
    %c0_i32_0 = arith.constant 0 : i32
    %c0_i32_1 = arith.constant 0 : i32
    %c0_i32_2 = arith.constant 0 : i32
    return %c0_i32, %c0_i32_0, %c0_i32_1 : i32, i32, i32
  }
  func.func @transform_13(%arg0: i32) -> (i32, i32) {
    %c0_i32 = arith.constant 0 : i32
    %c0_i32_0 = arith.constant 0 : i32
    %c0_i32_1 = arith.constant 0 : i32
    return %c0_i32, %c0_i32_0 : i32, i32
  }
  func.func @transform_14(%arg0: i32) -> (i32, i32) {
    %c0_i32 = arith.constant 0 : i32
    %c0_i32_0 = arith.constant 0 : i32
    %c0_i32_1 = arith.constant 0 : i32
    return %c0_i32, %c0_i32_0 : i32, i32
  }
  func.func @transform_15(%arg0: i32) -> (i32, i32, i32) {
    %c0_i32 = arith.constant 0 : i32
    %c0_i32_0 = arith.constant 0 : i32
    %c0_i32_1 = arith.constant 0 : i32
    %c0_i32_2 = arith.constant 0 : i32
    return %c0_i32, %c0_i32_0, %c0_i32_1 : i32, i32, i32
  }
  func.func @transform_16(%arg0: i32) -> (i32, i32) {
    %c0_i32 = arith.constant 0 : i32
    %c0_i32_0 = arith.constant 0 : i32
    %c0_i32_1 = arith.constant 0 : i32
    return %c0_i32, %c0_i32_0 : i32, i32
  }
  func.func @transform_17(%arg0: i32) -> (i32, i32) {
    %c0_i32 = arith.constant 0 : i32
    %c0_i32_0 = arith.constant 0 : i32
    %c0_i32_1 = arith.constant 0 : i32
    return %c0_i32, %c0_i32_0 : i32, i32
  }
  func.func @transform_18(%arg0: i32) -> (i32, i32, i32) {
    %c0_i32 = arith.constant 0 : i32
    %c0_i32_0 = arith.constant 0 : i32
    %c0_i32_1 = arith.constant 0 : i32
    %c0_i32_2 = arith.constant 0 : i32
    return %c0_i32, %c0_i32_0, %c0_i32_1 : i32, i32, i32
  }
  func.func @transform_19(%arg0: i32) -> (i32, i32, i32) {
    %c0_i32 = arith.constant 0 : i32
    %c0_i32_0 = arith.constant 0 : i32
    %c0_i32_1 = arith.constant 0 : i32
    return %arg0, %c0_i32, %c0_i32_0 : i32, i32, i32
  }
}

</mosaic_0001>

<bundles_post_ra>
// kernel: decoder_forward.1
= control target key start
LH: loop header
LB: loop body
LE: loop exit
PB: predicated region body
PF: predicated region fallthrough
CT: control target
= control target key end

     0   :  { %s8617_s0 = inlined_call_operand.hbm [shape: f32[2,1,64], index: 0, kind: input, shape index: {}]   ;;  %s8618_s1 = inlined_call_operand.hbm [shape: f32[64,2048], index: 1, kind: input, shape index: {}]   ;;  %s8619_s2 = inlined_call_operand.hbm [shape: f32[1,512], index: 2, kind: input, shape index: {}]   ;;  %s8620_s3 = inlined_call_operand.vmem [shape: f32[4,4,1], index: 3, kind: input, shape index: {}]   ;;  %s8621_s4 = inlined_call_operand.hbm [shape: f32[512,1024], index: 4, kind: input, shape index: {}]   ;;  %s8622_s5 = inlined_call_operand.hbm [shape: f32[1,256], index: 5, kind: input, shape index: {}]   ;;  %s8623_s6 = inlined_call_operand.vmem [shape: f32[4,8,4], index: 6, kind: input, shape index: {}]   ;;  %s8624_s7 = inlined_call_operand.hbm [shape: f32[256,512], index: 7, kind: input, shape index: {}]   ;;  %s8625_s8 = inlined_call_operand.hbm [shape: f32[1,128], index: 8, kind: input, shape index: {}]   ;;  %s8626_s9 = inlined_call_operand.vmem [shape: f32[4,16,8], index: 9, kind: input, shape index: {}]   ;;  %s8627_s10 = inlined_call_operand.hbm [shape: f32[128,256], index: 10, kind: input, shape index: {}]   ;;  %s8628_s11 = inlined_call_operand.hbm [shape: f32[1,64], index: 11, kind: input, shape index: {}]   ;;  %s8629_s12 = inlined_call_operand.vmem [shape: f32[4,32,16], index: 12, kind: input, shape index: {}]   ;;  %s8630_s13 = inlined_call_operand.hbm [shape: f32[64,128], index: 13, kind: input, shape index: {}]   ;;  %s8631_s14 = inlined_call_operand.hbm [shape: f32[1,32], index: 14, kind: input, shape index: {}]   ;;  %s8632_s15 = inlined_call_operand.vmem [shape: f32[4,64,32], index: 15, kind: input, shape index: {}]   ;;  %s8633_s16 = inlined_call_operand.vmem [shape: f32[32,4], index: 16, kind: input, shape index: {}]   ;;  %s8634_s17 = inlined_call_operand.<no memory space> [shape: f32[1,1], index: 17, kind: input, shape index: {}]   ;;  %s8635_s18 = inlined_call_operand.hbm [shape: f32[4,64,128], index: 18, kind: input, shape index: {}]   ;;  %s8636_s19 = inlined_call_operand.hbm [shape: f32[2,1,128], index: 19, kind: output, shape index: {}]  }
   0x1   :  { %8658 = sst [smem:[#allocation33_spill]] %s8617_s0  ;;  %v24_v0 = vstv %s8634_s17 }
   0x2   :  { %8659 = sst [smem:[#allocation34_spill]] %s8618_s1  ;;  %25 = vst [vmem:[#allocation2] sm:$0x1] %v24_v0 }
   0x3   :  { %8660 = sst [smem:[#allocation35_spill]] %s8619_s2 }
   0x4   :  { %8661 = sst [smem:[#allocation36_spill]] %s8620_s3 }
   0x5   :  { %8662 = sst [smem:[#allocation37_spill]] %s8621_s4 }
   0x6   :  { %8663 = sst [smem:[#allocation38_spill]] %s8622_s5 }
   0x7   :  { %8664 = sst [smem:[#allocation39_spill]] %s8623_s6 }
   0x8   :  { %8665 = sst [smem:[#allocation40_spill]] %s8624_s7 }
   0x9   :  { %8666 = sst [smem:[#allocation41_spill]] %s8625_s8 }
   0xa   :  { %8667 = sst [smem:[#allocation42_spill]] %s8626_s9 }
   0xb   :  { %8668 = sst [smem:[#allocation43_spill]] %s8627_s10 }
   0xc   :  { %8669 = sst [smem:[#allocation44_spill]] %s8629_s12 }
   0xd   :  { %8670 = sst [smem:[#allocation45_spill]] %s8632_s15 }
   0xe   :  { %8671 = sst [smem:[#allocation46_spill]] %s8633_s16 }
   0xf   :  { %8672 = sst [smem:[#allocation47_spill]] %s8636_s19 }
  0x10   :  { %26 = vsyncpa [#allocation4], 0 }
  0x11   :  { %28 = vsyncpa [#allocation4 + $0x1], 0 }
  0x12   :  { %29 = vsyncpa [#allocation7], 0 }
  0x13   :  { %30 = vsyncpa [#allocation10], 0 }
  0x14   :  { %31 = vsyncpa [#allocation13], 0 }
  0x15   :  { %32 = vsyncpa [#allocation16], 0 }
  0x16   :  { %33 = vsyncpa [#allocation19], 0 }
  0x17   :  { %34 = vsyncpa [#allocation22], 0 }
  0x18   :  { %35 = vsyncpa [#allocation5], 0 }
  0x19   :  { %37 = vsyncpa [#allocation5 + $0x1], 0  ;;  %s7761_s20 = smov 0   ;;  %s7763_s21 = smov 0  }
  0x1a   :  { %s7765_s1 = smov 0   ;;  %s7767_s22 = smov 0  }
  0x1b LB: > { %s7628_s17 = smov [#allocation6]   ;;  %s7782_s23 = sadd.s32 4294967295, %s7626_s22   ;;  %s7626_s22 = sphi %s7767_s22, %s8720_s22   ;;  %s7622_s1 = sphi %s7765_s1, %s8719_s1   ;;  %s7618_s21 = sphi %s7763_s21, %s8718_s21   ;;  %s7614_s20 = sphi %s7761_s20, %s8717_s20  }
  0x1c   : > { %s490_s2 = sshll.u32 %s7628_s17, 4  ;;  %p5525_p0 = scmp.ge.s32.totalorder %s7626_s22, 1  ;;  %s7787_s2 = int_to_ptr.vmem [resolvable:$true] %s490_s2 }
  0x1d   : > { %p8648_p1 = scmp.eq.s32.totalorder %s7782_s23, 0  ;;  %p478_p2 = scmp.lt.s32.totalorder %s7626_s22, 3 }
  0x1e   : > { %s7629_s25 = smov [#allocation9]   ;;  %s7630_s27 = smov [#allocation12]  }
  0x1f   : > { %p7789_p3 = pnand %p5525_p0, %p478_p2  ;;  %s517_s3 = sshll.u32 %s7629_s25, 4  ;;  %s7802_s3 = int_to_ptr.vmem [resolvable:$true] %s517_s3 }
  0x20   : > { %s7804_s28 = sshll.u32 %s7630_s27, 4  ;;  %s8676_s30 = sld [smem:[#allocation34_spill]]  ;;  %s545_s28 = int_to_ptr.vmem [resolvable:$true] %s7804_s28 }
  0x21   : > { %s8673_s24 = scalar_select %p7789_p3, 1, 0 }
  0x22   : > { %p6959_p5 = pneg %p7789_p3 }
  0x23   : > { %8674 = sst [smem:[#allocation32_spill]] %s8673_s24 }
  0x24   : > { %p7798_p6 = pnand %p6959_p5, %p8648_p1 }
  0x26   : > { %s7198_s17 = scalar_lea.hbm %s8676_s30, 16384  ;;  %p7814_p8 = pneg %p7798_p6 }
  0x27   : > { %p7199_p7 = scmp.ne.s32.totalorder %s8676_s30, %s7198_s17  ;;  %p7205_p11 = scmp.lt.u32.totalorder %s7198_s17, %s8676_s30 }
  0x29   : > { %p7201_p9 = pnand %p7814_p8, %p7199_p7 }
  0x2b   : > { %p7202_p10 = pneg %p7201_p9 }
  0x2d   : > { %p7207_p12 = pnand %p7205_p11, %p7202_p10 }
  0x2f   : > { %7210 = shalt.err (!%p7207_p12)
}
  0x30   : > { %s7211_s16 = scalar_lea.vmem %s7787_s2, 16384  ;;  %p7219_p5 = scmp.lt.s32.totalorder %s7787_s2, %s7787_s2 }
  0x31   : > { %p7212_p13 = scmp.ne.s32.totalorder %s7787_s2, %s7211_s16  ;;  %p7220_p4 = scmp.lt.s32.totalorder %s7211_s16, %s7211_s16 }
  0x33   : > { %p7214_p0 = pnand %p7212_p13, %p7814_p8  ;;  %p7221_p7 = por %p7220_p4, %p7219_p5 }
  0x35   : > { %p7215_p2 = pneg %p7214_p0 }
  0x37   : > { %p7222_p9 = pnand %p7221_p7, %p7215_p2 }
  0x39   : > { %7225 = shalt.err (!%p7222_p9)
}
  0x3a   : > { %s7631_s19 = smov 2048   ;;  %s8650_s15 = smov 128  }
  0x3b   : > { %6962 = dma.hbm_to_vmem [thread:$0]  (!%p7798_p6), %s8676_s30, 16384, %s7787_s2, [#allocation7], %s7631_s19, %s7631_s19, %s8650_s15  }
  0x3c   : > { %s8678_s4 = sld [smem:[#allocation37_spill]] }
  0x42   : > { %s7226_s12 = scalar_lea.hbm %s8678_s4, 65536 }
  0x43   : > { %p7227_p4 = scmp.ne.s32.totalorder %s8678_s4, %s7226_s12  ;;  %p7233_p12 = scmp.lt.u32.totalorder %s7226_s12, %s8678_s4 }
  0x45   : > { %p7229_p10 = pnand %p7227_p4, %p7814_p8 }
  0x47   : > { %p7230_p11 = pneg %p7229_p10 }
  0x49   : > { %p7235_p13 = pnand %p7233_p12, %p7230_p11 }
  0x4b   : > { %7238 = shalt.err (!%p7235_p13)
}
  0x4c   : > { %s7239_s2 = scalar_lea.vmem %s7802_s3, 65536  ;;  %p7247_p7 = scmp.lt.s32.totalorder %s7802_s3, %s7802_s3 }
  0x4d   : > { %p7240_p0 = scmp.ne.s32.totalorder %s7802_s3, %s7239_s2  ;;  %p7248_p9 = scmp.lt.s32.totalorder %s7239_s2, %s7239_s2 }
  0x4f   : > { %p7242_p2 = pnand %p7240_p0, %p7814_p8  ;;  %p7249_p4 = por %p7248_p9, %p7247_p7 }
  0x51   : > { %p7243_p5 = pneg %p7242_p2 }
  0x53   : > { %p7250_p10 = pnand %p7249_p4, %p7243_p5 }
  0x55   : > { %7253 = shalt.err (!%p7250_p10)
}
  0x56   : > { %s7633_s9 = smov 1024   ;;  %s7634_s6 = smov 64  }
  0x57   : > { %6968 = dma.hbm_to_vmem [thread:$0]  (!%p7798_p6), %s8678_s4, 65536, %s7802_s3, [#allocation10], %s7633_s9, %s7633_s9, %s7634_s6  }
  0x58   : > { %s8679_s7 = sld [smem:[#allocation40_spill]] }
  0x5e   : > { %s7254_s0 = scalar_lea.hbm %s8679_s7, 16384 }
  0x5f   : > { %p7255_p11 = scmp.ne.s32.totalorder %s8679_s7, %s7254_s0  ;;  %p7261_p0 = scmp.lt.u32.totalorder %s7254_s0, %s8679_s7 }
  0x61   : > { %p7257_p12 = pnand %p7255_p11, %p7814_p8 }
  0x63   : > { %p7258_p13 = pneg %p7257_p12 }
  0x65   : > { %p7263_p2 = pnand %p7261_p0, %p7258_p13 }
  0x67   : > { %7266 = shalt.err (!%p7263_p2)
}
  0x68   : > { %s7267_s12 = scalar_lea.vmem %s545_s28, 16384  ;;  %p7275_p4 = scmp.lt.s32.totalorder %s545_s28, %s545_s28 }
  0x69   : > { %p7268_p5 = scmp.ne.s32.totalorder %s545_s28, %s7267_s12  ;;  %p7276_p10 = scmp.lt.s32.totalorder %s7267_s12, %s7267_s12 }
  0x6b   : > { %p7270_p7 = pnand %p7268_p5, %p7814_p8  ;;  %p7277_p1 = por %p7276_p10, %p7275_p4 }
  0x6d   : > { %p7271_p9 = pneg %p7270_p7 }
  0x6f   : > { %p7278_p3 = pnand %p7277_p1, %p7271_p9 }
  0x71   : > { %7281 = shalt.err (!%p7278_p3)
}
  0x72   : > { %s7635_s3 = smov 512   ;;  %s7636_s9 = smov 32  }
  0x73   : > { %6974 = dma.hbm_to_vmem [thread:$0]  (!%p7798_p6), %s8679_s7, 16384, %s545_s28, [#allocation13], %s7635_s3, %s7635_s3, %s7636_s9  }
  0x74   : > { %s7637_s19 = smov [#allocation15]   ;;  %s8680_s10 = sld [smem:[#allocation43_spill]] }
  0x75   : > { %s571_s29 = sshll.u32 %s7637_s19, 4  ;;  %s572_s29 = int_to_ptr.vmem [resolvable:$true] %s571_s29 }
  0x7a   : > { %s7282_s27 = scalar_lea.hbm %s8680_s10, 4096 }
  0x7b   : > { %p7283_p1 = scmp.ne.s32.totalorder %s8680_s10, %s7282_s27  ;;  %p7289_p12 = scmp.lt.u32.totalorder %s7282_s27, %s8680_s10 }
  0x7d   : > { %p7285_p3 = pnand %p7283_p1, %p7814_p8 }
  0x7f   : > { %p7286_p11 = pneg %p7285_p3 }
  0x81   : > { %p7291_p13 = pnand %p7289_p12, %p7286_p11 }
  0x83   : > { %7294 = shalt.err (!%p7291_p13)
}
  0x84   : > { %s7295_s28 = scalar_lea.vmem %s572_s29, 4096  ;;  %p7303_p7 = scmp.lt.s32.totalorder %s572_s29, %s572_s29 }
  0x85   : > { %p7296_p0 = scmp.ne.s32.totalorder %s572_s29, %s7295_s28  ;;  %p7304_p9 = scmp.lt.s32.totalorder %s7295_s28, %s7295_s28 }
  0x87   : > { %p7298_p2 = pnand %p7296_p0, %p7814_p8  ;;  %p7305_p4 = por %p7304_p9, %p7303_p7 }
  0x89   : > { %p7299_p5 = pneg %p7298_p2 }
  0x8b   : > { %p7306_p10 = pnand %p7305_p4, %p7299_p5 }
  0x8d   : > { %7309 = shalt.err (!%p7306_p10)
}
  0x8e   : > { %s7638_s3 = smov 256   ;;  %s7639_s9 = smov 16  }
  0x8f   : > { %6980 = dma.hbm_to_vmem [thread:$0]  (!%p7798_p6), %s8680_s10, 4096, %s572_s29, [#allocation16], %s7638_s3, %s7638_s3, %s7639_s9  }
  0x90   : > { %s7640_s24 = smov [#allocation18]   ;;  %s7641_s0 = smov [#allocation8]  }
  0x91   : > { %s598_s19 = sshll.u32 %s7640_s24, 4  ;;  %s504_s17 = sshll.u32 %s7641_s0, 4  ;;  %s599_s19 = int_to_ptr.vmem [resolvable:$true] %s598_s19  ;;  %s505_s17 = int_to_ptr.vmem [resolvable:$true] %s504_s17 }
  0x92   : > { %s7310_s2 = scalar_lea.hbm %s8630_s13, 1024 }
  0x93   : > { %p7311_p1 = scmp.ne.s32.totalorder %s8630_s13, %s7310_s2  ;;  %p7317_p12 = scmp.lt.u32.totalorder %s7310_s2, %s8630_s13 }
  0x95   : > { %p7313_p3 = pnand %p7311_p1, %p7814_p8 }
  0x97   : > { %p7314_p11 = pneg %p7313_p3 }
  0x99   : > { %p7319_p13 = pnand %p7317_p12, %p7314_p11 }
  0x9b   : > { %7322 = shalt.err (!%p7319_p13)
}
  0x9c   : > { %s7323_s29 = scalar_lea.vmem %s599_s19, 1024  ;;  %p7331_p7 = scmp.lt.s32.totalorder %s599_s19, %s599_s19 }
  0x9d   : > { %p7324_p0 = scmp.ne.s32.totalorder %s599_s19, %s7323_s29  ;;  %p7332_p9 = scmp.lt.s32.totalorder %s7323_s29, %s7323_s29 }
  0x9f   : > { %p7326_p2 = pnand %p7324_p0, %p7814_p8  ;;  %p7333_p4 = por %p7332_p9, %p7331_p7 }
  0xa1   : > { %p7327_p5 = pneg %p7326_p2 }
  0xa3   : > { %p7334_p10 = pnand %p7333_p4, %p7327_p5 }
  0xa5   : > { %7337 = shalt.err (!%p7334_p10)
}
  0xa6   : > { %s7642_s3 = smov 8   ;;  %s8681_s9 = smov 128  }
  0xa7   : > { %6986 = dma.hbm_to_vmem [thread:$0]  (!%p7798_p6), %s8630_s13, 1024, %s599_s19, [#allocation19], %s8681_s9, %s8681_s9, %s7642_s3  }
  0xa8   : > { %s8682_s24 = sld [smem:[#allocation35_spill]] }
  0xae   : > { %s7338_s0 = scalar_lea.hbm %s8682_s24, 64 }
  0xaf   : > { %p7339_p1 = scmp.ne.s32.totalorder %s8682_s24, %s7338_s0  ;;  %p7345_p12 = scmp.lt.u32.totalorder %s7338_s0, %s8682_s24 }
  0xb1   : > { %p7341_p3 = pnand %p7339_p1, %p7814_p8 }
  0xb3   : > { %p7342_p11 = pneg %p7341_p3 }
  0xb5   : > { %p7347_p13 = pnand %p7345_p12, %p7342_p11 }
  0xb7   : > { %7350 = shalt.err (!%p7347_p13)
}
  0xb8   : > { %s7351_s28 = scalar_lea.vmem %s505_s17, 64  ;;  %p7359_p7 = scmp.lt.s32.totalorder %s505_s17, %s505_s17 }
  0xb9   : > { %p7352_p0 = scmp.ne.s32.totalorder %s505_s17, %s7351_s28  ;;  %p7360_p9 = scmp.lt.s32.totalorder %s7351_s28, %s7351_s28 }
  0xbb   : > { %p7354_p2 = pnand %p7352_p0, %p7814_p8  ;;  %p7361_p4 = por %p7360_p9, %p7359_p7 }
  0xbd   : > { %p7355_p5 = pneg %p7354_p2 }
  0xbf   : > { %p7362_p10 = pnand %p7361_p4, %p7355_p5 }
  0xc1   : > { %7365 = shalt.err (!%p7362_p10)
}
  0xc2   : > { %6965 = dma.hbm_to_vmem [thread:$0]  (!%p7798_p6), %s8682_s24, 64, %s505_s17, [#allocation7]  }
  0xc3   : > { %s7643_s4 = smov [#allocation11]   ;;  %s7644_s15 = smov [#allocation14]  }
  0xc4   : > { %s531_s7 = sshll.u32 %s7643_s4, 4  ;;  %s558_s6 = sshll.u32 %s7644_s15, 4  ;;  %s532_s7 = int_to_ptr.vmem [resolvable:$true] %s531_s7  ;;  %s559_s6 = int_to_ptr.vmem [resolvable:$true] %s558_s6 }
  0xc5   : > { %s8683_s5 = sld [smem:[#allocation38_spill]] }
  0xcb   : > { %s7366_s16 = scalar_lea.hbm %s8683_s5, 32 }
  0xcc   : > { %p7367_p1 = scmp.ne.s32.totalorder %s8683_s5, %s7366_s16  ;;  %p7373_p12 = scmp.lt.u32.totalorder %s7366_s16, %s8683_s5 }
  0xce   : > { %p7369_p3 = pnand %p7367_p1, %p7814_p8 }
  0xd0   : > { %p7370_p11 = pneg %p7369_p3 }
  0xd2   : > { %p7375_p13 = pnand %p7373_p12, %p7370_p11 }
  0xd4   : > { %7378 = shalt.err (!%p7375_p13)
}
  0xd5   : > { %s7379_s17 = scalar_lea.vmem %s532_s7, 32  ;;  %p7387_p7 = scmp.lt.s32.totalorder %s532_s7, %s532_s7 }
  0xd6   : > { %p7380_p0 = scmp.ne.s32.totalorder %s532_s7, %s7379_s17  ;;  %p7388_p9 = scmp.lt.s32.totalorder %s7379_s17, %s7379_s17 }
  0xd8   : > { %p7382_p2 = pnand %p7380_p0, %p7814_p8  ;;  %p7389_p4 = por %p7388_p9, %p7387_p7 }
  0xda   : > { %p7383_p5 = pneg %p7382_p2 }
  0xdc   : > { %p7390_p10 = pnand %p7389_p4, %p7383_p5 }
  0xde   : > { %7393 = shalt.err (!%p7390_p10)
}
  0xdf   : > { %6971 = dma.hbm_to_vmem [thread:$0]  (!%p7798_p6), %s8683_s5, 32, %s532_s7, [#allocation10]  }
  0xe0   : > { %s8684_s8 = sld [smem:[#allocation41_spill]] }
  0xe6   : > { %s7394_s27 = scalar_lea.hbm %s8684_s8, 16 }
  0xe7   : > { %p7395_p1 = scmp.ne.s32.totalorder %s8684_s8, %s7394_s27  ;;  %p7401_p12 = scmp.lt.u32.totalorder %s7394_s27, %s8684_s8 }
  0xe9   : > { %p7397_p3 = pnand %p7395_p1, %p7814_p8 }
  0xeb   : > { %p7398_p11 = pneg %p7397_p3 }
  0xed   : > { %p7403_p13 = pnand %p7401_p12, %p7398_p11 }
  0xef   : > { %7406 = shalt.err (!%p7403_p13)
}
  0xf0   : > { %s7407_s19 = scalar_lea.vmem %s559_s6, 16  ;;  %s7414_s7 = scalar_lea.vmem %s559_s6, 32 }
  0xf1   : > { %p7408_p0 = scmp.ne.s32.totalorder %s559_s6, %s7407_s19  ;;  %p7415_p7 = scmp.lt.s32.totalorder %s559_s6, %s559_s6 }
  0xf2   : > { %p7416_p9 = scmp.lt.s32.totalorder %s7414_s7, %s7407_s19 }
  0xf3   : > { %p7410_p2 = pnand %p7408_p0, %p7814_p8 }
  0xf4   : > { %p7417_p4 = por %p7416_p9, %p7415_p7 }
  0xf5   : > { %p7411_p5 = pneg %p7410_p2 }
  0xf7   : > { %p7418_p10 = pnand %p7417_p4, %p7411_p5 }
  0xf9   : > { %7421 = shalt.err (!%p7418_p10)
}
  0xfa   : > { %6977 = dma.hbm_to_vmem [thread:$0]  (!%p7798_p6), %s8684_s8, 16, %s559_s6, [#allocation13]  }
  0xfb   : > { %s7645_s4 = smov [#allocation17]   ;;  %s7646_s0 = smov [#allocation20]  }
  0xfc   : > { %s585_s15 = sshll.u32 %s7645_s4, 4  ;;  %s612_s27 = sshll.u32 %s7646_s0, 4  ;;  %s586_s15 = int_to_ptr.vmem [resolvable:$true] %s585_s15  ;;  %s613_s27 = int_to_ptr.vmem [resolvable:$true] %s612_s27 }
  0xfd   : > { %s7422_s12 = scalar_lea.hbm %s8628_s11, 16 }
  0xfe   : > { %p7423_p1 = scmp.ne.s32.totalorder %s8628_s11, %s7422_s12  ;;  %p7429_p12 = scmp.lt.u32.totalorder %s7422_s12, %s8628_s11 }
 0x100   : > { %p7425_p3 = pnand %p7423_p1, %p7814_p8 }
 0x102   : > { %p7426_p11 = pneg %p7425_p3 }
 0x104   : > { %p7431_p13 = pnand %p7429_p12, %p7426_p11 }
 0x106   : > { %7434 = shalt.err (!%p7431_p13)
}
 0x107   : > { %s7435_s6 = scalar_lea.vmem %s586_s15, 16  ;;  %s7442_s29 = scalar_lea.vmem %s586_s15, 32 }
 0x108   : > { %p7436_p0 = scmp.ne.s32.totalorder %s586_s15, %s7435_s6  ;;  %p7443_p7 = scmp.lt.s32.totalorder %s586_s15, %s586_s15 }
 0x109   : > { %p7444_p9 = scmp.lt.s32.totalorder %s7442_s29, %s7435_s6 }
 0x10a   : > { %p7438_p2 = pnand %p7436_p0, %p7814_p8 }
 0x10b   : > { %p7445_p4 = por %p7444_p9, %p7443_p7 }
 0x10c   : > { %p7439_p5 = pneg %p7438_p2 }
 0x10e   : > { %p7446_p10 = pnand %p7445_p4, %p7439_p5 }
 0x110   : > { %7449 = shalt.err (!%p7446_p10)
}
 0x111   : > { %6983 = dma.hbm_to_vmem [thread:$0]  (!%p7798_p6), %s8628_s11, 16, %s586_s15, [#allocation16]  }
 0x112   : > { %s7450_s12 = scalar_lea.hbm %s8631_s14, 16 }
 0x113   : > { %p7451_p1 = scmp.ne.s32.totalorder %s8631_s14, %s7450_s12  ;;  %p7457_p12 = scmp.lt.u32.totalorder %s7450_s12, %s8631_s14 }
 0x115   : > { %p7453_p3 = pnand %p7451_p1, %p7814_p8 }
 0x117   : > { %p7454_p11 = pneg %p7453_p3 }
 0x119   : > { %p7459_p13 = pnand %p7457_p12, %p7454_p11 }
 0x11b   : > { %7462 = shalt.err (!%p7459_p13)
}
 0x11c   : > { %s7463_s6 = scalar_lea.vmem %s613_s27, 16  ;;  %s7470_s15 = scalar_lea.vmem %s613_s27, 32 }
 0x11d   : > { %p7464_p0 = scmp.ne.s32.totalorder %s613_s27, %s7463_s6  ;;  %p7471_p7 = scmp.lt.s32.totalorder %s613_s27, %s613_s27 }
 0x11e   : > { %p7472_p9 = scmp.lt.s32.totalorder %s7470_s15, %s7463_s6 }
 0x11f   : > { %p7466_p2 = pnand %p7464_p0, %p7814_p8 }
 0x120   : > { %p7473_p4 = por %p7472_p9, %p7471_p7 }
 0x121   : > { %p7467_p5 = pneg %p7466_p2 }
 0x123   : > { %p7474_p10 = pnand %p7473_p4, %p7467_p5 }
 0x125   : > { %7477 = shalt.err (!%p7474_p10)
}
 0x126   : > { %6989 = dma.hbm_to_vmem [thread:$0]  (!%p7798_p6), %s8631_s14, 16, %s613_s27, [#allocation19]  }
 0x127   : > { %s7647_s0 = smov [#allocation21]   ;;  %s7478_s28 = scalar_lea.hbm %s8635_s18, 4096 }
 0x128   : > { %s631_s16 = sshll.u32 %s7647_s0, 4  ;;  %p7479_p1 = scmp.ne.s32.totalorder %s8635_s18, %s7478_s28  ;;  %s632_s16 = int_to_ptr.vmem [resolvable:$true] %s631_s16 }
 0x129   : > { %p7485_p12 = scmp.lt.u32.totalorder %s7478_s28, %s8635_s18 }
 0x12a   : > { %p7481_p3 = pnand %p7479_p1, %p7814_p8 }
 0x12c   : > { %p7482_p11 = pneg %p7481_p3 }
 0x12e   : > { %p7487_p13 = pnand %p7485_p12, %p7482_p11 }
 0x130   : > { %7490 = shalt.err (!%p7487_p13)
}
 0x131   : > { %s7491_s27 = scalar_lea.vmem %s632_s16, 4096  ;;  %p7499_p7 = scmp.lt.s32.totalorder %s632_s16, %s632_s16 }
 0x132   : > { %p7492_p0 = scmp.ne.s32.totalorder %s632_s16, %s7491_s27  ;;  %p7500_p9 = scmp.lt.s32.totalorder %s7491_s27, %s7491_s27 }
 0x134   : > { %p7494_p2 = pnand %p7492_p0, %p7814_p8  ;;  %p7501_p4 = por %p7500_p9, %p7499_p7 }
 0x136   : > { %p7495_p5 = pneg %p7494_p2 }
 0x138   : > { %p7502_p10 = pnand %p7501_p4, %p7495_p5 }
 0x13a   : > { %7505 = shalt.err (!%p7502_p10)
}
 0x13b   : > { %6992 = dma.hbm_to_vmem [thread:$0]  (!%p7798_p6), %s8635_s18, 4096, %s632_s16, [#allocation22], %s8681_s9, %s8681_s9, %s7642_s3  }
 0x13c   : > { %s5524_s26 = sadd.s32 4294967294, %s7626_s22   ;;  %s8030_s25 = sadd.s32 1, %s7626_s22  }
 0x13d   : > { %s47_s4 = ssub.s32 %s7626_s22, %s8030_s25  ;;  %s50_s0 = sadd.s32 1, %s7622_s1 }
 0x13e   : > { %p48_p8 = scmp.eq.s32.totalorder %s47_s4, 0  ;;  %p57_p1 = scmp.ne.s32.totalorder %s7622_s1, %s7618_s21 }
 0x13f   : > { %p58_p3 = scmp.eq.s32.totalorder %s7626_s22, 0  ;;  %p63_p11 = scmp.ne.s32.totalorder %s7618_s21, %s7614_s20 }
 0x140   : > { %s8041_s2 = scalar_select %p48_p8, %s7622_s1, %s50_s0  }
 0x141   : > { %p8043_p12 = por %p58_p3, %p57_p1  ;;  %p8686_p13 = scmp.eq.s32.totalorder %s7782_s23, 0 }
 0x142   : > { %p465_p0 = scmp.eq.s32.totalorder %s7782_s23, 1  ;;  %p471_p2 = scmp.eq.s32.totalorder %s5524_s26, 1 }
 0x143   : > { %p8049_p6 = por %p8686_p13, %p63_p11  ;;  %p7012_p5 = scmp.lt.s32.totalorder %s7626_s22, 2 }
 0x144   : > { %s645_s9 = sand.u32 1, %s7622_s1   ;;  %p8056_p7 = por %p465_p0, %p57_p1 }
 0x145   : > { %p8060_p9 = por %p471_p2, %p63_p11  ;;  %s5538_s19 = sshll.u32 %s7626_s22, 4 }
 0x146   : > { %s8688_s16 = scalar_select %p8056_p7, 1, 0 }
 0x147   : > { %s8689_s28 = scalar_select %p8060_p9, 1, 0 }
 0x148   : > { %s648_s7 = scalar_lea.vmem [#allocation3], %s645_s9  ;;  %s8690_s15 = sld [smem:[#allocation33_spill]] }
 0x149   : > { %s655_s17 = sshll.u32 %s648_s7, 4  ;;  %p8074_p4 = pnand %p7012_p5, %p8043_p12  ;;  %s8070_s17 = int_to_ptr.vmem [resolvable:$true] %s655_s17 }
 0x14a   : > { %s646_s4 = scalar_lea.sflag [#allocation4], %s645_s9 }
 0x14b   : > { %p7508_p8 = pneg %p8074_p4 }
 0x14e   : > { %s8068_s29 = scalar_lea.hbm %s8690_s15, %s5538_s19  ;;  %s7511_s6 = scalar_lea.hbm %s8690_s15, 32 }
 0x14f   : > { %s7506_s0 = scalar_lea.hbm %s8068_s29, 16  ;;  %p7512_p11 = scmp.lt.u32.totalorder %s8068_s29, %s8690_s15 }
 0x150   : > { %p7507_p10 = scmp.ne.s32.totalorder %s8068_s29, %s7506_s0  ;;  %p7513_p12 = scmp.lt.u32.totalorder %s7511_s6, %s7506_s0 }
 0x151   : > { %p7515_p0 = scmp.lt.u32.totalorder %s7506_s0, %s8068_s29 }
 0x152   : > { %p7509_p1 = pnand %p7508_p8, %p7507_p10  ;;  %p7514_p13 = por %p7513_p12, %p7512_p11 }
 0x154   : > { %p7510_p3 = pneg %p7509_p1  ;;  %p7516_p2 = por %p7515_p0, %p7514_p13 }
 0x156   : > { %p7517_p5 = pnand %p7516_p2, %p7510_p3 }
 0x158   : > { %7520 = shalt.err (!%p7517_p5)
}
 0x159   : > { %s7521_s9 = scalar_lea.vmem %s8070_s17, 16  ;;  %s7648_s19 = smov [#allocation3]  }
 0x15a   : > { %p7522_p10 = scmp.ne.s32.totalorder %s8070_s17, %s7521_s9  ;;  %s7526_s7 = sshll.u32 %s7648_s19, 4  ;;  %s7527_s7 = int_to_ptr.vmem [resolvable:$false] %s7526_s7 }
 0x15b   : > { %s7528_s12 = scalar_lea.vmem %s7527_s7, 32  ;;  %p7529_p7 = scmp.lt.s32.totalorder %s8070_s17, %s7527_s7 }
 0x15c   : > { %p7524_p1 = pnand %p7522_p10, %p7508_p8  ;;  %p7530_p11 = scmp.lt.s32.totalorder %s7528_s12, %s7521_s9 }
 0x15e   : > { %p7525_p9 = pneg %p7524_p1  ;;  %p7531_p12 = por %p7530_p11, %p7529_p7 }
 0x160   : > { %p7532_p13 = pnand %p7531_p12, %p7525_p9 }
 0x162   : > { %7535 = shalt.err (!%p7532_p13)
}
 0x163   : > { %6996 = dma.hbm_to_vmem [thread:$0]  (!%p8074_p4), %s8068_s29, 16, %s8070_s17, %s646_s4  }
 0x164   : > { %s8692_s0 = sld [smem:[#allocation32_spill]] }
 0x16a   : > { %p8693_p3 = scmp.ne.s32.totalorder %s8692_s0, 0 }
 0x16b   : > { %s8106_s6 = sand.u32 (!%p8693_p3), 1, %s7618_s21  }
 0x16c   : > { %664 = sbr.rel (%p8693_p3) target bundleno = 3456 (0xd80), region = 96  ;;  %s667_s27 = scalar_lea.sflag (!%p8693_p3), [#allocation4], %s8106_s6 }
 0x16d   : > { %s669_s19 = scalar_lea.vmem (!%p8693_p3), [#allocation3], %s8106_s6 }
 0x173   : > { %7581 = dma.done.wait (%p8049_p6), %s667_s27, 16  }
 0x174   : > { %7583 = vsyncadd (%p8049_p6), %s667_s27, 4294967280  ;;  %p8694_p7 = scmp.eq.s32.totalorder %s7782_s23, 0 }
 0x176   : > { %7585 = dma.done.wait (%p8694_p7), [#allocation7], 16448   ;;  %p8695_p9 = pmov %p8694_p7 }
 0x177   : > { %p8696_p4 = pmov %p8694_p7 }
 0x178   : > { %7587 = vsyncadd (%p8695_p9), [#allocation7], 4294950848 }
 0x179   : > { %7589 = dma.done.wait (%p8696_p4), [#allocation10], 65568   ;;  %p8697_p8 = pmov %p8696_p4 }
 0x17a   : > { %p8698_p0 = pmov %p8696_p4 }
 0x17b   : > { %7591 = vsyncadd (%p8697_p8), [#allocation10], 4294901728 }
 0x17c   : > { %7593 = dma.done.wait (%p8698_p0), [#allocation13], 16400   ;;  %p8699_p2 = pmov %p8698_p0 }
 0x17d   : > { %p8700_p6 = pmov %p8698_p0 }
 0x17e   : > { %7595 = vsyncadd (%p8699_p2), [#allocation13], 4294950896 }
 0x17f   : > { %7597 = dma.done.wait (%p8700_p6), [#allocation16], 4112   ;;  %p8701_p5 = pmov %p8698_p0 }
 0x180   : > { %p8702_p10 = pmov %p8698_p0 }
 0x181   : > { %7599 = vsyncadd (%p8701_p5), [#allocation16], 4294963184 }
 0x182   : > { %7601 = dma.done.wait (%p8702_p10), [#allocation19], 1040   ;;  %p8703_p1 = pmov %p8698_p0 }
 0x183   : > { %p8704_p11 = pmov %p8698_p0 }
 0x184   : > { %7603 = vsyncadd (%p8703_p1), [#allocation19], 4294966256 }
 0x185   : > { %7605 = dma.done.wait (%p8704_p11), [#allocation22], 4096   ;;  %p8705_p12 = pmov %p8698_p0 }
 0x186   : > { %v7649_v1 = vmov 0.0   ;;  %v7650_v2 = vmov 0   ;;  %v768_v3 = vld [vmem:[#allocation6 + $0x8] sm:$0xff]  ;;  %v767_v8 = vld [vmem:[#allocation6] sm:$0xff]  ;;  %v770_v49 = vld [vmem:[#allocation6 + $0x18] sm:$0xff]  ;;  %vm895_vm0 = vcmask 523264  }
 0x187   : > { %7607 = vsyncadd (%p8705_p12), [#allocation22], 4294963200  ;;  %963 = vmatprep.mubr.f32.mxu1 %v7649_v1  ;;  %1105 = vmatprep.mubr.f32.mxu0 %v7649_v1  ;;  %v784_v4 = vld [vmem:[#allocation6 + $0x88] sm:$0xff]  ;;  %v783_v9 = vld [vmem:[#allocation6 + $0x80] sm:$0xff]  ;;  %s8706_s29 = sld [smem:[#allocation36_spill]]  ;;  %vm2703_vm1 = vcmask 1043456  }
 0x188   : > { %7085 = vset.pattern.permute.xlu0 %v7650_v2  ;;  %7086 = vset.pattern.permute.xlu1 %v7650_v2  ;;  %v772_v5 = vld [vmem:[#allocation6 + $0x28] sm:$0xff]  ;;  %v5983_v6 = vpack.c.bf16 %v784_v4, %v768_v3  ;;  %v5985_v11 = vpack.c.bf16 %v783_v9, %v767_v8  ;;  %v771_v12 = vld [vmem:[#allocation6 + $0x20] sm:$0xff]  ;;  %v786_v50 = vld [vmem:[#allocation6 + $0x98] sm:$0xff]  ;;  %s8707_s3 = sld [smem:[#allocation39_spill]]  ;;  %vm2699_vm2 = vcmask 31744   ;;  %vm3320_vm3 = vcmask 64512  }
 0x189   : > { %v788_v7 = vld [vmem:[#allocation6 + $0xa8] sm:$0xff]  ;;  %v787_v13 = vld [vmem:[#allocation6 + $0xa0] sm:$0xff]  ;;  %v5999_v55 = vpack.c.bf16 %v786_v50, %v770_v49  ;;  %v769_v56 = vld [vmem:[#allocation6 + $0x10] sm:$0xff]  ;;  %s8709_s17 = sld [smem:[#allocation44_spill]]  ;;  %vm3792_vm4 = vcmask 130048   ;;  %s8653_s26 = smov 64  }
 0x18a   : > { %v6015_v10 = vpack.c.bf16 %v788_v7, %v772_v5  ;;  %v800_v14 = vld [vmem:[#allocation6 + $0x108] sm:$0xff]  ;;  %5984 = vmatprep.subr.bf16.mxu1 %v5983_v6  ;;  %v6017_v15 = vpack.c.bf16 %v787_v13, %v771_v12  ;;  %v799_v21 = vld [vmem:[#allocation6 + $0x100] sm:$0xff]  ;;  %v785_v57 = vld [vmem:[#allocation6 + $0x90] sm:$0xff]  ;;  %s8710_s4 = sld [smem:[#allocation45_spill]]  ;;  %vm4360_vm5 = vcmask 261120   ;;  %s7652_s9 = smov 96  }
 0x18b   : > { %v816_v16 = vld [vmem:[#allocation6 + $0x188] sm:$0xff]  ;;  %5986 = vmatpush1.bf16.msra.mxu1 %v5985_v11  ;;  %v815_v22 = vld [vmem:[#allocation6 + $0x180] sm:$0xff]  ;;  %v802_v61 = vld [vmem:[#allocation6 + $0x118] sm:$0xff]  ;;  %v6001_v4 = vpack.c.bf16 %v785_v57, %v769_v56  ;;  %s8711_s7 = smov 64   ;;  %s7653_s12 = smov 32  }
 0x18c   : > { %v804_v17 = vld [vmem:[#allocation6 + $0x128] sm:$0xff]  ;;  %6016 = vmatprep.subr.bf16.mxu0 %v6015_v10  ;;  %v5987_v19 = vpack.c.bf16 %v816_v16, %v800_v14  ;;  %v803_v23 = vld [vmem:[#allocation6 + $0x120] sm:$0xff]  ;;  %v5989_v24 = vpack.c.bf16 %v815_v22, %v799_v21  ;;  %v818_v62 = vld [vmem:[#allocation6 + $0x198] sm:$0xff]  ;;  %s8712_s8 = sld [smem:[#allocation46_spill]]  ;;  %s5690_s10 = sshll.u32 %s7782_s23, 4 }
 0x18d   : > { %v820_v18 = vld [vmem:[#allocation6 + $0x1a8] sm:$0xff]  ;;  %6018 = vmatpush1.bf16.msra.mxu0 %v6017_v15  ;;  %v819_v25 = vld [vmem:[#allocation6 + $0x1a0] sm:$0xff]  ;;  %v8144_v3 = vld [vmem:[%s669_s19] sm:$0x1]  ;;  %v6003_v6 = vpack.c.bf16 %v818_v62, %v802_v61  ;;  %s8708_s19 = sld [smem:[#allocation42_spill]]  ;;  %s5344_s27 = scalar_lea.sflag [#allocation5], %s8106_s6 }
 0x18e   : > { %v6019_v20 = vpack.c.bf16 %v820_v18, %v804_v17  ;;  %v832_v26 = vld [vmem:[#allocation6 + $0x208] sm:$0xff]  ;;  %5988 = vmatprep.subr.bf16.mxu1 %v5987_v19  ;;  %v6021_v28 = vpack.c.bf16 %v819_v25, %v803_v23  ;;  %v831_v32 = vld [vmem:[#allocation6 + $0x200] sm:$0xff]  ;;  %v801_v7 = vld [vmem:[#allocation6 + $0x110] sm:$0xff]  ;;  %p8714_p3 = scmp.ne.s32.totalorder %s8688_s16, 0  ;;  %s7657_s23 = smov [#allocation23]  }
 0x18f   : > { %v848_v27 = vld [vmem:[#allocation6 + $0x288] sm:$0xff]  ;;  %v847_v34 = vld [vmem:[#allocation6 + $0x280] sm:$0xff]  ;;  %5990 = vmatpush1.bf16.msra.mxu1 %v5989_v24  ;;  %v817_v8 = vld [vmem:[#allocation6 + $0x190] sm:$0xff] }
 0x190   : > { %6020 = vmatprep.subr.bf16.mxu0 %v6019_v20  ;;  %v5991_v29 = vpack.c.bf16 %v848_v27, %v832_v26  ;;  %v836_v30 = vld [vmem:[#allocation6 + $0x228] sm:$0xff]  ;;  %v835_v35 = vld [vmem:[#allocation6 + $0x220] sm:$0xff]  ;;  %v5993_v37 = vpack.c.bf16 %v847_v34, %v831_v32  ;;  %v834_v12 = vld [vmem:[#allocation6 + $0x218] sm:$0xff]  ;;  %v6005_v16 = vpack.c.bf16 %v817_v8, %v801_v7 }
 0x191   : > { %v852_v31 = vld [vmem:[#allocation6 + $0x2a8] sm:$0xff]  ;;  %v851_v36 = vld [vmem:[#allocation6 + $0x2a0] sm:$0xff]  ;;  %6022 = vmatpush1.bf16.msra.mxu0 %v6021_v28  ;;  %v850_v13 = vld [vmem:[#allocation6 + $0x298] sm:$0xff] }
 0x192   : > { %v6023_v33 = vpack.c.bf16 %v852_v31, %v836_v30  ;;  %v864_v38 = vld [vmem:[#allocation6 + $0x308] sm:$0xff]  ;;  %5992 = vmatprep.subr.bf16.mxu1 %v5991_v29  ;;  %v6025_v41 = vpack.c.bf16 %v851_v36, %v835_v35  ;;  %v863_v44 = vld [vmem:[#allocation6 + $0x300] sm:$0xff]  ;;  %v6007_v18 = vpack.c.bf16 %v850_v13, %v834_v12  ;;  %v833_v19 = vld [vmem:[#allocation6 + $0x210] sm:$0xff] }
 0x193   : > { %v880_v39 = vld [vmem:[#allocation6 + $0x388] sm:$0xff]  ;;  %v879_v45 = vld [vmem:[#allocation6 + $0x380] sm:$0xff]  ;;  %5994 = vmatpush1.bf16.msra.mxu1 %v5993_v37  ;;  %v849_v20 = vld [vmem:[#allocation6 + $0x290] sm:$0xff] }
 0x194   : > { %v868_v40 = vld [vmem:[#allocation6 + $0x328] sm:$0xff]  ;;  %v5995_v42 = vpack.c.bf16 %v880_v39, %v864_v38  ;;  %6024 = vmatprep.subr.bf16.mxu0 %v6023_v33  ;;  %v867_v47 = vld [vmem:[#allocation6 + $0x320] sm:$0xff]  ;;  %v5997_v52 = vpack.c.bf16 %v879_v45, %v863_v44  ;;  %v866_v24 = vld [vmem:[#allocation6 + $0x318] sm:$0xff]  ;;  %v6009_v28 = vpack.c.bf16 %v849_v20, %v833_v19 }
 0x195   : > { %v884_v43 = vld [vmem:[#allocation6 + $0x3a8] sm:$0xff]  ;;  %v883_v48 = vld [vmem:[#allocation6 + $0x3a0] sm:$0xff]  ;;  %6026 = vmatpush1.bf16.msra.mxu0 %v6025_v41  ;;  %v882_v25 = vld [vmem:[#allocation6 + $0x398] sm:$0xff] }
 0x196   : > { %v6027_v46 = vpack.c.bf16 %v884_v43, %v868_v40  ;;  %v776_v51 = vld [vmem:[#allocation6 + $0x48] sm:$0xff]  ;;  %5996 = vmatprep.subr.bf16.mxu1 %v5995_v42  ;;  %v6029_v54 = vpack.c.bf16 %v883_v48, %v867_v47  ;;  %v775_v58 = vld [vmem:[#allocation6 + $0x40] sm:$0xff]  ;;  %v6011_v30 = vpack.c.bf16 %v882_v25, %v866_v24  ;;  %v865_v31 = vld [vmem:[#allocation6 + $0x310] sm:$0xff] }
 0x197   : > { %v792_v53 = vld [vmem:[#allocation6 + $0xc8] sm:$0xff]  ;;  %v791_v60 = vld [vmem:[#allocation6 + $0xc0] sm:$0xff]  ;;  %5998 = vmatpush1.bf16.msra.mxu1 %v5997_v52  ;;  %v881_v32 = vld [vmem:[#allocation6 + $0x390] sm:$0xff] }
 0x198   : > { %6028 = vmatprep.subr.bf16.mxu0 %v6027_v46  ;;  %v6047_v59 = vpack.c.bf16 %v792_v53, %v776_v51  ;;  %v808_v63 = vld [vmem:[#allocation6 + $0x148] sm:$0xff]  ;;  %6000 = vmatprep.subr.bf16.mxu1 %v5999_v55  ;;  %v6049_v5 = vpack.c.bf16 %v791_v60, %v775_v58  ;;  %v807_v9 = vld [vmem:[#allocation6 + $0x140] sm:$0xff]  ;;  %v774_v36 = vld [vmem:[#allocation6 + $0x38] sm:$0xff]  ;;  %v6013_v40 = vpack.c.bf16 %v881_v32, %v865_v31 }
 0x199   : > { %v824_v0 = vld [vmem:[#allocation6 + $0x1c8] sm:$0xff]  ;;  %6030 = vmatpush1.bf16.msra.mxu0 %v6029_v54  ;;  %v823_v11 = vld [vmem:[#allocation6 + $0x1c0] sm:$0xff]  ;;  %v790_v37 = vld [vmem:[#allocation6 + $0xb8] sm:$0xff] }
 0x19a   : > { %6048 = vmatprep.subr.bf16.mxu0 %v6047_v59  ;;  %v6051_v10 = vpack.c.bf16 %v824_v0, %v808_v63  ;;  %5551 = vmatmul.mubr.msk.f32.vlgmr.msra.gmra.mrb[0].mxu1 %vm895_vm0, %v8144_v3  ;;  %v840_v14 = vld [vmem:[#allocation6 + $0x248] sm:$0xff]  ;;  %v6053_v17 = vpack.c.bf16 %v823_v11, %v807_v9  ;;  %v839_v21 = vld [vmem:[#allocation6 + $0x240] sm:$0xff]  ;;  %v6031_v42 = vpack.c.bf16 %v790_v37, %v774_v36  ;;  %v773_v43 = vld [vmem:[#allocation6 + $0x30] sm:$0xff] }
 0x19b   : > { %v856_v15 = vld [vmem:[#allocation6 + $0x2c8] sm:$0xff]  ;;  %6002 = vmatpush1.bf16.msra.mxu1 %v6001_v4  ;;  %v855_v23 = vld [vmem:[#allocation6 + $0x2c0] sm:$0xff]  ;;  %1034 = vmatprep.mubr.f32.mxu1 %v7649_v1  ;;  %v789_v44 = vld [vmem:[#allocation6 + $0xb0] sm:$0xff] }
 0x19c   : > { %5553 = vmatmul.mubr.msk.f32.vlgmr.msra.gmra.mrb[0].mxu0 %vm895_vm0, %v8144_v3  ;;  %6004 = vmatprep.subr.bf16.mxu1 %v6003_v6  ;;  %v6055_v22 = vpack.c.bf16 %v856_v15, %v840_v14  ;;  %v872_v26 = vld [vmem:[#allocation6 + $0x348] sm:$0xff]  ;;  %v6057_v29 = vpack.c.bf16 %v855_v23, %v839_v21  ;;  %v871_v33 = vld [vmem:[#allocation6 + $0x340] sm:$0xff]  ;;  %v806_v48 = vld [vmem:[#allocation6 + $0x138] sm:$0xff]  ;;  %v6033_v52 = vpack.c.bf16 %v789_v44, %v773_v43 }
 0x19d   : > { %6050 = vmatpush1.bf16.msra.mxu0 %v6049_v5  ;;  %1247 = vmatprep.mubr.f32.mxu0 %v7649_v1  ;;  %v888_v27 = vld [vmem:[#allocation6 + $0x3c8] sm:$0xff]  ;;  %v887_v35 = vld [vmem:[#allocation6 + $0x3c0] sm:$0xff]  ;;  %v822_v49 = vld [vmem:[#allocation6 + $0x1b8] sm:$0xff] }
 0x19e   : > { %6052 = vmatprep.subr.bf16.mxu0 %v6051_v10  ;;  %v6059_v34 = vpack.c.bf16 %v888_v27, %v872_v26  ;;  %v780_v38 = vld [vmem:[#allocation6 + $0x68] sm:$0xff]  ;;  %v6061_v41 = vpack.c.bf16 %v887_v35, %v871_v33  ;;  %v779_v45 = vld [vmem:[#allocation6 + $0x60] sm:$0xff]  ;;  %v6035_v54 = vpack.c.bf16 %v822_v49, %v806_v48  ;;  %v805_v55 = vld [vmem:[#allocation6 + $0x130] sm:$0xff] }
 0x19f   : > { %6006 = vmatpush1.bf16.msra.mxu1 %v6005_v16  ;;  %v796_v39 = vld [vmem:[#allocation6 + $0xe8] sm:$0xff]  ;;  %v795_v47 = vld [vmem:[#allocation6 + $0xe0] sm:$0xff]  ;;  %v821_v56 = vld [vmem:[#allocation6 + $0x1b0] sm:$0xff] }
 0x1a0   : > { %6008 = vmatprep.subr.bf16.mxu1 %v6007_v18  ;;  %v6079_v46 = vpack.c.bf16 %v796_v39, %v780_v38  ;;  %v812_v50 = vld [vmem:[#allocation6 + $0x168] sm:$0xff]  ;;  %v6081_v53 = vpack.c.bf16 %v795_v47, %v779_v45  ;;  %v811_v57 = vld [vmem:[#allocation6 + $0x160] sm:$0xff]  ;;  %v838_v60 = vld [vmem:[#allocation6 + $0x238] sm:$0xff]  ;;  %v6037_v0 = vpack.c.bf16 %v821_v56, %v805_v55 }
 0x1a1   : > { %6054 = vmatpush1.bf16.msra.mxu0 %v6053_v17  ;;  %v828_v51 = vld [vmem:[#allocation6 + $0x1e8] sm:$0xff]  ;;  %v827_v59 = vld [vmem:[#allocation6 + $0x1e0] sm:$0xff]  ;;  %v854_v61 = vld [vmem:[#allocation6 + $0x2b8] sm:$0xff] }
 0x1a2   : > { %6056 = vmatprep.subr.bf16.mxu0 %v6055_v22  ;;  %v6083_v58 = vpack.c.bf16 %v828_v51, %v812_v50  ;;  %v844_v62 = vld [vmem:[#allocation6 + $0x268] sm:$0xff]  ;;  %v6085_v4 = vpack.c.bf16 %v827_v59, %v811_v57  ;;  %v6039_v5 = vpack.c.bf16 %v854_v61, %v838_v60  ;;  %v837_v6 = vld [vmem:[#allocation6 + $0x230] sm:$0xff]  ;;  %v843_v8 = vld [vmem:[#allocation6 + $0x260] sm:$0xff] }
 0x1a3   : > { %6010 = vmatpush1.bf16.msra.mxu1 %v6009_v28  ;;  %v860_v63 = vld [vmem:[#allocation6 + $0x2e8] sm:$0xff]  ;;  %v853_v7 = vld [vmem:[#allocation6 + $0x2b0] sm:$0xff]  ;;  %v859_v10 = vld [vmem:[#allocation6 + $0x2e0] sm:$0xff] }
 0x1a4   : > { %6012 = vmatprep.subr.bf16.mxu1 %v6011_v30  ;;  %v6087_v9 = vpack.c.bf16 %v860_v63, %v844_v62  ;;  %v870_v11 = vld [vmem:[#allocation6 + $0x338] sm:$0xff]  ;;  %v876_v13 = vld [vmem:[#allocation6 + $0x368] sm:$0xff]  ;;  %v6041_v15 = vpack.c.bf16 %v853_v7, %v837_v6  ;;  %v6089_v16 = vpack.c.bf16 %v859_v10, %v843_v8  ;;  %v869_v18 = vld [vmem:[#allocation6 + $0x330] sm:$0xff] }
 0x1a5   : > { %6058 = vmatpush1.bf16.msra.mxu0 %v6057_v29  ;;  %v886_v12 = vld [vmem:[#allocation6 + $0x3b8] sm:$0xff]  ;;  %v892_v14 = vld [vmem:[#allocation6 + $0x3e8] sm:$0xff]  ;;  %v885_v19 = vld [vmem:[#allocation6 + $0x3b0] sm:$0xff] }
 0x1a6   : > { %6060 = vmatprep.subr.bf16.mxu0 %v6059_v34  ;;  %v6043_v17 = vpack.c.bf16 %v886_v12, %v870_v11  ;;  %v875_v20 = vld [vmem:[#allocation6 + $0x360] sm:$0xff]  ;;  %v6091_v21 = vpack.c.bf16 %v892_v14, %v876_v13  ;;  %v778_v23 = vld [vmem:[#allocation6 + $0x58] sm:$0xff]  ;;  %v6045_v27 = vpack.c.bf16 %v885_v19, %v869_v18  ;;  %v1617_v28 = vld [vmem:[#allocation9 + $0x8] sm:$0xff] }
 0x1a7   : > { %6014 = vmatpush1.bf16.msra.mxu1 %v6013_v40  ;;  %v891_v22 = vld [vmem:[#allocation6 + $0x3e0] sm:$0xff]  ;;  %v794_v24 = vld [vmem:[#allocation6 + $0xd8] sm:$0xff]  ;;  %v1625_v29 = vld [vmem:[#allocation9 + $0x48] sm:$0xff] }
 0x1a8   : > { %6032 = vmatprep.subr.bf16.mxu1 %v6031_v42  ;;  %v1467_v25 = vld [vmem:[%s8706_s29] sm:$0xf]  ;;  %v5560_v26 = vld [vmem:[%s8706_s29 + $0x8] sm:$0xf]  ;;  %v6093_v30 = vpack.c.bf16 %v891_v22, %v875_v20  ;;  %v6063_v31 = vpack.c.bf16 %v794_v24, %v778_v23  ;;  %v777_v32 = vld [vmem:[#allocation6 + $0x50] sm:$0xff]  ;;  %v6111_v37 = vpack.c.bf16 %v1625_v29, %v1617_v28 }
 0x1a9   : > { %6062 = vmatpush1.bf16.msra.mxu0 %v6061_v41  ;;  %1470 = vperm.xlu0 %7085, %v1467_v25   ;;  %v793_v33 = vld [vmem:[#allocation6 + $0xd0] sm:$0xff]  ;;  %v5559_v34 = vld [vmem:[%s8706_s29 + $0x4] sm:$0xf]  ;;  %v810_v35 = vld [vmem:[#allocation6 + $0x158] sm:$0xff] }
 0x1aa   : > { %6080 = vmatprep.subr.bf16.mxu0 %v6079_v46  ;;  %5552 = vmatmul.mubr.msk.f32.vlgmr.msra.gmra.mrb[2].mxu1 %vm895_vm0, %v8144_v3  ;;  %v826_v36 = vld [vmem:[#allocation6 + $0x1d8] sm:$0xff]  ;;  %v5561_v38 = vld [vmem:[%s8706_s29 + $0xc] sm:$0xf]  ;;  %v6065_v41 = vpack.c.bf16 %v793_v33, %v777_v32  ;;  %v809_v45 = vld [vmem:[#allocation6 + $0x150] sm:$0xff] }
 0x1ab   : > { %6034 = vmatpush1.bf16.msra.mxu1 %v6033_v52  ;;  %1176 = vmatprep.mubr.f32.mxu1 %v7649_v1  ;;  %v1616_v39 = vld [vmem:[#allocation9] sm:$0xff]  ;;  %v1633_v42 = vld [vmem:[#allocation9 + $0x88] sm:$0xff]  ;;  %v6067_v44 = vpack.c.bf16 %v826_v36, %v810_v35  ;;  %v842_v47 = vld [vmem:[#allocation6 + $0x258] sm:$0xff] }
 0x1ac   : > { %5555 = vmatmul.mubr.msk.f32.vlgmr.msra.gmra.mrb[2].mxu0 %vm895_vm0, %v8144_v3  ;;  %6036 = vmatprep.subr.bf16.mxu1 %v6035_v54  ;;  %v1624_v40 = vld [vmem:[#allocation9 + $0x40] sm:$0xff]  ;;  %v1641_v43 = vld [vmem:[#allocation9 + $0xc8] sm:$0xff]  ;;  %v858_v48 = vld [vmem:[#allocation6 + $0x2d8] sm:$0xff] }
 0x1ad   : > { %6082 = vmatpush1.bf16.msra.mxu0 %v6081_v53  ;;  %1389 = vmatprep.mubr.f32.mxu0 %v7649_v1  ;;  %v825_v46 = vld [vmem:[#allocation6 + $0x1d0] sm:$0xff]  ;;  %v6113_v49 = vpack.c.bf16 %v1624_v40, %v1616_v39  ;;  %v6115_v50 = vpack.c.bf16 %v1641_v43, %v1633_v42  ;;  %v1632_v51 = vld [vmem:[#allocation9 + $0x80] sm:$0xff]  ;;  %v6071_v56 = vpack.c.bf16 %v858_v48, %v842_v47  ;;  %v874_v59 = vld [vmem:[#allocation6 + $0x358] sm:$0xff] }
 0x1ae   : > { %6084 = vmatprep.subr.bf16.mxu0 %v6083_v58  ;;  %1528 = vperm.xlu1 %7086, %v5560_v26   ;;  %v1640_v52 = vld [vmem:[#allocation9 + $0xc0] sm:$0xff]  ;;  %v6069_v53 = vpack.c.bf16 %v825_v46, %v809_v45  ;;  %v1649_v54 = vld [vmem:[#allocation9 + $0x108] sm:$0xff]  ;;  %v890_v60 = vld [vmem:[#allocation6 + $0x3d8] sm:$0xff] }
 0x1af   : > { %6038 = vmatpush1.bf16.msra.mxu1 %v6037_v0  ;;  %1497 = vperm.xlu0 %7085, %v5559_v34   ;;  %v1657_v55 = vld [vmem:[#allocation9 + $0x148] sm:$0xff]  ;;  %v6117_v61 = vpack.c.bf16 %v1640_v52, %v1632_v51  ;;  %v1648_v63 = vld [vmem:[#allocation9 + $0x100] sm:$0xff]  ;;  %v782_v8 = vld [vmem:[#allocation6 + $0x78] sm:$0xff] }
 0x1b0   : > { %6040 = vmatprep.subr.bf16.mxu1 %v6039_v5  ;;  %v841_v57 = vld [vmem:[#allocation6 + $0x250] sm:$0xff]  ;;  %v6119_v62 = vpack.c.bf16 %v1657_v55, %v1649_v54  ;;  %v1656_v0 = vld [vmem:[#allocation9 + $0x140] sm:$0xff]  ;;  %v6075_v5 = vpack.c.bf16 %v890_v60, %v874_v59  ;;  %v862_v22 = vld [vmem:[#allocation6 + $0x2f8] sm:$0xff] }
 0x1b1   : > { %6086 = vmatpush1.bf16.msra.mxu0 %v6085_v4  ;;  %v857_v58 = vld [vmem:[#allocation6 + $0x2d0] sm:$0xff]  ;;  %v6121_v10 = vpack.c.bf16 %v1656_v0, %v1648_v63  ;;  %v894_v28 = vld [vmem:[#allocation6 + $0x3f8] sm:$0xff] }
 0x1b2   : > { %6088 = vmatprep.subr.bf16.mxu0 %v6087_v9  ;;  %1559 = vperm.xlu1 %7086, %v5561_v38   ;;  %v6073_v4 = vpack.c.bf16 %v857_v58, %v841_v57  ;;  %v873_v6 = vld [vmem:[#allocation6 + $0x350] sm:$0xff]  ;;  %v798_v9 = vld [vmem:[#allocation6 + $0xf8] sm:$0xff]  ;;  %v1664_v57 = vld [vmem:[#allocation9 + $0x180] sm:$0xff] }
 0x1b3   : > { %6042 = vmatpush1.bf16.msra.mxu1 %v6041_v15  ;;  %v889_v7 = vld [vmem:[#allocation6 + $0x3d0] sm:$0xff]  ;;  %v6095_v12 = vpack.c.bf16 %v798_v9, %v782_v8  ;;  %v814_v15 = vld [vmem:[#allocation6 + $0x178] sm:$0xff]  ;;  %v1672_v58 = vld [vmem:[#allocation9 + $0x1c0] sm:$0xff] }
 0x1b4   : > { %6044 = vmatprep.subr.bf16.mxu1 %v6043_v17  ;;  %v6077_v11 = vpack.c.bf16 %v889_v7, %v873_v6  ;;  %v781_v13 = vld [vmem:[#allocation6 + $0x70] sm:$0xff]  ;;  %v1619_v33 = vld [vmem:[#allocation9 + $0x18] sm:$0xff]  ;;  %v6125_v60 = vpack.c.bf16 %v1672_v58, %v1664_v57  ;;  %v1680_v7 = vld [vmem:[#allocation9 + $0x200] sm:$0xff] }
 0x1b5   : > { %6090 = vmatpush1.bf16.msra.mxu0 %v6089_v16  ;;  %v797_v14 = vld [vmem:[#allocation6 + $0xf0] sm:$0xff]  ;;  %v830_v16 = vld [vmem:[#allocation6 + $0x1f8] sm:$0xff]  ;;  %v1688_v8 = vld [vmem:[#allocation9 + $0x240] sm:$0xff] }
 0x1b6   : > { %6092 = vmatprep.subr.bf16.mxu0 %v6091_v21  ;;  %v6097_v17 = vpack.c.bf16 %v797_v14, %v781_v13  ;;  %v6099_v18 = vpack.c.bf16 %v830_v16, %v814_v15  ;;  %v813_v19 = vld [vmem:[#allocation6 + $0x170] sm:$0xff]  ;;  %v846_v21 = vld [vmem:[#allocation6 + $0x278] sm:$0xff] }
 0x1b7   : > { %6046 = vmatpush1.bf16.msra.mxu1 %v6045_v27  ;;  %v829_v20 = vld [vmem:[#allocation6 + $0x1f0] sm:$0xff]  ;;  %v6103_v24 = vpack.c.bf16 %v862_v22, %v846_v21  ;;  %v878_v27 = vld [vmem:[#allocation6 + $0x378] sm:$0xff] }
 0x1b8   : > { %6064 = vmatprep.subr.bf16.mxu1 %v6063_v31  ;;  %v6101_v23 = vpack.c.bf16 %v829_v20, %v813_v19  ;;  %v845_v25 = vld [vmem:[#allocation6 + $0x270] sm:$0xff]  ;;  %v1627_v34 = vld [vmem:[#allocation9 + $0x58] sm:$0xff]  ;;  %v1696_v19 = vld [vmem:[#allocation9 + $0x280] sm:$0xff] }
 0x1b9   : > { %6094 = vmatpush1.bf16.msra.mxu0 %v6093_v30  ;;  %v861_v26 = vld [vmem:[#allocation6 + $0x2f0] sm:$0xff]  ;;  %v6107_v30 = vpack.c.bf16 %v894_v28, %v878_v27  ;;  %v6239_v36 = vpack.c.bf16 %v1627_v34, %v1619_v33  ;;  %v1635_v39 = vld [vmem:[#allocation9 + $0x98] sm:$0xff]  ;;  %v1704_v20 = vld [vmem:[#allocation9 + $0x2c0] sm:$0xff] }
 0x1ba   : > { %6112 = vmatprep.subr.bf16.mxu0 %v6111_v37  ;;  %5554 = vmatmul.mubr.msk.f32.vlgmr.msra.gmra.mrb[4].mxu1 %vm895_vm0, %v8144_v3  ;;  %v6105_v29 = vpack.c.bf16 %v861_v26, %v845_v25  ;;  %v877_v31 = vld [vmem:[#allocation6 + $0x370] sm:$0xff]  ;;  %v1643_v40 = vld [vmem:[#allocation9 + $0xd8] sm:$0xff]  ;;  %v6133_v22 = vpack.c.bf16 %v1704_v20, %v1696_v19  ;;  %v1720_v33 = vld [vmem:[#allocation9 + $0x340] sm:$0xff] }
 0x1bb   : > { %6066 = vmatpush1.bf16.msra.mxu1 %v6065_v41  ;;  %1318 = vmatprep.mubr.f32.mxu1 %v7649_v1  ;;  %v893_v32 = vld [vmem:[#allocation6 + $0x3f0] sm:$0xff]  ;;  %v6243_v42 = vpack.c.bf16 %v1643_v40, %v1635_v39  ;;  %v1651_v45 = vld [vmem:[#allocation9 + $0x118] sm:$0xff]  ;;  %v1784_v19 = vld [vmem:[#allocation9 + $0x540] sm:$0xff] }
 0x1bc   : > { %5557 = vmatmul.mubr.msk.f32.vlgmr.msra.gmra.mrb[4].mxu0 %vm895_vm0, %v8144_v3  ;;  %6068 = vmatprep.subr.bf16.mxu1 %v6067_v44  ;;  %v6109_v35 = vpack.c.bf16 %v893_v32, %v877_v31  ;;  %v1618_v37 = vld [vmem:[#allocation9 + $0x10] sm:$0xff]  ;;  %v1659_v46 = vld [vmem:[#allocation9 + $0x158] sm:$0xff]  ;;  %v1665_v52 = vld [vmem:[#allocation9 + $0x188] sm:$0xff] }
 0x1bd   : > { %6114 = vmatpush1.bf16.msra.mxu0 %v6113_v49  ;;  %v1626_v38 = vld [vmem:[#allocation9 + $0x50] sm:$0xff]  ;;  %v6247_v48 = vpack.c.bf16 %v1659_v46, %v1651_v45  ;;  %v1667_v54 = vld [vmem:[#allocation9 + $0x198] sm:$0xff]  ;;  %v1681_v63 = vld [vmem:[#allocation9 + $0x208] sm:$0xff] }
 0x1be   : > { %6116 = vmatprep.subr.bf16.mxu0 %v6115_v50  ;;  %v6241_v41 = vpack.c.bf16 %v1626_v38, %v1618_v37  ;;  %v1634_v43 = vld [vmem:[#allocation9 + $0x90] sm:$0xff]  ;;  %v1689_v0 = vld [vmem:[#allocation9 + $0x248] sm:$0xff]  ;;  %v1691_v6 = vld [vmem:[#allocation9 + $0x258] sm:$0xff] }
 0x1bf   : > { %6070 = vmatpush1.bf16.msra.mxu1 %v6069_v53  ;;  %v1642_v44 = vld [vmem:[#allocation9 + $0xd0] sm:$0xff]  ;;  %v1673_v53 = vld [vmem:[#allocation9 + $0x1c8] sm:$0xff]  ;;  %v1699_v16 = vld [vmem:[#allocation9 + $0x298] sm:$0xff] }
 0x1c0   : > { %6072 = vmatprep.subr.bf16.mxu1 %v6071_v56  ;;  %v6245_v47 = vpack.c.bf16 %v1642_v44, %v1634_v43  ;;  %v1650_v49 = vld [vmem:[#allocation9 + $0x110] sm:$0xff]  ;;  %v6123_v55 = vpack.c.bf16 %v1673_v53, %v1665_v52  ;;  %v1675_v56 = vld [vmem:[#allocation9 + $0x1d8] sm:$0xff]  ;;  %v1697_v14 = vld [vmem:[#allocation9 + $0x288] sm:$0xff] }
 0x1c1   : > { %6118 = vmatpush1.bf16.msra.mxu0 %v6117_v61  ;;  %v1658_v50 = vld [vmem:[#allocation9 + $0x150] sm:$0xff]  ;;  %v6251_v59 = vpack.c.bf16 %v1675_v56, %v1667_v54  ;;  %v1705_v15 = vld [vmem:[#allocation9 + $0x2c8] sm:$0xff]  ;;  %v1715_v28 = vld [vmem:[#allocation9 + $0x318] sm:$0xff] }
 0x1c2   : > { %6120 = vmatprep.subr.bf16.mxu0 %v6119_v62  ;;  %v6249_v51 = vpack.c.bf16 %v1658_v50, %v1650_v49  ;;  %v1674_v61 = vld [vmem:[#allocation9 + $0x1d0] sm:$0xff]  ;;  %v1713_v25 = vld [vmem:[#allocation9 + $0x308] sm:$0xff]  ;;  %v1712_v32 = vld [vmem:[#allocation9 + $0x300] sm:$0xff] }
 0x1c3   : > { %6074 = vmatpush1.bf16.msra.mxu1 %v6073_v4  ;;  %v1683_v4 = vld [vmem:[#allocation9 + $0x218] sm:$0xff]  ;;  %v1721_v27 = vld [vmem:[#allocation9 + $0x348] sm:$0xff]  ;;  %v1714_v34 = vld [vmem:[#allocation9 + $0x310] sm:$0xff] }
 0x1c4   : > { %6076 = vmatprep.subr.bf16.mxu1 %v6075_v5  ;;  %v6127_v5 = vpack.c.bf16 %v1689_v0, %v1681_v63  ;;  %v6255_v9 = vpack.c.bf16 %v1691_v6, %v1683_v4  ;;  %v1729_v38 = vld [vmem:[#allocation9 + $0x388] sm:$0xff]  ;;  %v1731_v40 = vld [vmem:[#allocation9 + $0x398] sm:$0xff]  ;;  %v1728_v43 = vld [vmem:[#allocation9 + $0x380] sm:$0xff] }
 0x1c5   : > { %6122 = vmatpush1.bf16.msra.mxu0 %v6121_v10  ;;  %v6129_v10 = vpack.c.bf16 %v1688_v8, %v1680_v7  ;;  %v1737_v39 = vld [vmem:[#allocation9 + $0x3c8] sm:$0xff]  ;;  %v1736_v44 = vld [vmem:[#allocation9 + $0x3c0] sm:$0xff]  ;;  %v1747_v52 = vld [vmem:[#allocation9 + $0x418] sm:$0xff] }
 0x1c6   : > { %6124 = vmatprep.subr.bf16.mxu0 %v6123_v55  ;;  %v6141_v46 = vpack.c.bf16 %v1736_v44, %v1728_v43  ;;  %v1745_v50 = vld [vmem:[#allocation9 + $0x408] sm:$0xff]  ;;  %v1755_v54 = vld [vmem:[#allocation9 + $0x458] sm:$0xff]  ;;  %v1744_v55 = vld [vmem:[#allocation9 + $0x400] sm:$0xff] }
 0x1c7   : > { %6078 = vmatpush1.bf16.msra.mxu1 %v6077_v11  ;;  %v1682_v11 = vld [vmem:[#allocation9 + $0x210] sm:$0xff]  ;;  %v1752_v56 = vld [vmem:[#allocation9 + $0x440] sm:$0xff]  ;;  %v6271_v57 = vpack.c.bf16 %v1755_v54, %v1747_v52  ;;  %v1763_v63 = vld [vmem:[#allocation9 + $0x498] sm:$0xff] }
 0x1c8   : > { %6096 = vmatprep.subr.bf16.mxu1 %v6095_v12  ;;  %v1690_v12 = vld [vmem:[#allocation9 + $0x250] sm:$0xff]  ;;  %v6145_v58 = vpack.c.bf16 %v1752_v56, %v1744_v55  ;;  %v1771_v0 = vld [vmem:[#allocation9 + $0x4d8] sm:$0xff]  ;;  %v1760_v6 = vld [vmem:[#allocation9 + $0x480] sm:$0xff] }
 0x1c9   : > { %6126 = vmatpush1.bf16.msra.mxu0 %v6125_v60  ;;  %v6257_v13 = vpack.c.bf16 %v1690_v12, %v1682_v11  ;;  %v1754_v60 = vld [vmem:[#allocation9 + $0x450] sm:$0xff]  ;;  %v1768_v7 = vld [vmem:[#allocation9 + $0x4c0] sm:$0xff]  ;;  %v1777_v11 = vld [vmem:[#allocation9 + $0x508] sm:$0xff] }
 0x1ca   : > { %5556 = vmatmul.mubr.msk.f32.vlgmr.msra.gmra.mrb[6].mxu1 %vm895_vm0, %v8144_v3  ;;  %6128 = vmatprep.subr.bf16.mxu0 %v6127_v5  ;;  %v6275_v5 = vpack.c.bf16 %v1771_v0, %v1763_v63  ;;  %v1762_v8 = vld [vmem:[#allocation9 + $0x490] sm:$0xff]  ;;  %v1785_v12 = vld [vmem:[#allocation9 + $0x548] sm:$0xff]  ;;  %v1835_v52 = vld [vmem:[#allocation9 + $0x6d8] sm:$0xff] }
 0x1cb   : > { %6098 = vmatpush1.bf16.msra.mxu1 %v6097_v17  ;;  %1460 = vmatprep.mubr.f32.mxu1 %v7649_v1  ;;  %v6131_v17 = vpack.c.bf16 %v1705_v15, %v1697_v14  ;;  %v6151_v14 = vpack.c.bf16 %v1785_v12, %v1777_v11  ;;  %v1779_v15 = vld [vmem:[#allocation9 + $0x518] sm:$0xff]  ;;  %v1778_v20 = vld [vmem:[#allocation9 + $0x510] sm:$0xff]  ;;  %v1832_v54 = vld [vmem:[#allocation9 + $0x6c0] sm:$0xff] }
 0x1cc   : > { %6100 = vmatprep.subr.bf16.mxu1 %v6099_v18  ;;  %v1707_v18 = vld [vmem:[#allocation9 + $0x2d8] sm:$0xff]  ;;  %v1840_v0 = vld [vmem:[#allocation9 + $0x700] sm:$0xff]  ;;  %v1865_v11 = vld [vmem:[#allocation9 + $0x7c8] sm:$0xff] }
 0x1cd   : > { %6130 = vmatpush1.bf16.msra.mxu0 %v6129_v10  ;;  %v6259_v21 = vpack.c.bf16 %v1707_v18, %v1699_v16  ;;  %v1770_v10 = vld [vmem:[#allocation9 + $0x4d0] sm:$0xff]  ;;  %v1787_v16 = vld [vmem:[#allocation9 + $0x558] sm:$0xff] }
 0x1ce   : > { %6132 = vmatprep.subr.bf16.mxu0 %v6131_v17  ;;  %v1776_v17 = vld [vmem:[#allocation9 + $0x500] sm:$0xff]  ;;  %v6279_v18 = vpack.c.bf16 %v1787_v16, %v1779_v15  ;;  %v1851_v63 = vld [vmem:[#allocation9 + $0x758] sm:$0xff] }
 0x1cf   : > { %6102 = vmatpush1.bf16.msra.mxu1 %v6101_v23  ;;  %v1698_v23 = vld [vmem:[#allocation9 + $0x290] sm:$0xff]  ;;  %v1859_v12 = vld [vmem:[#allocation9 + $0x798] sm:$0xff]  ;;  %v1856_v15 = vld [vmem:[#allocation9 + $0x780] sm:$0xff] }
 0x1d0   : > { %6104 = vmatprep.subr.bf16.mxu1 %v6103_v24  ;;  %v1706_v24 = vld [vmem:[#allocation9 + $0x2d0] sm:$0xff]  ;;  %v1864_v16 = vld [vmem:[#allocation9 + $0x7c0] sm:$0xff] }
 0x1d1   : > { %v6261_v26 = vpack.c.bf16 %v1706_v24, %v1698_v23  ;;  %6134 = vmatpush1.bf16.msra.mxu0 %v6133_v22  ;;  %v6153_v22 = vpack.c.bf16 %v1784_v19, %v1776_v17  ;;  %v1793_v24 = vld [vmem:[#allocation9 + $0x588] sm:$0xff]  ;;  %v1858_v19 = vld [vmem:[#allocation9 + $0x790] sm:$0xff] }
 0x1d3   : > { %6106 = vmatpush1.bf16.msra.mxu1 %v6105_v29  ;;  %v1723_v29 = vld [vmem:[#allocation9 + $0x358] sm:$0xff] }
 0x1d4   : > { %6108 = vmatprep.subr.bf16.mxu1 %v6107_v30  ;;  %v6135_v30 = vpack.c.bf16 %v1721_v27, %v1713_v25  ;;  %v6263_v31 = vpack.c.bf16 %v1723_v29, %v1715_v28  ;;  %v1801_v25 = vld [vmem:[#allocation9 + $0x5c8] sm:$0xff]  ;;  %v1803_v28 = vld [vmem:[#allocation9 + $0x5d8] sm:$0xff]  ;;  %v1792_v29 = vld [vmem:[#allocation9 + $0x580] sm:$0xff] }
 0x1d5   : > { %v6155_v27 = vpack.c.bf16 %v1801_v25, %v1793_v24  ;;  %v1875_v24 = vld [vmem:[#allocation9 + $0x818] sm:$0xff] }
 0x1d6   : > { %6136 = vmatprep.subr.bf16.mxu0 %v6135_v30  ;;  %v1800_v30 = vld [vmem:[#allocation9 + $0x5c0] sm:$0xff] }
 0x1d7   : > { %6110 = vmatpush1.bf16.msra.mxu1 %v6109_v35  ;;  %v6137_v35 = vpack.c.bf16 %v1720_v33, %v1712_v32  ;;  %v6157_v32 = vpack.c.bf16 %v1800_v30, %v1792_v29  ;;  %v1794_v33 = vld [vmem:[#allocation9 + $0x590] sm:$0xff] }
 0x1d8   : > { %6240 = vmatprep.subr.bf16.mxu1 %v6239_v36  ;;  %v1722_v36 = vld [vmem:[#allocation9 + $0x350] sm:$0xff] }
 0x1d9   : > { %v6265_v37 = vpack.c.bf16 %v1722_v36, %v1714_v34  ;;  %6138 = vmatpush1.bf16.msra.mxu0 %v6137_v35  ;;  %v1802_v34 = vld [vmem:[#allocation9 + $0x5d0] sm:$0xff]  ;;  %v1809_v36 = vld [vmem:[#allocation9 + $0x608] sm:$0xff] }
 0x1da   : > { %5558 = vmatmul.mubr.msk.f32.vlgmr.msra.gmra.mrb[8].mxu1 %vm895_vm0, %v8144_v3  ;;  %v1666_v3 = vld [vmem:[#allocation9 + $0x190] sm:$0xff]  ;;  %v6285_v35 = vpack.c.bf16 %v1802_v34, %v1794_v33 }
 0x1db   : > { %6242 = vmatpush1.bf16.msra.mxu1 %v6241_v41  ;;  %v6253_v62 = vpack.c.bf16 %v1674_v61, %v1666_v3  ;;  %v6139_v41 = vpack.c.bf16 %v1737_v39, %v1729_v38  ;;  %v1761_v3 = vld [vmem:[#allocation9 + $0x488] sm:$0xff]  ;;  %v1811_v38 = vld [vmem:[#allocation9 + $0x618] sm:$0xff] }
 0x1dc   : > { %6244 = vmatprep.subr.bf16.mxu1 %v6243_v42  ;;  %v1739_v42 = vld [vmem:[#allocation9 + $0x3d8] sm:$0xff] }
 0x1dd   : > { %v6267_v45 = vpack.c.bf16 %v1739_v42, %v1731_v40  ;;  %6140 = vmatprep.subr.bf16.mxu0 %v6139_v41  ;;  %v1819_v40 = vld [vmem:[#allocation9 + $0x658] sm:$0xff]  ;;  %v1808_v41 = vld [vmem:[#allocation9 + $0x600] sm:$0xff] }
 0x1de   : > { %6142 = vmatpush1.bf16.msra.mxu0 %v6141_v46  ;;  %v1816_v42 = vld [vmem:[#allocation9 + $0x640] sm:$0xff]  ;;  %v6287_v43 = vpack.c.bf16 %v1819_v40, %v1811_v38  ;;  %v1818_v46 = vld [vmem:[#allocation9 + $0x650] sm:$0xff] }
 0x1df   : > { %6246 = vmatpush1.bf16.msra.mxu1 %v6245_v47  ;;  %v1730_v47 = vld [vmem:[#allocation9 + $0x390] sm:$0xff]  ;;  %v6161_v44 = vpack.c.bf16 %v1816_v42, %v1808_v41 }
 0x1e0   : > { %6248 = vmatprep.subr.bf16.mxu1 %v6247_v48  ;;  %v1738_v48 = vld [vmem:[#allocation9 + $0x3d0] sm:$0xff] }
 0x1e1   : > { %v6269_v49 = vpack.c.bf16 %v1738_v48, %v1730_v47  ;;  %v1825_v48 = vld [vmem:[#allocation9 + $0x688] sm:$0xff] }
 0x1e3   : > { %6250 = vmatpush1.bf16.msra.mxu1 %v6249_v51  ;;  %v1753_v51 = vld [vmem:[#allocation9 + $0x448] sm:$0xff] }
 0x1e4   : > { %6252 = vmatprep.subr.bf16.mxu1 %v6251_v59  ;;  %v6143_v53 = vpack.c.bf16 %v1753_v51, %v1745_v50  ;;  %v1746_v59 = vld [vmem:[#allocation9 + $0x410] sm:$0xff]  ;;  %v1827_v50 = vld [vmem:[#allocation9 + $0x698] sm:$0xff] }
 0x1e5   : > { %v6273_v61 = vpack.c.bf16 %v1754_v60, %v1746_v59  ;;  %v6291_v55 = vpack.c.bf16 %v1835_v52, %v1827_v50  ;;  %v1841_v60 = vld [vmem:[#allocation9 + $0x708] sm:$0xff] }
 0x1e6   : > { %6144 = vmatprep.subr.bf16.mxu0 %v6143_v53  ;;  %v1824_v53 = vld [vmem:[#allocation9 + $0x680] sm:$0xff] }
 0x1e7   : > { %6254 = vmatpush1.bf16.msra.mxu1 %v6253_v62  ;;  %v1769_v62 = vld [vmem:[#allocation9 + $0x4c8] sm:$0xff]  ;;  %6146 = vmatpush1.bf16.msra.mxu0 %v6145_v58  ;;  %v6165_v56 = vpack.c.bf16 %v1832_v54, %v1824_v53  ;;  %v1834_v58 = vld [vmem:[#allocation9 + $0x6d0] sm:$0xff] }
 0x1e8   : > { %6256 = vmatprep.subr.bf16.mxu1 %v6255_v9  ;;  %v6147_v4 = vpack.c.bf16 %v1769_v62, %v1761_v3  ;;  %v6149_v9 = vpack.c.bf16 %v1768_v7, %v1760_v6  ;;  %v1849_v3 = vld [vmem:[#allocation9 + $0x748] sm:$0xff]  ;;  %v1842_v7 = vld [vmem:[#allocation9 + $0x710] sm:$0xff] }
 0x1e9   : > { %v6167_v62 = vpack.c.bf16 %v1849_v3, %v1841_v60 }
 0x1ea   : > { %6148 = vmatprep.subr.bf16.mxu0 %v6147_v4  ;;  %v1848_v4 = vld [vmem:[#allocation9 + $0x740] sm:$0xff] }
 0x1eb   : > { %6258 = vmatpush1.bf16.msra.mxu1 %v6257_v13  ;;  %v6277_v13 = vpack.c.bf16 %v1770_v10, %v1762_v8  ;;  %6150 = vmatpush1.bf16.msra.mxu0 %v6149_v9  ;;  %v6169_v6 = vpack.c.bf16 %v1848_v4, %v1840_v0  ;;  %v1850_v8 = vld [vmem:[#allocation9 + $0x750] sm:$0xff]  ;;  %v1857_v10 = vld [vmem:[#allocation9 + $0x788] sm:$0xff] }
 0x1ec   : > { %6260 = vmatprep.subr.bf16.mxu1 %v6259_v21  ;;  %v1786_v21 = vld [vmem:[#allocation9 + $0x550] sm:$0xff]  ;;  %6152 = vmatprep.subr.bf16.mxu0 %v6151_v14  ;;  %v6297_v9 = vpack.c.bf16 %v1850_v8, %v1842_v7  ;;  %v1867_v14 = vld [vmem:[#allocation9 + $0x7d8] sm:$0xff] }
 0x1ed   : > { %v6281_v23 = vpack.c.bf16 %v1786_v21, %v1778_v20  ;;  %v6299_v17 = vpack.c.bf16 %v1867_v14, %v1859_v12  ;;  %v1866_v20 = vld [vmem:[#allocation9 + $0x7d0] sm:$0xff] }
 0x1ee   : > { %v6301_v21 = vpack.c.bf16 %v1866_v20, %v1858_v19 }
 0x1ef   : > { %6262 = vmatpush1.bf16.msra.mxu1 %v6261_v26  ;;  %6154 = vmatpush1.bf16.msra.mxu0 %v6153_v22  ;;  %v1795_v26 = vld [vmem:[#allocation9 + $0x598] sm:$0xff]  ;;  %v1873_v22 = vld [vmem:[#allocation9 + $0x808] sm:$0xff] }
 0x1f0   : > { %6264 = vmatprep.subr.bf16.mxu1 %v6263_v31  ;;  %v6283_v31 = vpack.c.bf16 %v1803_v28, %v1795_v26  ;;  %6156 = vmatprep.subr.bf16.mxu0 %v6155_v27  ;;  %v1883_v26 = vld [vmem:[#allocation9 + $0x858] sm:$0xff]  ;;  %v1473_v28 = vlaneseq }
 0x1f1   : > { %v6303_v27 = vpack.c.bf16 %v1883_v26, %v1875_v24  ;;  %v1872_v24 = vld [vmem:[#allocation9 + $0x800] sm:$0xff] }
 0x1f2   : > { %v8180_v29 = vshrl.u32 %v1473_v28, 7  ;;  %v1874_v28 = vld [vmem:[#allocation9 + $0x810] sm:$0xff] }
 0x1f3   : > { %6266 = vmatpush1.bf16.msra.mxu1 %v6265_v37  ;;  %6158 = vmatpush1.bf16.msra.mxu0 %v6157_v32  ;;  %v1817_v37 = vld [vmem:[#allocation9 + $0x648] sm:$0xff] }
 0x1f4   : > { %6268 = vmatprep.subr.bf16.mxu1 %v6267_v45  ;;  %v6159_v39 = vpack.c.bf16 %v1817_v37, %v1809_v36  ;;  %v1810_v45 = vld [vmem:[#allocation9 + $0x610] sm:$0xff]  ;;  %v1594_v0 = vsub.s32 1, %v8180_v29 }
 0x1f5   : > { %v6289_v47 = vpack.c.bf16 %v1818_v46, %v1810_v45 }
 0x1f6   : > { %6160 = vmatprep.subr.bf16.mxu0 %v6159_v39 }
 0x1f7   : > { %6270 = vmatpush1.bf16.msra.mxu1 %v6269_v49  ;;  %6162 = vmatpush1.bf16.msra.mxu0 %v6161_v44  ;;  %v1833_v49 = vld [vmem:[#allocation9 + $0x6c8] sm:$0xff] }
 0x1f8   : > { %6272 = vmatprep.subr.bf16.mxu1 %v6271_v57  ;;  %v6163_v51 = vpack.c.bf16 %v1833_v49, %v1825_v48  ;;  %v1826_v57 = vld [vmem:[#allocation9 + $0x690] sm:$0xff] }
 0x1f9   : > { %v6293_v59 = vpack.c.bf16 %v1834_v58, %v1826_v57 }
 0x1fa   : > { %6164 = vmatprep.subr.bf16.mxu0 %v6163_v51 }
 0x1fb   : > { %6274 = vmatpush1.bf16.msra.mxu1 %v6273_v61  ;;  %6166 = vmatpush1.bf16.msra.mxu0 %v6165_v56  ;;  %v1843_v61 = vld [vmem:[#allocation9 + $0x718] sm:$0xff] }
 0x1fc   : > { %6276 = vmatprep.subr.bf16.mxu1 %v6275_v5  ;;  %v6295_v5 = vpack.c.bf16 %v1851_v63, %v1843_v61  ;;  %6168 = vmatprep.subr.bf16.mxu0 %v6167_v62  ;;  %v8194_v62 = vld [vmem:[#allocation8] sm:$0xf] }
 0x1ff   : > { %6278 = vmatpush1.bf16.msra.mxu1 %v6277_v13  ;;  %6170 = vmatpush1.bf16.msra.mxu0 %v6169_v6  ;;  %v6171_v13 = vpack.c.bf16 %v1865_v11, %v1857_v10 }
 0x200   : > { %6280 = vmatprep.subr.bf16.mxu1 %v6279_v18  ;;  %v6173_v18 = vpack.c.bf16 %v1864_v16, %v1856_v15 }
 0x201   : > { %6172 = vmatprep.subr.bf16.mxu0 %v6171_v13 }
 0x203   : > { %6282 = vmatpush1.bf16.msra.mxu1 %v6281_v23  ;;  %6174 = vmatpush1.bf16.msra.mxu0 %v6173_v18  ;;  %v1881_v23 = vld [vmem:[#allocation9 + $0x848] sm:$0xff] }
 0x204   : > { %6284 = vmatprep.subr.bf16.mxu1 %v6283_v31  ;;  %v6175_v25 = vpack.c.bf16 %v1881_v23, %v1873_v22  ;;  %v8183_v31 = vsub.s32 0, %v8180_v29 }
 0x206   : > { %6176 = vmatprep.subr.bf16.mxu0 %v6175_v25  ;;  %v1591_v13 = vrot.slane %v8194_v62, %v8183_v31  ;;  %v1880_v25 = vld [vmem:[#allocation9 + $0x840] sm:$0xff] }
 0x207   : > { %6286 = vmatpush1.bf16.msra.mxu1 %v6285_v35 }
 0x208   : > { %6288 = vmatprep.subr.bf16.mxu1 %v6287_v43 }
 0x20b   : > { %6290 = vmatpush1.bf16.msra.mxu1 %v6289_v47 }
 0x20c   : > { %6292 = vmatprep.subr.bf16.mxu1 %v6291_v55 }
 0x20f   : > { %6294 = vmatpush1.bf16.msra.mxu1 %v6293_v59 }
 0x210   : > { %6296 = vmatprep.subr.bf16.mxu1 %v6295_v5 }
 0x213   : > { %6298 = vmatpush1.bf16.msra.mxu1 %v6297_v9 }
 0x214   : > { %6300 = vmatprep.subr.bf16.mxu1 %v6299_v17  ;;  %v1595_v17 = vrot.slane %v8194_v62, %v1594_v0 }
 0x217   : > { %6302 = vmatpush1.bf16.msra.mxu1 %v6301_v21 }
 0x218   : > { %6304 = vmatprep.subr.bf16.mxu1 %v6303_v27 }
 0x228   : > { %v1471_v30 = vpop.permute.xlu0 %1470 }
 0x22d   : > { %v1529_v47 = vpop.permute.xlu1 %1528 }
 0x22e   : > { %v1498_v33 = vpop.permute.xlu0 %1497 }
 0x231   : > { %v8199_v8 = vpop.permute.xlu1 %1559 }
 0x26d   : > { %v965_v32 = vpop.f32.mrb[0].mxu1 }
 0x26e   : > { %v1476_v34 = vrot.slane %v965_v32, %v8183_v31  ;;  %v967_v36 = vpop.f32.mrb[1].mxu1  ;;  %v1889_v32 = vld [vmem:[#allocation9 + $0x888] sm:$0xff] }
 0x26f   : > { %v1107_v35 = vpop.f32.mrb[0].mxu0  ;;  %v1480_v38 = vrot.slane %v967_v36, %v8183_v31  ;;  %v1899_v36 = vld [vmem:[#allocation9 + $0x8d8] sm:$0xff] }
 0x270   : > { %v1503_v37 = vrot.slane %v1107_v35, %v8183_v31  ;;  %v1109_v39 = vpop.f32.mrb[1].mxu0  ;;  %v1489_v40 = vmul.f32 %v1476_v34, %v1471_v30  ;;  %v1897_v34 = vld [vmem:[#allocation9 + $0x8c8] sm:$0xff]  ;;  %v1891_v35 = vld [vmem:[#allocation9 + $0x898] sm:$0xff] }
 0x271   : > { %v1507_v41 = vrot.slane %v1109_v39, %v8183_v31  ;;  %v1490_v42 = vmul.f32 %v1480_v38, %v1471_v30  ;;  %v6177_v39 = vpack.c.bf16 %v1880_v25, %v1872_v24  ;;  %v1936_v25 = vld [vmem:[#allocation9 + $0xa00] sm:$0xff] }
 0x272   : > { %v1516_v43 = vmul.f32 %v1503_v37, %v1498_v33 }
 0x273   : > { %v1517_v44 = vmul.f32 %v1507_v41, %v1498_v33  ;;  %v1888_v41 = vld [vmem:[#allocation9 + $0x880] sm:$0xff] }
 0x274   : > { %v1520_v45 = vadd.f32 %v1516_v43, %v1489_v40 }
 0x275   : > { %v1521_v46 = vadd.f32 %v1517_v44, %v1490_v42  ;;  %v1896_v42 = vld [vmem:[#allocation9 + $0x8c0] sm:$0xff] }
 0x27d   : > { %v1036_v48 = vpop.f32.mrb[2].mxu1 }
 0x27e   : > { %v1038_v50 = vpop.f32.mrb[3].mxu1  ;;  %v1484_v58 = vrot.slane %v1036_v48, %v8183_v31  ;;  %v1890_v48 = vld [vmem:[#allocation9 + $0x890] sm:$0xff] }
 0x27f   : > { %v1249_v49 = vpop.f32.mrb[2].mxu0  ;;  %v1488_v59 = vrot.slane %v1038_v50, %v8183_v31  ;;  %v1905_v50 = vld [vmem:[#allocation9 + $0x908] sm:$0xff] }
 0x280   : > { %v1534_v51 = vrot.slane %v1249_v49, %v8183_v31  ;;  %v1251_v52 = vpop.f32.mrb[3].mxu0  ;;  %v1491_v7 = vmul.f32 %v1484_v58, %v1471_v30  ;;  %v1898_v49 = vld [vmem:[#allocation9 + $0x8d0] sm:$0xff]  ;;  %v1912_v58 = vld [vmem:[#allocation9 + $0x940] sm:$0xff] }
 0x281   : > { %v1538_v53 = vrot.slane %v1251_v52, %v8183_v31  ;;  %v1492_v11 = vmul.f32 %v1488_v59, %v1471_v30  ;;  %v1882_v30 = vld [vmem:[#allocation9 + $0x850] sm:$0xff] }
 0x282   : > { %v1547_v54 = vmul.f32 %v1534_v51, %v1529_v47  ;;  %v6305_v40 = vpack.c.bf16 %v1882_v30, %v1874_v28 }
 0x283   : > { %v1548_v55 = vmul.f32 %v1538_v53, %v1529_v47  ;;  %v1907_v53 = vld [vmem:[#allocation9 + $0x918] sm:$0xff] }
 0x284   : > { %v1551_v56 = vadd.f32 %v1547_v54, %v1520_v45  ;;  %v6179_v45 = vpack.c.bf16 %v1897_v34, %v1889_v32  ;;  %v1915_v54 = vld [vmem:[#allocation9 + $0x958] sm:$0xff]  ;;  %v1946_v34 = vld [vmem:[#allocation9 + $0xa50] sm:$0xff] }
 0x285   : > { %v1552_v57 = vadd.f32 %v1548_v55, %v1521_v46  ;;  %v6307_v46 = vpack.c.bf16 %v1899_v36, %v1891_v35  ;;  %v6181_v55 = vpack.c.bf16 %v1896_v42, %v1888_v41  ;;  %v1953_v35 = vld [vmem:[#allocation9 + $0xa88] sm:$0xff] }
 0x28d   : > { %v1178_v60 = vpop.f32.mrb[4].mxu1 }
 0x28e   : > { %v1511_v3 = vrot.slane %v1178_v60, %v8183_v31  ;;  %v1180_v63 = vpop.f32.mrb[5].mxu1  ;;  %v6311_v60 = vpack.c.bf16 %v1915_v54, %v1907_v53 }
 0x28f   : > { %v1391_v61 = vpop.f32.mrb[4].mxu0  ;;  %v1515_v5 = vrot.slane %v1180_v63, %v8183_v31  ;;  %v1921_v63 = vld [vmem:[#allocation9 + $0x988] sm:$0xff] }
 0x290   : > { %v1565_v4 = vrot.slane %v1391_v61, %v8183_v31  ;;  %v1393_v6 = vpop.f32.mrb[5].mxu0  ;;  %v1518_v9 = vmul.f32 %v1511_v3, %v1498_v33  ;;  %v1906_v3 = vld [vmem:[#allocation9 + $0x910] sm:$0xff] }
 0x291   : > { %v1569_v10 = vrot.slane %v1393_v6, %v8183_v31  ;;  %v1519_v14 = vmul.f32 %v1515_v5, %v1498_v33  ;;  %v1914_v61 = vld [vmem:[#allocation9 + $0x950] sm:$0xff]  ;;  %v1923_v5 = vld [vmem:[#allocation9 + $0x998] sm:$0xff] }
 0x292   : > { %v1578_v12 = vmul.f32 %v1565_v4, %v8199_v8  ;;  %v1522_v15 = vadd.f32 %v1518_v9, %v1491_v7  ;;  %v1929_v4 = vld [vmem:[#allocation9 + $0x9c8] sm:$0xff]  ;;  %v1931_v6 = vld [vmem:[#allocation9 + $0x9d8] sm:$0xff]  ;;  %v6313_v9 = vpack.c.bf16 %v1914_v61, %v1906_v3 }
 0x293   : > { %v1579_v16 = vmul.f32 %v1569_v10, %v8199_v8  ;;  %v1523_v19 = vadd.f32 %v1519_v14, %v1492_v11  ;;  %v1920_v10 = vld [vmem:[#allocation9 + $0x980] sm:$0xff]  ;;  %v1922_v14 = vld [vmem:[#allocation9 + $0x990] sm:$0xff] }
 0x294   : > { %v1582_v18 = vadd.f32 %v1578_v12, %v1551_v56  ;;  %v6309_v56 = vpack.c.bf16 %v1898_v49, %v1890_v48  ;;  %v1928_v11 = vld [vmem:[#allocation9 + $0x9c0] sm:$0xff]  ;;  %v6187_v12 = vpack.c.bf16 %v1929_v4, %v1921_v63 }
 0x295   : > { %v1583_v20 = vadd.f32 %v1579_v16, %v1552_v57  ;;  %v1904_v57 = vld [vmem:[#allocation9 + $0x900] sm:$0xff]  ;;  %v1937_v16 = vld [vmem:[#allocation9 + $0xa08] sm:$0xff] }
 0x296   : > { %v1608_v21 = vadd.f32 %v1591_v13, %v1582_v18  ;;  %v6185_v7 = vpack.c.bf16 %v1912_v58, %v1904_v57  ;;  %v6315_v13 = vpack.c.bf16 %v1931_v6, %v1923_v5  ;;  %v1939_v18 = vld [vmem:[#allocation9 + $0xa18] sm:$0xff]  ;;  %v1952_v49 = vld [vmem:[#allocation9 + $0xa80] sm:$0xff]  ;;  %v1969_v57 = vld [vmem:[#allocation9 + $0xb08] sm:$0xff] }
 0x297   : > { %v1609_v22 = vadd.f32 %v1595_v17, %v1583_v20  ;;  %v1945_v17 = vld [vmem:[#allocation9 + $0xa48] sm:$0xff]  ;;  %v1598_v20 = vsub.s32 2, %v8180_v29  ;;  %v1976_v4 = vld [vmem:[#allocation9 + $0xb40] sm:$0xff] }
 0x298   : > { %v6191_v30 = vpack.c.bf16 %v1945_v17, %v1937_v16 }
 0x299   : > { %7158 = vtanh.f32 %v1609_v22  ;;  %v1602_v22 = vsub.s32 3, %v8180_v29  ;;  %v1599_v41 = vrot.slane %v8194_v62, %v1598_v20  ;;  %v1994_v20 = vld [vmem:[#allocation9 + $0xbd0] sm:$0xff] }
 0x29a   : > { %7160 = vtanh.f32 %v1608_v21  ;;  %v3667_v29 = vld [vmem:[#allocation15 + $0x8] sm:$0xff] }
 0x29d   : > { %v1320_v23 = vpop.f32.mrb[6].mxu1 }
 0x29e   : > { %v1542_v26 = vrot.slane %v1320_v23, %v8183_v31  ;;  %v1322_v27 = vpop.f32.mrb[7].mxu1  ;;  %v6189_v23 = vpack.c.bf16 %v1928_v11, %v1920_v10  ;;  %v1985_v10 = vld [vmem:[#allocation9 + $0xb88] sm:$0xff]  ;;  %v1987_v11 = vld [vmem:[#allocation9 + $0xb98] sm:$0xff] }
 0x29f   : > { %v1546_v33 = vrot.slane %v1322_v27, %v8183_v31 }
 0x2a0   : > { %v1549_v37 = vmul.f32 %v1542_v26, %v1529_v47  ;;  %v1944_v26 = vld [vmem:[#allocation9 + $0xa40] sm:$0xff] }
 0x2a1   : > { %v1550_v38 = vmul.f32 %v1546_v33, %v1529_v47  ;;  %v1913_v47 = vld [vmem:[#allocation9 + $0x948] sm:$0xff]  ;;  %v1938_v33 = vld [vmem:[#allocation9 + $0xa10] sm:$0xff]  ;;  %v6193_v42 = vpack.c.bf16 %v1944_v26, %v1936_v25 }
 0x2a2   : > { %v8213_v44 = vadd.f32 %v1549_v37, %v1522_v15  ;;  %v6183_v59 = vpack.c.bf16 %v1913_v47, %v1905_v50  ;;  %v1930_v15 = vld [vmem:[#allocation9 + $0x9d0] sm:$0xff]  ;;  %v1961_v37 = vld [vmem:[#allocation9 + $0xac8] sm:$0xff]  ;;  %v6321_v48 = vpack.c.bf16 %v1946_v34, %v1938_v33  ;;  %v1960_v50 = vld [vmem:[#allocation9 + $0xac0] sm:$0xff] }
 0x2a3   : > { %v8211_v43 = vpop.eup %7158  ;;  %v8217_v52 = vadd.f32 %v1550_v38, %v1523_v19  ;;  %v1947_v19 = vld [vmem:[#allocation9 + $0xa58] sm:$0xff]  ;;  %v6317_v24 = vpack.c.bf16 %v1930_v15, %v1922_v14  ;;  %v6195_v53 = vpack.c.bf16 %v1961_v37, %v1953_v35  ;;  %v6197_v61 = vpack.c.bf16 %v1960_v50, %v1952_v49  ;;  %v1984_v15 = vld [vmem:[#allocation9 + $0xb80] sm:$0xff]  ;;  %v2010_v33 = vld [vmem:[#allocation9 + $0xc50] sm:$0xff] }
 0x2a4   : > { %v8215_v51 = vpop.eup %7160  ;;  %2192 = vmatprep.mubr.f32.mxu0 %v8211_v43  ;;  %2334 = vmatprep.mubr.f32.mxu1 %v8211_v43  ;;  %v6319_v32 = vpack.c.bf16 %v1947_v19, %v1939_v18  ;;  %v1955_v38 = vld [vmem:[#allocation9 + $0xa98] sm:$0xff]  ;;  %v1992_v18 = vld [vmem:[#allocation9 + $0xbc0] sm:$0xff]  ;;  %v1986_v19 = vld [vmem:[#allocation9 + $0xb90] sm:$0xff] }
 0x2a5   : > { %2193 = vmatmul.mubr.f32.vlgmr.msra.gmra.mrb[6].mxu0 %v8215_v51  ;;  %2335 = vmatmul.mubr.f32.vlgmr.msra.gmra.mrb[10].mxu1 %v8215_v51  ;;  %v6205_v25 = vpack.c.bf16 %v1992_v18, %v1984_v15  ;;  %v6333_v26 = vpack.c.bf16 %v1994_v20, %v1986_v19  ;;  %v2017_v34 = vld [vmem:[#allocation9 + $0xc88] sm:$0xff]  ;;  %v2019_v37 = vld [vmem:[#allocation9 + $0xc98] sm:$0xff]  ;;  %v2018_v49 = vld [vmem:[#allocation9 + $0xc90] sm:$0xff] }
 0x2a6   : > { %6178 = vmatpush1.bf16.msra.mxu0 %v6177_v39  ;;  %6306 = vmatpush1.bf16.msra.mxu1 %v6305_v40  ;;  %v1963_v39 = vld [vmem:[#allocation9 + $0xad8] sm:$0xff]  ;;  %v2026_v50 = vld [vmem:[#allocation9 + $0xcd0] sm:$0xff]  ;;  %v2073_v15 = vld [vmem:[#allocation9 + $0xe48] sm:$0xff] }
 0x2a7   : > { %6180 = vmatprep.subr.bf16.mxu0 %v6179_v45  ;;  %6308 = vmatprep.subr.bf16.mxu1 %v6307_v46  ;;  %v1603_v46 = vrot.slane %v8194_v62, %v1602_v22  ;;  %v6323_v54 = vpack.c.bf16 %v1963_v39, %v1955_v38  ;;  %v2009_v22 = vld [vmem:[#allocation9 + $0xc48] sm:$0xff]  ;;  %v2027_v38 = vld [vmem:[#allocation9 + $0xcd8] sm:$0xff]  ;;  %v2064_v20 = vld [vmem:[#allocation9 + $0xe00] sm:$0xff] }
 0x2aa   : > { %6182 = vmatpush1.bf16.msra.mxu0 %v6181_v55  ;;  %6310 = vmatpush1.bf16.msra.mxu1 %v6309_v56  ;;  %v1954_v55 = vld [vmem:[#allocation9 + $0xa90] sm:$0xff] }
 0x2ab   : > { %6184 = vmatprep.subr.bf16.mxu0 %v6183_v59  ;;  %6312 = vmatprep.subr.bf16.mxu1 %v6311_v60  ;;  %v1962_v56 = vld [vmem:[#allocation9 + $0xad0] sm:$0xff]  ;;  %v1977_v59 = vld [vmem:[#allocation9 + $0xb48] sm:$0xff]  ;;  %v1979_v60 = vld [vmem:[#allocation9 + $0xb58] sm:$0xff] }
 0x2ac   : > { %v6325_v63 = vpack.c.bf16 %v1962_v56, %v1954_v55  ;;  %v6199_v5 = vpack.c.bf16 %v1977_v59, %v1969_v57  ;;  %v2043_v55 = vld [vmem:[#allocation9 + $0xd58] sm:$0xff]  ;;  %v6341_v57 = vpack.c.bf16 %v2026_v50, %v2018_v49  ;;  %v2040_v59 = vld [vmem:[#allocation9 + $0xd40] sm:$0xff] }
 0x2ad   : > { %v1462_v21 = vpop.f32.mrb[8].mxu1  ;;  %v2096_v50 = vld [vmem:[#allocation9 + $0xf00] sm:$0xff] }
 0x2ae   : > { %6186 = vmatpush1.bf16.msra.mxu0 %v6185_v7  ;;  %6314 = vmatpush1.bf16.msra.mxu1 %v6313_v9  ;;  %v1573_v27 = vrot.slane %v1462_v21, %v8183_v31  ;;  %v1464_v28 = vpop.f32.mrb[9].mxu1  ;;  %v1970_v7 = vld [vmem:[#allocation9 + $0xb10] sm:$0xff]  ;;  %v2001_v21 = vld [vmem:[#allocation9 + $0xc08] sm:$0xff] }
 0x2af   : > { %6188 = vmatprep.subr.bf16.mxu0 %v6187_v12  ;;  %6316 = vmatprep.subr.bf16.mxu1 %v6315_v13  ;;  %v1577_v36 = vrot.slane %v1464_v28, %v8183_v31  ;;  %v1978_v9 = vld [vmem:[#allocation9 + $0xb50] sm:$0xff]  ;;  %v1995_v12 = vld [vmem:[#allocation9 + $0xbd8] sm:$0xff]  ;;  %v2008_v28 = vld [vmem:[#allocation9 + $0xc40] sm:$0xff] }
 0x2b0   : > { %v1580_v40 = vmul.f32 %v1573_v27, %v8199_v8  ;;  %v6329_v14 = vpack.c.bf16 %v1978_v9, %v1970_v7  ;;  %v6331_v17 = vpack.c.bf16 %v1995_v12, %v1987_v11  ;;  %v2000_v27 = vld [vmem:[#allocation9 + $0xc00] sm:$0xff]  ;;  %v2050_v12 = vld [vmem:[#allocation9 + $0xd90] sm:$0xff] }
 0x2b1   : > { %v1581_v45 = vmul.f32 %v1577_v36, %v8199_v8  ;;  %v1971_v8 = vld [vmem:[#allocation9 + $0xb18] sm:$0xff]  ;;  %v2025_v36 = vld [vmem:[#allocation9 + $0xcc8] sm:$0xff]  ;;  %v2048_v9 = vld [vmem:[#allocation9 + $0xd80] sm:$0xff] }
 0x2b2   : > { %6190 = vmatpush1.bf16.msra.mxu0 %v6189_v23  ;;  %6318 = vmatpush1.bf16.msra.mxu1 %v6317_v24  ;;  %v1584_v47 = vadd.f32 %v1580_v40, %v8213_v44  ;;  %v1968_v44 = vld [vmem:[#allocation9 + $0xb00] sm:$0xff]  ;;  %v6327_v6 = vpack.c.bf16 %v1979_v60, %v1971_v8  ;;  %v2003_v23 = vld [vmem:[#allocation9 + $0xc18] sm:$0xff]  ;;  %v6209_v40 = vpack.c.bf16 %v2008_v28, %v2000_v27  ;;  %v2089_v27 = vld [vmem:[#allocation9 + $0xec8] sm:$0xff] }
 0x2b3   : > { %6192 = vmatprep.subr.bf16.mxu0 %v6191_v30  ;;  %6320 = vmatprep.subr.bf16.mxu1 %v6319_v32  ;;  %v1585_v58 = vadd.f32 %v1581_v45, %v8217_v52  ;;  %v1993_v52 = vld [vmem:[#allocation9 + $0xbc8] sm:$0xff]  ;;  %v6201_v13 = vpack.c.bf16 %v1976_v4, %v1968_v44  ;;  %v2011_v24 = vld [vmem:[#allocation9 + $0xc58] sm:$0xff]  ;;  %v6207_v30 = vpack.c.bf16 %v2009_v22, %v2001_v21  ;;  %v2002_v32 = vld [vmem:[#allocation9 + $0xc10] sm:$0xff] }
 0x2b4   : > { %v8233_v62 = vadd.f32 %v1599_v41, %v1584_v47  ;;  %v6203_v16 = vpack.c.bf16 %v1993_v52, %v1985_v10  ;;  %v6335_v35 = vpack.c.bf16 %v2011_v24, %v2003_v23  ;;  %v6337_v41 = vpack.c.bf16 %v2010_v33, %v2002_v32  ;;  %v2024_v45 = vld [vmem:[#allocation9 + $0xcc0] sm:$0xff]  ;;  %v2033_v47 = vld [vmem:[#allocation9 + $0xd08] sm:$0xff]  ;;  %v2051_v4 = vld [vmem:[#allocation9 + $0xd98] sm:$0xff] }
 0x2b5   : > { %v1611_v3 = vadd.f32 %v1603_v46, %v1585_v58  ;;  %v6211_v46 = vpack.c.bf16 %v2025_v36, %v2017_v34  ;;  %v2032_v58 = vld [vmem:[#allocation9 + $0xd00] sm:$0xff]  ;;  %v2057_v44 = vld [vmem:[#allocation9 + $0xdc8] sm:$0xff]  ;;  %v2066_v24 = vld [vmem:[#allocation9 + $0xe10] sm:$0xff] }
 0x2b6   : > { %6194 = vmatpush1.bf16.msra.mxu0 %v6193_v42  ;;  %6322 = vmatpush1.bf16.msra.mxu1 %v6321_v48  ;;  %v2016_v42 = vld [vmem:[#allocation9 + $0xc80] sm:$0xff]  ;;  %v6339_v48 = vpack.c.bf16 %v2027_v38, %v2019_v37  ;;  %v2083_v28 = vld [vmem:[#allocation9 + $0xe98] sm:$0xff]  ;;  %v2082_v38 = vld [vmem:[#allocation9 + $0xe90] sm:$0xff] }
 0x2b7   : > { %6196 = vmatprep.subr.bf16.mxu0 %v6195_v53  ;;  %6324 = vmatprep.subr.bf16.mxu1 %v6323_v54  ;;  %7162 = vtanh.f32 %v1611_v3  ;;  %v2041_v53 = vld [vmem:[#allocation9 + $0xd48] sm:$0xff]  ;;  %v2035_v54 = vld [vmem:[#allocation9 + $0xd18] sm:$0xff]  ;;  %v6213_v56 = vpack.c.bf16 %v2024_v45, %v2016_v42  ;;  %v2034_v3 = vld [vmem:[#allocation9 + $0xd10] sm:$0xff] }
 0x2b8   : > { %v6215_v8 = vpack.c.bf16 %v2041_v53, %v2033_v47  ;;  %v6343_v60 = vpack.c.bf16 %v2043_v55, %v2035_v54  ;;  %v2056_v10 = vld [vmem:[#allocation9 + $0xdc0] sm:$0xff]  ;;  %v2105_v42 = vld [vmem:[#allocation9 + $0xf48] sm:$0xff]  ;;  %v2099_v45 = vld [vmem:[#allocation9 + $0xf18] sm:$0xff]  ;;  %7164 = vtanh.f32 %v8233_v62 }
 0x2b9   : > { %v6221_v18 = vpack.c.bf16 %v2056_v10, %v2048_v9  ;;  %v2072_v21 = vld [vmem:[#allocation9 + $0xe40] sm:$0xff]  ;;  %v2098_v55 = vld [vmem:[#allocation9 + $0xf10] sm:$0xff]  ;;  %v1629_v9 = vld [vmem:[#allocation9 + $0x68] sm:$0xff] }
 0x2ba   : > { %6198 = vmatpush1.bf16.msra.mxu0 %v6197_v61  ;;  %6326 = vmatpush1.bf16.msra.mxu1 %v6325_v63  ;;  %v2042_v61 = vld [vmem:[#allocation9 + $0xd50] sm:$0xff]  ;;  %v2049_v63 = vld [vmem:[#allocation9 + $0xd88] sm:$0xff]  ;;  %v6225_v32 = vpack.c.bf16 %v2072_v21, %v2064_v20  ;;  %v2080_v34 = vld [vmem:[#allocation9 + $0xe80] sm:$0xff] }
 0x2bb   : > { %6200 = vmatprep.subr.bf16.mxu0 %v6199_v5  ;;  %6328 = vmatprep.subr.bf16.mxu1 %v6327_v6  ;;  %v2059_v5 = vld [vmem:[#allocation9 + $0xdd8] sm:$0xff]  ;;  %v6217_v6 = vpack.c.bf16 %v2040_v59, %v2032_v58  ;;  %v6345_v7 = vpack.c.bf16 %v2042_v61, %v2034_v3  ;;  %v6219_v52 = vpack.c.bf16 %v2057_v44, %v2049_v63  ;;  %v2104_v47 = vld [vmem:[#allocation9 + $0xf40] sm:$0xff]  ;;  %v2121_v58 = vld [vmem:[#allocation9 + $0xfc8] sm:$0xff] }
 0x2bc   : > { %v6347_v11 = vpack.c.bf16 %v2059_v5, %v2051_v4  ;;  %v2115_v59 = vld [vmem:[#allocation9 + $0xf98] sm:$0xff]  ;;  %v2112_v61 = vld [vmem:[#allocation9 + $0xf80] sm:$0xff]  ;;  %v2114_v5 = vld [vmem:[#allocation9 + $0xf90] sm:$0xff] }
 0x2bd   : > { %v2120_v63 = vld [vmem:[#allocation9 + $0xfc0] sm:$0xff]  ;;  %v1623_v10 = vld [vmem:[#allocation9 + $0x38] sm:$0xff] }
 0x2be   : > { %6202 = vmatpush1.bf16.msra.mxu0 %v6201_v13  ;;  %6330 = vmatpush1.bf16.msra.mxu1 %v6329_v14  ;;  %v2058_v13 = vld [vmem:[#allocation9 + $0xdd0] sm:$0xff]  ;;  %v2065_v14 = vld [vmem:[#allocation9 + $0xe08] sm:$0xff]  ;;  %v1639_v20 = vld [vmem:[#allocation9 + $0xb8] sm:$0xff] }
 0x2bf   : > { %6204 = vmatprep.subr.bf16.mxu0 %v6203_v16  ;;  %6332 = vmatprep.subr.bf16.mxu1 %v6331_v17  ;;  %v2067_v16 = vld [vmem:[#allocation9 + $0xe18] sm:$0xff]  ;;  %v6349_v19 = vpack.c.bf16 %v2058_v13, %v2050_v12  ;;  %v6223_v22 = vpack.c.bf16 %v2073_v15, %v2065_v14  ;;  %v1620_v14 = vld [vmem:[#allocation9 + $0x20] sm:$0xff] }
 0x2c0   : > { %v2075_v17 = vld [vmem:[#allocation9 + $0xe58] sm:$0xff]  ;;  %v1628_v15 = vld [vmem:[#allocation9 + $0x60] sm:$0xff] }
 0x2c1   : > { %v8235_v39 = vpop.eup %7162  ;;  %v6351_v23 = vpack.c.bf16 %v2075_v17, %v2067_v16  ;;  %v1622_v16 = vld [vmem:[#allocation9 + $0x30] sm:$0xff]  ;;  %v1647_v21 = vld [vmem:[#allocation9 + $0xf8] sm:$0xff] }
 0x2c2   : > { %6206 = vmatpush1.bf16.msra.mxu0 %v6205_v25  ;;  %6334 = vmatpush1.bf16.msra.mxu1 %v6333_v26  ;;  %v2074_v25 = vld [vmem:[#allocation9 + $0xe50] sm:$0xff]  ;;  %v2081_v26 = vld [vmem:[#allocation9 + $0xe88] sm:$0xff] }
 0x2c3   : > { %6208 = vmatprep.subr.bf16.mxu0 %v6207_v30  ;;  %2263 = vmatprep.mubr.f32.mxu0 %v8235_v39  ;;  %v2091_v30 = vld [vmem:[#allocation9 + $0xed8] sm:$0xff]  ;;  %v6353_v33 = vpack.c.bf16 %v2074_v25, %v2066_v24  ;;  %v6227_v36 = vpack.c.bf16 %v2089_v27, %v2081_v26  ;;  %v1630_v17 = vld [vmem:[#allocation9 + $0x70] sm:$0xff]  ;;  %v1636_v24 = vld [vmem:[#allocation9 + $0xa0] sm:$0xff]  ;;  %v8240_v27 = vpop.eup %7164 }
 0x2c4   : > { %6336 = vmatprep.subr.bf16.mxu1 %v6335_v35  ;;  %2405 = vmatprep.mubr.f32.mxu1 %v8235_v39  ;;  %v2088_v35 = vld [vmem:[#allocation9 + $0xec0] sm:$0xff]  ;;  %v6355_v37 = vpack.c.bf16 %v2091_v30, %v2083_v28  ;;  %v1638_v26 = vld [vmem:[#allocation9 + $0xb0] sm:$0xff]  ;;  %v6499_v30 = vpack.c.bf16 %v1647_v21, %v1639_v20 }
 0x2c5   : > { %v1644_v25 = vld [vmem:[#allocation9 + $0xe0] sm:$0xff]  ;;  %v1710_v21 = vld [vmem:[#allocation9 + $0x2f0] sm:$0xff] }
 0x2c6   : > { %6210 = vmatpush1.bf16.msra.mxu0 %v6209_v40  ;;  %6338 = vmatpush1.bf16.msra.mxu1 %v6337_v41  ;;  %v2090_v40 = vld [vmem:[#allocation9 + $0xed0] sm:$0xff]  ;;  %v2097_v41 = vld [vmem:[#allocation9 + $0xf08] sm:$0xff] }
 0x2c7   : > { %6212 = vmatprep.subr.bf16.mxu0 %v6211_v46  ;;  %6340 = vmatprep.subr.bf16.mxu1 %v6339_v48  ;;  %v2107_v46 = vld [vmem:[#allocation9 + $0xf58] sm:$0xff]  ;;  %v6229_v48 = vpack.c.bf16 %v2088_v35, %v2080_v34  ;;  %v6357_v49 = vpack.c.bf16 %v2090_v40, %v2082_v38  ;;  %v6231_v53 = vpack.c.bf16 %v2105_v42, %v2097_v41  ;;  %v1661_v34 = vld [vmem:[#allocation9 + $0x168] sm:$0xff]  ;;  %v1652_v41 = vld [vmem:[#allocation9 + $0x120] sm:$0xff] }
 0x2c8   : > { %v6359_v54 = vpack.c.bf16 %v2107_v46, %v2099_v45  ;;  %v1655_v35 = vld [vmem:[#allocation9 + $0x138] sm:$0xff]  ;;  %v1660_v42 = vld [vmem:[#allocation9 + $0x160] sm:$0xff]  ;;  %v1654_v45 = vld [vmem:[#allocation9 + $0x130] sm:$0xff] }
 0x2ca   : > { %6214 = vmatpush1.bf16.msra.mxu0 %v6213_v56  ;;  %6342 = vmatpush1.bf16.msra.mxu1 %v6341_v57  ;;  %v2106_v56 = vld [vmem:[#allocation9 + $0xf50] sm:$0xff]  ;;  %v2113_v57 = vld [vmem:[#allocation9 + $0xf88] sm:$0xff] }
 0x2cb   : > { %6216 = vmatprep.subr.bf16.mxu0 %v6215_v8  ;;  %6344 = vmatprep.subr.bf16.mxu1 %v6343_v60  ;;  %v2123_v8 = vld [vmem:[#allocation9 + $0xfd8] sm:$0xff]  ;;  %v6233_v60 = vpack.c.bf16 %v2104_v47, %v2096_v50  ;;  %v6361_v3 = vpack.c.bf16 %v2106_v56, %v2098_v55  ;;  %v6235_v44 = vpack.c.bf16 %v2121_v58, %v2113_v57  ;;  %v1677_v50 = vld [vmem:[#allocation9 + $0x1e8] sm:$0xff]  ;;  %v1676_v57 = vld [vmem:[#allocation9 + $0x1e0] sm:$0xff] }
 0x2cc   : > { %v6363_v4 = vpack.c.bf16 %v2123_v8, %v2115_v59  ;;  %v1671_v47 = vld [vmem:[#allocation9 + $0x1b8] sm:$0xff]  ;;  %v1670_v58 = vld [vmem:[#allocation9 + $0x1b0] sm:$0xff] }
 0x2cd   : > { %v1678_v8 = vld [vmem:[#allocation9 + $0x1f0] sm:$0xff] }
 0x2ce   : > { %6218 = vmatpush1.bf16.msra.mxu0 %v6217_v6  ;;  %6346 = vmatpush1.bf16.msra.mxu1 %v6345_v7  ;;  %v2122_v6 = vld [vmem:[#allocation9 + $0xfd0] sm:$0xff]  ;;  %v1621_v7 = vld [vmem:[#allocation9 + $0x28] sm:$0xff] }
 0x2cf   : > { %6220 = vmatprep.subr.bf16.mxu0 %v6219_v52  ;;  %6348 = vmatprep.subr.bf16.mxu1 %v6347_v11  ;;  %v1631_v52 = vld [vmem:[#allocation9 + $0x78] sm:$0xff]  ;;  %v6237_v11 = vpack.c.bf16 %v2120_v63, %v2112_v61  ;;  %v6365_v62 = vpack.c.bf16 %v2122_v6, %v2114_v5  ;;  %v6367_v12 = vpack.c.bf16 %v1629_v9, %v1621_v7  ;;  %v1684_v6 = vld [vmem:[#allocation9 + $0x220] sm:$0xff]  ;;  %v1686_v9 = vld [vmem:[#allocation9 + $0x230] sm:$0xff] }
 0x2d0   : > { %v6495_v13 = vpack.c.bf16 %v1631_v52, %v1623_v10  ;;  %v1687_v61 = vld [vmem:[#allocation9 + $0x238] sm:$0xff]  ;;  %v1692_v7 = vld [vmem:[#allocation9 + $0x260] sm:$0xff]  ;;  %v1694_v52 = vld [vmem:[#allocation9 + $0x270] sm:$0xff] }
 0x2d1   : > { %v1695_v63 = vld [vmem:[#allocation9 + $0x278] sm:$0xff] }
 0x2d2   : > { %6222 = vmatpush1.bf16.msra.mxu0 %v6221_v18  ;;  %6350 = vmatpush1.bf16.msra.mxu1 %v6349_v19  ;;  %v1637_v18 = vld [vmem:[#allocation9 + $0xa8] sm:$0xff]  ;;  %v6511_v10 = vpack.c.bf16 %v1695_v63, %v1687_v61  ;;  %v1758_v63 = vld [vmem:[#allocation9 + $0x470] sm:$0xff] }
 0x2d3   : > { %6224 = vmatprep.subr.bf16.mxu0 %v6223_v22  ;;  %6352 = vmatprep.subr.bf16.mxu1 %v6351_v23  ;;  %v1645_v19 = vld [vmem:[#allocation9 + $0xe8] sm:$0xff]  ;;  %v6369_v22 = vpack.c.bf16 %v1628_v15, %v1620_v14  ;;  %v6497_v23 = vpack.c.bf16 %v1630_v17, %v1622_v16  ;;  %v6385_v14 = vpack.c.bf16 %v1692_v7, %v1684_v6  ;;  %v1700_v17 = vld [vmem:[#allocation9 + $0x2a0] sm:$0xff]  ;;  %v1775_v6 = vld [vmem:[#allocation9 + $0x4f8] sm:$0xff] }
 0x2d4   : > { %v6371_v28 = vpack.c.bf16 %v1645_v19, %v1637_v18  ;;  %v6513_v15 = vpack.c.bf16 %v1694_v52, %v1686_v9  ;;  %v1708_v18 = vld [vmem:[#allocation9 + $0x2e0] sm:$0xff]  ;;  %v1702_v19 = vld [vmem:[#allocation9 + $0x2b0] sm:$0xff] }
 0x2d5   : > { %v1764_v52 = vld [vmem:[#allocation9 + $0x4a0] sm:$0xff] }
 0x2d6   : > { %6226 = vmatpush1.bf16.msra.mxu0 %v6225_v32  ;;  %6354 = vmatpush1.bf16.msra.mxu1 %v6353_v33  ;;  %v1646_v32 = vld [vmem:[#allocation9 + $0xf0] sm:$0xff]  ;;  %v1653_v33 = vld [vmem:[#allocation9 + $0x128] sm:$0xff] }
 0x2d7   : > { %6228 = vmatprep.subr.bf16.mxu0 %v6227_v36  ;;  %6356 = vmatprep.subr.bf16.mxu1 %v6355_v37  ;;  %v1663_v36 = vld [vmem:[#allocation9 + $0x178] sm:$0xff]  ;;  %v6373_v37 = vpack.c.bf16 %v1644_v25, %v1636_v24  ;;  %v6501_v38 = vpack.c.bf16 %v1646_v32, %v1638_v26  ;;  %v6375_v40 = vpack.c.bf16 %v1661_v34, %v1653_v33  ;;  %v1716_v32 = vld [vmem:[#allocation9 + $0x320] sm:$0xff]  ;;  %v1718_v34 = vld [vmem:[#allocation9 + $0x330] sm:$0xff] }
 0x2d8   : > { %v6503_v46 = vpack.c.bf16 %v1663_v36, %v1655_v35  ;;  %v1719_v24 = vld [vmem:[#allocation9 + $0x338] sm:$0xff]  ;;  %v6389_v26 = vpack.c.bf16 %v1708_v18, %v1700_v17  ;;  %v1724_v33 = vld [vmem:[#allocation9 + $0x360] sm:$0xff]  ;;  %v1726_v36 = vld [vmem:[#allocation9 + $0x370] sm:$0xff] }
 0x2d9   : > { %v1727_v25 = vld [vmem:[#allocation9 + $0x378] sm:$0xff] }
 0x2da   : > { %6230 = vmatpush1.bf16.msra.mxu0 %v6229_v48  ;;  %6358 = vmatpush1.bf16.msra.mxu1 %v6357_v49  ;;  %v1662_v48 = vld [vmem:[#allocation9 + $0x170] sm:$0xff]  ;;  %v1669_v49 = vld [vmem:[#allocation9 + $0x1a8] sm:$0xff]  ;;  %v6519_v35 = vpack.c.bf16 %v1727_v25, %v1719_v24  ;;  %v1791_v17 = vld [vmem:[#allocation9 + $0x578] sm:$0xff] }
 0x2db   : > { %6232 = vmatprep.subr.bf16.mxu0 %v6231_v53  ;;  %6360 = vmatprep.subr.bf16.mxu1 %v6359_v54  ;;  %v1679_v53 = vld [vmem:[#allocation9 + $0x1f8] sm:$0xff]  ;;  %v6377_v54 = vpack.c.bf16 %v1660_v42, %v1652_v41  ;;  %v6505_v55 = vpack.c.bf16 %v1662_v48, %v1654_v45  ;;  %v6379_v56 = vpack.c.bf16 %v1677_v50, %v1669_v49  ;;  %v1732_v48 = vld [vmem:[#allocation9 + $0x3a0] sm:$0xff]  ;;  %v1734_v50 = vld [vmem:[#allocation9 + $0x3b0] sm:$0xff] }
 0x2dc   : > { %v6507_v59 = vpack.c.bf16 %v1679_v53, %v1671_v47  ;;  %v1743_v41 = vld [vmem:[#allocation9 + $0x3f8] sm:$0xff]  ;;  %v6393_v42 = vpack.c.bf16 %v1724_v33, %v1716_v32  ;;  %v6521_v45 = vpack.c.bf16 %v1726_v36, %v1718_v34  ;;  %v1740_v49 = vld [vmem:[#allocation9 + $0x3e0] sm:$0xff]  ;;  %v1742_v53 = vld [vmem:[#allocation9 + $0x3f0] sm:$0xff] }
 0x2dd   : > { %v1790_v25 = vld [vmem:[#allocation9 + $0x570] sm:$0xff]  ;;  %v1807_v32 = vld [vmem:[#allocation9 + $0x5f8] sm:$0xff]  ;;  %v1796_v36 = vld [vmem:[#allocation9 + $0x5a0] sm:$0xff] }
 0x2de   : > { %6234 = vmatpush1.bf16.msra.mxu0 %v6233_v60  ;;  %6362 = vmatpush1.bf16.msra.mxu1 %v6361_v3  ;;  %v1685_v60 = vld [vmem:[#allocation9 + $0x228] sm:$0xff] }
 0x2df   : > { %6236 = vmatprep.subr.bf16.mxu0 %v6235_v44  ;;  %6364 = vmatprep.subr.bf16.mxu1 %v6363_v4  ;;  %v1693_v3 = vld [vmem:[#allocation9 + $0x268] sm:$0xff]  ;;  %v6509_v4 = vpack.c.bf16 %v1678_v8, %v1670_v58  ;;  %v6525_v58 = vpack.c.bf16 %v1742_v53, %v1734_v50  ;;  %v1748_v8 = vld [vmem:[#allocation9 + $0x420] sm:$0xff] }
 0x2e0   : > { %v6383_v5 = vpack.c.bf16 %v1693_v3, %v1685_v60  ;;  %v1756_v60 = vld [vmem:[#allocation9 + $0x460] sm:$0xff]  ;;  %v1750_v3 = vld [vmem:[#allocation9 + $0x430] sm:$0xff] }
 0x2e1   : > { %v6401_v7 = vpack.c.bf16 %v1756_v60, %v1748_v8  ;;  %v6529_v9 = vpack.c.bf16 %v1758_v63, %v1750_v3  ;;  %v1812_v53 = vld [vmem:[#allocation9 + $0x620] sm:$0xff]  ;;  %v1839_v8 = vld [vmem:[#allocation9 + $0x6f8] sm:$0xff] }
 0x2e2   : > { %6238 = vmatpush1.bf16.msra.mxu0 %v6237_v11  ;;  %6366 = vmatpush1.bf16.msra.mxu1 %v6365_v62  ;;  %v1701_v11 = vld [vmem:[#allocation9 + $0x2a8] sm:$0xff]  ;;  %v1828_v63 = vld [vmem:[#allocation9 + $0x6a0] sm:$0xff] }
 0x2e3   : > { %6368 = vmatprep.subr.bf16.mxu0 %v6367_v12  ;;  %6496 = vmatprep.subr.bf16.mxu1 %v6495_v13  ;;  %v1709_v62 = vld [vmem:[#allocation9 + $0x2e8] sm:$0xff]  ;;  %v1703_v12 = vld [vmem:[#allocation9 + $0x2b8] sm:$0xff] }
 0x2e4   : > { %v1711_v13 = vld [vmem:[#allocation9 + $0x2f8] sm:$0xff]  ;;  %v6387_v16 = vpack.c.bf16 %v1709_v62, %v1701_v11  ;;  %v1772_v11 = vld [vmem:[#allocation9 + $0x4e0] sm:$0xff]  ;;  %v1766_v62 = vld [vmem:[#allocation9 + $0x4b0] sm:$0xff] }
 0x2e5   : > { %2264 = vmatmul.mubr.f32.vlgmr.msra.gmra.mrb[6].mxu0 %v8240_v27  ;;  %2406 = vmatmul.mubr.f32.vlgmr.msra.gmra.mrb[10].mxu1 %v8240_v27  ;;  %v6515_v20 = vpack.c.bf16 %v1711_v13, %v1703_v12  ;;  %v1774_v13 = vld [vmem:[#allocation9 + $0x4f0] sm:$0xff]  ;;  %v6405_v18 = vpack.c.bf16 %v1772_v11, %v1764_v52  ;;  %v1855_v52 = vld [vmem:[#allocation9 + $0x778] sm:$0xff] }
 0x2e6   : > { %6370 = vmatpush1.bf16.msra.mxu0 %v6369_v22  ;;  %2476 = vmatprep.mubr.f32.mxu0 %v8211_v43  ;;  %v1717_v22 = vld [vmem:[#allocation9 + $0x328] sm:$0xff] }
 0x2e7   : > { %6498 = vmatpush1.bf16.msra.mxu1 %v6497_v23  ;;  %2618 = vmatprep.mubr.f32.mxu1 %v8211_v43  ;;  %v1668_v43 = vld [vmem:[#allocation9 + $0x1a0] sm:$0xff]  ;;  %v1725_v23 = vld [vmem:[#allocation9 + $0x368] sm:$0xff] }
 0x2e8   : > { %6372 = vmatprep.subr.bf16.mxu0 %v6371_v28  ;;  %6500 = vmatprep.subr.bf16.mxu1 %v6499_v30  ;;  %v6381_v44 = vpack.c.bf16 %v1676_v57, %v1668_v43  ;;  %v6517_v28 = vpack.c.bf16 %v1710_v21, %v1702_v19  ;;  %v6391_v30 = vpack.c.bf16 %v1725_v23, %v1717_v22  ;;  %v1759_v43 = vld [vmem:[#allocation9 + $0x478] sm:$0xff]  ;;  %v1780_v21 = vld [vmem:[#allocation9 + $0x520] sm:$0xff]  ;;  %v1782_v23 = vld [vmem:[#allocation9 + $0x530] sm:$0xff] }
 0x2e9   : > { %v6397_v57 = vpack.c.bf16 %v1740_v49, %v1732_v48  ;;  %v6533_v19 = vpack.c.bf16 %v1774_v13, %v1766_v62  ;;  %v1788_v22 = vld [vmem:[#allocation9 + $0x560] sm:$0xff]  ;;  %v6537_v34 = vpack.c.bf16 %v1790_v25, %v1782_v23  ;;  %v1823_v48 = vld [vmem:[#allocation9 + $0x678] sm:$0xff] }
 0x2ea   : > { %6374 = vmatpush1.bf16.msra.mxu0 %v6373_v37  ;;  %v1733_v37 = vld [vmem:[#allocation9 + $0x3a8] sm:$0xff]  ;;  %v6409_v33 = vpack.c.bf16 %v1788_v22, %v1780_v21  ;;  %v1844_v13 = vld [vmem:[#allocation9 + $0x720] sm:$0xff]  ;;  %v1871_v21 = vld [vmem:[#allocation9 + $0x7f8] sm:$0xff] }
 0x2eb   : > { %6502 = vmatpush1.bf16.msra.mxu1 %v6501_v38  ;;  %6376 = vmatprep.subr.bf16.mxu0 %v6375_v40  ;;  %v1741_v38 = vld [vmem:[#allocation9 + $0x3e8] sm:$0xff]  ;;  %v1735_v40 = vld [vmem:[#allocation9 + $0x3b8] sm:$0xff]  ;;  %v1860_v25 = vld [vmem:[#allocation9 + $0x7a0] sm:$0xff] }
 0x2ec   : > { %6504 = vmatprep.subr.bf16.mxu1 %v6503_v46  ;;  %v6395_v46 = vpack.c.bf16 %v1741_v38, %v1733_v37  ;;  %v6523_v47 = vpack.c.bf16 %v1743_v41, %v1735_v40  ;;  %v1804_v37 = vld [vmem:[#allocation9 + $0x5e0] sm:$0xff]  ;;  %v1798_v38 = vld [vmem:[#allocation9 + $0x5b0] sm:$0xff] }
 0x2ed   : > { %v1806_v41 = vld [vmem:[#allocation9 + $0x5f0] sm:$0xff]  ;;  %v6413_v49 = vpack.c.bf16 %v1804_v37, %v1796_v36  ;;  %v1887_v36 = vld [vmem:[#allocation9 + $0x878] sm:$0xff] }
 0x2ee   : > { %6378 = vmatpush1.bf16.msra.mxu0 %v6377_v54  ;;  %v1749_v54 = vld [vmem:[#allocation9 + $0x428] sm:$0xff]  ;;  %v6541_v50 = vpack.c.bf16 %v1806_v41, %v1798_v38  ;;  %v1876_v41 = vld [vmem:[#allocation9 + $0x820] sm:$0xff] }
 0x2ef   : > { %6506 = vmatpush1.bf16.msra.mxu1 %v6505_v55  ;;  %6380 = vmatprep.subr.bf16.mxu0 %v6379_v56  ;;  %v1757_v55 = vld [vmem:[#allocation9 + $0x468] sm:$0xff]  ;;  %v1751_v56 = vld [vmem:[#allocation9 + $0x438] sm:$0xff] }
 0x2f0   : > { %6508 = vmatprep.subr.bf16.mxu1 %v6507_v59  ;;  %v6399_v59 = vpack.c.bf16 %v1757_v55, %v1749_v54  ;;  %v6527_v61 = vpack.c.bf16 %v1759_v43, %v1751_v56  ;;  %v1820_v54 = vld [vmem:[#allocation9 + $0x660] sm:$0xff]  ;;  %v1814_v55 = vld [vmem:[#allocation9 + $0x630] sm:$0xff] }
 0x2f1   : > { %v1822_v43 = vld [vmem:[#allocation9 + $0x670] sm:$0xff]  ;;  %v6417_v60 = vpack.c.bf16 %v1820_v54, %v1812_v53  ;;  %v1895_v53 = vld [vmem:[#allocation9 + $0x8b8] sm:$0xff] }
 0x2f2   : > { %6382 = vmatpush1.bf16.msra.mxu0 %v6381_v44  ;;  %v1765_v44 = vld [vmem:[#allocation9 + $0x4a8] sm:$0xff]  ;;  %v6545_v3 = vpack.c.bf16 %v1822_v43, %v1814_v55  ;;  %v1903_v54 = vld [vmem:[#allocation9 + $0x8f8] sm:$0xff]  ;;  %v1900_v43 = vld [vmem:[#allocation9 + $0x8e0] sm:$0xff] }
 0x2f3   : > { %6510 = vmatpush1.bf16.msra.mxu1 %v6509_v4  ;;  %6384 = vmatprep.subr.bf16.mxu0 %v6383_v5  ;;  %v1773_v4 = vld [vmem:[#allocation9 + $0x4e8] sm:$0xff]  ;;  %v1767_v5 = vld [vmem:[#allocation9 + $0x4b8] sm:$0xff] }
 0x2f4   : > { %6512 = vmatprep.subr.bf16.mxu1 %v6511_v10  ;;  %v6403_v10 = vpack.c.bf16 %v1773_v4, %v1765_v44  ;;  %v6531_v12 = vpack.c.bf16 %v1775_v6, %v1767_v5  ;;  %v1836_v44 = vld [vmem:[#allocation9 + $0x6e0] sm:$0xff]  ;;  %v1830_v4 = vld [vmem:[#allocation9 + $0x6b0] sm:$0xff] }
 0x2f5   : > { %v1838_v6 = vld [vmem:[#allocation9 + $0x6f0] sm:$0xff]  ;;  %v6421_v11 = vpack.c.bf16 %v1836_v44, %v1828_v63  ;;  %v1919_v63 = vld [vmem:[#allocation9 + $0x978] sm:$0xff] }
 0x2f6   : > { %6386 = vmatpush1.bf16.msra.mxu0 %v6385_v14  ;;  %v1781_v14 = vld [vmem:[#allocation9 + $0x528] sm:$0xff]  ;;  %v6549_v62 = vpack.c.bf16 %v1838_v6, %v1830_v4  ;;  %v1908_v6 = vld [vmem:[#allocation9 + $0x920] sm:$0xff] }
 0x2f7   : > { %6514 = vmatpush1.bf16.msra.mxu1 %v6513_v15  ;;  %6388 = vmatprep.subr.bf16.mxu0 %v6387_v16  ;;  %v1789_v15 = vld [vmem:[#allocation9 + $0x568] sm:$0xff]  ;;  %v1783_v16 = vld [vmem:[#allocation9 + $0x538] sm:$0xff] }
 0x2f8   : > { %6516 = vmatprep.subr.bf16.mxu1 %v6515_v20  ;;  %v6407_v20 = vpack.c.bf16 %v1789_v15, %v1781_v14  ;;  %v6535_v24 = vpack.c.bf16 %v1791_v17, %v1783_v16  ;;  %v1852_v14 = vld [vmem:[#allocation9 + $0x760] sm:$0xff]  ;;  %v1846_v15 = vld [vmem:[#allocation9 + $0x730] sm:$0xff] }
 0x2f9   : > { %v1854_v17 = vld [vmem:[#allocation9 + $0x770] sm:$0xff]  ;;  %v6425_v22 = vpack.c.bf16 %v1852_v14, %v1844_v13 }
 0x2fa   : > { %6390 = vmatpush1.bf16.msra.mxu0 %v6389_v26  ;;  %v1797_v26 = vld [vmem:[#allocation9 + $0x5a8] sm:$0xff]  ;;  %v6553_v23 = vpack.c.bf16 %v1854_v17, %v1846_v15  ;;  %v1932_v17 = vld [vmem:[#allocation9 + $0x9e0] sm:$0xff] }
 0x2fb   : > { %6518 = vmatpush1.bf16.msra.mxu1 %v6517_v28  ;;  %6392 = vmatprep.subr.bf16.mxu0 %v6391_v30  ;;  %v1805_v28 = vld [vmem:[#allocation9 + $0x5e8] sm:$0xff]  ;;  %v1799_v30 = vld [vmem:[#allocation9 + $0x5b8] sm:$0xff] }
 0x2fc   : > { %6520 = vmatprep.subr.bf16.mxu1 %v6519_v35  ;;  %v6411_v35 = vpack.c.bf16 %v1805_v28, %v1797_v26  ;;  %v6539_v40 = vpack.c.bf16 %v1807_v32, %v1799_v30  ;;  %v1868_v26 = vld [vmem:[#allocation9 + $0x7e0] sm:$0xff]  ;;  %v1862_v28 = vld [vmem:[#allocation9 + $0x7b0] sm:$0xff] }
 0x2fd   : > { %v1870_v32 = vld [vmem:[#allocation9 + $0x7f0] sm:$0xff]  ;;  %v6429_v37 = vpack.c.bf16 %v1868_v26, %v1860_v25 }
 0x2fe   : > { %6394 = vmatpush1.bf16.msra.mxu0 %v6393_v42  ;;  %v1813_v42 = vld [vmem:[#allocation9 + $0x628] sm:$0xff]  ;;  %v6557_v38 = vpack.c.bf16 %v1870_v32, %v1862_v28  ;;  %v1940_v28 = vld [vmem:[#allocation9 + $0xa20] sm:$0xff]  ;;  %v1942_v32 = vld [vmem:[#allocation9 + $0xa30] sm:$0xff] }
 0x2ff   : > { %6522 = vmatpush1.bf16.msra.mxu1 %v6521_v45  ;;  %6396 = vmatprep.subr.bf16.mxu0 %v6395_v46  ;;  %v1821_v45 = vld [vmem:[#allocation9 + $0x668] sm:$0xff]  ;;  %v1815_v46 = vld [vmem:[#allocation9 + $0x638] sm:$0xff] }
 0x300   : > { %6524 = vmatprep.subr.bf16.mxu1 %v6523_v47  ;;  %v6415_v47 = vpack.c.bf16 %v1821_v45, %v1813_v42  ;;  %v6543_v56 = vpack.c.bf16 %v1823_v48, %v1815_v46  ;;  %v1884_v42 = vld [vmem:[#allocation9 + $0x860] sm:$0xff]  ;;  %v1878_v46 = vld [vmem:[#allocation9 + $0x830] sm:$0xff] }
 0x301   : > { %v1886_v48 = vld [vmem:[#allocation9 + $0x870] sm:$0xff] }
 0x302   : > { %6398 = vmatpush1.bf16.msra.mxu0 %v6397_v57  ;;  %v1829_v57 = vld [vmem:[#allocation9 + $0x6a8] sm:$0xff]  ;;  %v6561_v55 = vpack.c.bf16 %v1886_v48, %v1878_v46  ;;  %v1964_v46 = vld [vmem:[#allocation9 + $0xae0] sm:$0xff]  ;;  %v1958_v48 = vld [vmem:[#allocation9 + $0xab0] sm:$0xff] }
 0x303   : > { %6526 = vmatpush1.bf16.msra.mxu1 %v6525_v58  ;;  %6400 = vmatprep.subr.bf16.mxu0 %v6399_v59  ;;  %v1837_v58 = vld [vmem:[#allocation9 + $0x6e8] sm:$0xff]  ;;  %v1831_v59 = vld [vmem:[#allocation9 + $0x6b8] sm:$0xff] }
 0x304   : > { %6528 = vmatprep.subr.bf16.mxu1 %v6527_v61  ;;  %v6419_v61 = vpack.c.bf16 %v1837_v58, %v1829_v57  ;;  %v6547_v5 = vpack.c.bf16 %v1839_v8, %v1831_v59  ;;  %v1894_v57 = vld [vmem:[#allocation9 + $0x8b0] sm:$0xff]  ;;  %v1909_v8 = vld [vmem:[#allocation9 + $0x928] sm:$0xff] }
 0x305   : > { %v1902_v59 = vld [vmem:[#allocation9 + $0x8f0] sm:$0xff] }
 0x306   : > { %6402 = vmatpush1.bf16.msra.mxu0 %v6401_v7  ;;  %v1845_v7 = vld [vmem:[#allocation9 + $0x728] sm:$0xff]  ;;  %v6565_v4 = vpack.c.bf16 %v1902_v59, %v1894_v57  ;;  %v1980_v59 = vld [vmem:[#allocation9 + $0xb60] sm:$0xff] }
 0x307   : > { %6530 = vmatpush1.bf16.msra.mxu1 %v6529_v9  ;;  %6404 = vmatprep.subr.bf16.mxu0 %v6403_v10  ;;  %v1853_v9 = vld [vmem:[#allocation9 + $0x768] sm:$0xff]  ;;  %v1847_v10 = vld [vmem:[#allocation9 + $0x738] sm:$0xff] }
 0x308   : > { %6532 = vmatprep.subr.bf16.mxu1 %v6531_v12  ;;  %v6423_v12 = vpack.c.bf16 %v1853_v9, %v1845_v7  ;;  %v6551_v16 = vpack.c.bf16 %v1855_v52, %v1847_v10  ;;  %v1916_v7 = vld [vmem:[#allocation9 + $0x960] sm:$0xff]  ;;  %v1910_v9 = vld [vmem:[#allocation9 + $0x930] sm:$0xff] }
 0x309   : > { %v1918_v52 = vld [vmem:[#allocation9 + $0x970] sm:$0xff]  ;;  %v6441_v13 = vpack.c.bf16 %v1916_v7, %v1908_v6 }
 0x30a   : > { %6406 = vmatpush1.bf16.msra.mxu0 %v6405_v18  ;;  %v1861_v18 = vld [vmem:[#allocation9 + $0x7a8] sm:$0xff]  ;;  %v6569_v14 = vpack.c.bf16 %v1918_v52, %v1910_v9  ;;  %v1988_v9 = vld [vmem:[#allocation9 + $0xba0] sm:$0xff]  ;;  %v1990_v52 = vld [vmem:[#allocation9 + $0xbb0] sm:$0xff] }
 0x30b   : > { %6534 = vmatpush1.bf16.msra.mxu1 %v6533_v19  ;;  %6408 = vmatprep.subr.bf16.mxu0 %v6407_v20  ;;  %v1869_v19 = vld [vmem:[#allocation9 + $0x7e8] sm:$0xff]  ;;  %v1863_v20 = vld [vmem:[#allocation9 + $0x7b8] sm:$0xff] }
 0x30c   : > { %6536 = vmatprep.subr.bf16.mxu1 %v6535_v24  ;;  %v6427_v24 = vpack.c.bf16 %v1869_v19, %v1861_v18  ;;  %v6555_v30 = vpack.c.bf16 %v1871_v21, %v1863_v20  ;;  %v1926_v18 = vld [vmem:[#allocation9 + $0x9b0] sm:$0xff]  ;;  %v1941_v20 = vld [vmem:[#allocation9 + $0xa28] sm:$0xff] }
 0x30d   : > { %v1949_v21 = vld [vmem:[#allocation9 + $0xa68] sm:$0xff] }
 0x30e   : > { %6410 = vmatpush1.bf16.msra.mxu0 %v6409_v33  ;;  %v1877_v33 = vld [vmem:[#allocation9 + $0x828] sm:$0xff]  ;;  %v6447_v26 = vpack.c.bf16 %v1949_v21, %v1941_v20  ;;  %v2014_v21 = vld [vmem:[#allocation9 + $0xc70] sm:$0xff] }
 0x30f   : > { %6538 = vmatpush1.bf16.msra.mxu1 %v6537_v34  ;;  %6412 = vmatprep.subr.bf16.mxu0 %v6411_v35  ;;  %v1885_v34 = vld [vmem:[#allocation9 + $0x868] sm:$0xff]  ;;  %v1879_v35 = vld [vmem:[#allocation9 + $0x838] sm:$0xff] }
 0x310   : > { %6540 = vmatprep.subr.bf16.mxu1 %v6539_v40  ;;  %v6431_v40 = vpack.c.bf16 %v1885_v34, %v1877_v33  ;;  %v6559_v45 = vpack.c.bf16 %v1887_v36, %v1879_v35  ;;  %v1950_v34 = vld [vmem:[#allocation9 + $0xa70] sm:$0xff]  ;;  %v1957_v35 = vld [vmem:[#allocation9 + $0xaa8] sm:$0xff] }
 0x311   : > { %v1965_v36 = vld [vmem:[#allocation9 + $0xae8] sm:$0xff] }
 0x312   : > { %6414 = vmatpush1.bf16.msra.mxu0 %v6413_v49  ;;  %v1893_v49 = vld [vmem:[#allocation9 + $0x8a8] sm:$0xff] }
 0x313   : > { %6542 = vmatpush1.bf16.msra.mxu1 %v6541_v50  ;;  %6416 = vmatprep.subr.bf16.mxu0 %v6415_v47  ;;  %v1901_v50 = vld [vmem:[#allocation9 + $0x8e8] sm:$0xff]  ;;  %v6433_v47 = vpack.c.bf16 %v1884_v42, %v1876_v41  ;;  %v6577_v41 = vpack.c.bf16 %v1950_v34, %v1942_v32  ;;  %v6451_v42 = vpack.c.bf16 %v1965_v36, %v1957_v35  ;;  %v2020_v32 = vld [vmem:[#allocation9 + $0xca0] sm:$0xff]  ;;  %v2022_v34 = vld [vmem:[#allocation9 + $0xcb0] sm:$0xff] }
 0x314   : > { %6544 = vmatprep.subr.bf16.mxu1 %v6543_v56  ;;  %v1892_v56 = vld [vmem:[#allocation9 + $0x8a0] sm:$0xff]  ;;  %v6435_v58 = vpack.c.bf16 %v1901_v50, %v1893_v49  ;;  %v1966_v50 = vld [vmem:[#allocation9 + $0xaf0] sm:$0xff] }
 0x315   : > { %v6437_v44 = vpack.c.bf16 %v1900_v43, %v1892_v56  ;;  %v6581_v43 = vpack.c.bf16 %v1966_v50, %v1958_v48  ;;  %v2030_v36 = vld [vmem:[#allocation9 + $0xcf0] sm:$0xff]  ;;  %v2036_v48 = vld [vmem:[#allocation9 + $0xd20] sm:$0xff] }
 0x316   : > { %6418 = vmatpush1.bf16.msra.mxu0 %v6417_v60  ;;  %v1917_v60 = vld [vmem:[#allocation9 + $0x968] sm:$0xff]  ;;  %v2038_v50 = vld [vmem:[#allocation9 + $0xd30] sm:$0xff] }
 0x317   : > { %6546 = vmatpush1.bf16.msra.mxu1 %v6545_v3  ;;  %6420 = vmatprep.subr.bf16.mxu0 %v6419_v61  ;;  %v6563_v3 = vpack.c.bf16 %v1903_v54, %v1895_v53  ;;  %v1911_v61 = vld [vmem:[#allocation9 + $0x938] sm:$0xff]  ;;  %v1981_v53 = vld [vmem:[#allocation9 + $0xb68] sm:$0xff] }
 0x318   : > { %6548 = vmatprep.subr.bf16.mxu1 %v6547_v5  ;;  %v6439_v5 = vpack.c.bf16 %v1917_v60, %v1909_v8  ;;  %v6567_v10 = vpack.c.bf16 %v1919_v63, %v1911_v61  ;;  %v1975_v54 = vld [vmem:[#allocation9 + $0xb38] sm:$0xff]  ;;  %v1974_v8 = vld [vmem:[#allocation9 + $0xb30] sm:$0xff]  ;;  %v1989_v61 = vld [vmem:[#allocation9 + $0xba8] sm:$0xff] }
 0x319   : > { %v1997_v63 = vld [vmem:[#allocation9 + $0xbe8] sm:$0xff] }
 0x31a   : > { %6422 = vmatpush1.bf16.msra.mxu0 %v6421_v11  ;;  %v1925_v11 = vld [vmem:[#allocation9 + $0x9a8] sm:$0xff]  ;;  %v6459_v7 = vpack.c.bf16 %v1997_v63, %v1989_v61  ;;  %v2062_v63 = vld [vmem:[#allocation9 + $0xdf0] sm:$0xff] }
 0x31b   : > { %6550 = vmatpush1.bf16.msra.mxu1 %v6549_v62  ;;  %6424 = vmatprep.subr.bf16.mxu0 %v6423_v12  ;;  %v1933_v62 = vld [vmem:[#allocation9 + $0x9e8] sm:$0xff]  ;;  %v1927_v12 = vld [vmem:[#allocation9 + $0x9b8] sm:$0xff] }
 0x31c   : > { %6552 = vmatprep.subr.bf16.mxu1 %v6551_v16  ;;  %v6443_v15 = vpack.c.bf16 %v1933_v62, %v1925_v11  ;;  %v1924_v16 = vld [vmem:[#allocation9 + $0x9a0] sm:$0xff]  ;;  %v1998_v62 = vld [vmem:[#allocation9 + $0xbf0] sm:$0xff] }
 0x31e   : > { %6426 = vmatpush1.bf16.msra.mxu0 %v6425_v22  ;;  %v1943_v22 = vld [vmem:[#allocation9 + $0xa38] sm:$0xff] }
 0x31f   : > { %6554 = vmatpush1.bf16.msra.mxu1 %v6553_v23  ;;  %6428 = vmatprep.subr.bf16.mxu0 %v6427_v24  ;;  %v1951_v23 = vld [vmem:[#allocation9 + $0xa78] sm:$0xff]  ;;  %v6445_v24 = vpack.c.bf16 %v1932_v17, %v1924_v16  ;;  %v6589_v16 = vpack.c.bf16 %v1998_v62, %v1990_v52  ;;  %v2068_v52 = vld [vmem:[#allocation9 + $0xe20] sm:$0xff]  ;;  %v2070_v62 = vld [vmem:[#allocation9 + $0xe30] sm:$0xff] }
 0x320   : > { %6556 = vmatprep.subr.bf16.mxu1 %v6555_v30  ;;  %v1948_v30 = vld [vmem:[#allocation9 + $0xa60] sm:$0xff]  ;;  %v6575_v33 = vpack.c.bf16 %v1951_v23, %v1943_v22  ;;  %v2021_v22 = vld [vmem:[#allocation9 + $0xca8] sm:$0xff] }
 0x321   : > { %v2029_v23 = vld [vmem:[#allocation9 + $0xce8] sm:$0xff] }
 0x322   : > { %6430 = vmatpush1.bf16.msra.mxu0 %v6429_v37  ;;  %v1959_v37 = vld [vmem:[#allocation9 + $0xab8] sm:$0xff] }
 0x323   : > { %6558 = vmatpush1.bf16.msra.mxu1 %v6557_v38  ;;  %6432 = vmatprep.subr.bf16.mxu0 %v6431_v40  ;;  %v1967_v38 = vld [vmem:[#allocation9 + $0xaf8] sm:$0xff]  ;;  %v6449_v40 = vpack.c.bf16 %v1948_v30, %v1940_v28  ;;  %v6467_v30 = vpack.c.bf16 %v2029_v23, %v2021_v22  ;;  %v2094_v23 = vld [vmem:[#allocation9 + $0xef0] sm:$0xff] }
 0x324   : > { %6560 = vmatprep.subr.bf16.mxu1 %v6559_v45  ;;  %v1956_v45 = vld [vmem:[#allocation9 + $0xaa0] sm:$0xff]  ;;  %v6579_v49 = vpack.c.bf16 %v1967_v38, %v1959_v37  ;;  %v2037_v37 = vld [vmem:[#allocation9 + $0xd28] sm:$0xff] }
 0x325   : > { %2477 = vmatmul.mubr.f32.vlgmr.msra.gmra.mrb[8].mxu0 %v8215_v51  ;;  %v6453_v56 = vpack.c.bf16 %v1964_v46, %v1956_v45  ;;  %v2045_v38 = vld [vmem:[#allocation9 + $0xd68] sm:$0xff]  ;;  %v6597_v45 = vpack.c.bf16 %v2030_v36, %v2022_v34  ;;  %v2100_v34 = vld [vmem:[#allocation9 + $0xf20] sm:$0xff]  ;;  %v2102_v36 = vld [vmem:[#allocation9 + $0xf30] sm:$0xff] }
 0x326   : > { %2619 = vmatmul.mubr.f32.vlgmr.msra.gmra.mrb[12].mxu1 %v8215_v51  ;;  %6434 = vmatpush1.bf16.msra.mxu0 %v6433_v47  ;;  %v1935_v51 = vld [vmem:[#allocation9 + $0x9f8] sm:$0xff]  ;;  %v1973_v47 = vld [vmem:[#allocation9 + $0xb28] sm:$0xff]  ;;  %v6471_v46 = vpack.c.bf16 %v2045_v38, %v2037_v37  ;;  %v2110_v38 = vld [vmem:[#allocation9 + $0xf70] sm:$0xff] }
 0x327   : > { %2547 = vmatprep.mubr.f32.mxu0 %v8235_v39  ;;  %6562 = vmatpush1.bf16.msra.mxu1 %v6561_v55  ;;  %v6571_v19 = vpack.c.bf16 %v1935_v51, %v1927_v12  ;;  %v1983_v55 = vld [vmem:[#allocation9 + $0xb78] sm:$0xff]  ;;  %v6455_v57 = vpack.c.bf16 %v1981_v53, %v1973_v47  ;;  %v2005_v12 = vld [vmem:[#allocation9 + $0xc28] sm:$0xff]  ;;  %v2046_v53 = vld [vmem:[#allocation9 + $0xd70] sm:$0xff] }
 0x328   : > { %2689 = vmatprep.mubr.f32.mxu1 %v8235_v39  ;;  %6436 = vmatprep.subr.bf16.mxu0 %v6435_v58  ;;  %v1934_v39 = vld [vmem:[#allocation9 + $0x9f0] sm:$0xff]  ;;  %v1972_v58 = vld [vmem:[#allocation9 + $0xb20] sm:$0xff]  ;;  %v6583_v60 = vpack.c.bf16 %v1983_v55, %v1975_v54  ;;  %v2013_v51 = vld [vmem:[#allocation9 + $0xc68] sm:$0xff] }
 0x329   : > { %6564 = vmatprep.subr.bf16.mxu1 %v6563_v3  ;;  %v6573_v25 = vpack.c.bf16 %v1934_v39, %v1926_v18  ;;  %v1982_v3 = vld [vmem:[#allocation9 + $0xb70] sm:$0xff]  ;;  %v6463_v17 = vpack.c.bf16 %v2013_v51, %v2005_v12  ;;  %v2004_v18 = vld [vmem:[#allocation9 + $0xc20] sm:$0xff]  ;;  %v2053_v54 = vld [vmem:[#allocation9 + $0xda8] sm:$0xff] }
 0x32a   : > { %6438 = vmatpush1.bf16.msra.mxu0 %v6437_v44  ;;  %v1991_v44 = vld [vmem:[#allocation9 + $0xbb8] sm:$0xff]  ;;  %v6585_v6 = vpack.c.bf16 %v1982_v3, %v1974_v8  ;;  %v2006_v39 = vld [vmem:[#allocation9 + $0xc30] sm:$0xff]  ;;  %v2061_v55 = vld [vmem:[#allocation9 + $0xde8] sm:$0xff] }
 0x32b   : > { %6566 = vmatpush1.bf16.msra.mxu1 %v6565_v4  ;;  %6440 = vmatprep.subr.bf16.mxu0 %v6439_v5  ;;  %v1999_v4 = vld [vmem:[#allocation9 + $0xbf8] sm:$0xff]  ;;  %v6457_v5 = vpack.c.bf16 %v1980_v59, %v1972_v58  ;;  %v6593_v28 = vpack.c.bf16 %v2014_v21, %v2006_v39  ;;  %v6601_v58 = vpack.c.bf16 %v2046_v53, %v2038_v50  ;;  %v2052_v8 = vld [vmem:[#allocation9 + $0xda0] sm:$0xff]  ;;  %v2054_v3 = vld [vmem:[#allocation9 + $0xdb0] sm:$0xff] }
 0x32c   : > { %6568 = vmatprep.subr.bf16.mxu1 %v6567_v10  ;;  %v1996_v10 = vld [vmem:[#allocation9 + $0xbe0] sm:$0xff]  ;;  %v6587_v11 = vpack.c.bf16 %v1999_v4, %v1991_v44  ;;  %v6475_v59 = vpack.c.bf16 %v2061_v55, %v2053_v54  ;;  %v2069_v44 = vld [vmem:[#allocation9 + $0xe28] sm:$0xff]  ;;  %v2078_v51 = vld [vmem:[#allocation9 + $0xe70] sm:$0xff] }
 0x32d   : > { %v2077_v4 = vld [vmem:[#allocation9 + $0xe68] sm:$0xff]  ;;  %v2084_v39 = vld [vmem:[#allocation9 + $0xea0] sm:$0xff]  ;;  %v2086_v21 = vld [vmem:[#allocation9 + $0xeb0] sm:$0xff] }
 0x32e   : > { %6442 = vmatpush1.bf16.msra.mxu0 %v6441_v13  ;;  %v2007_v13 = vld [vmem:[#allocation9 + $0xc38] sm:$0xff]  ;;  %v2116_v50 = vld [vmem:[#allocation9 + $0xfa0] sm:$0xff]  ;;  %v2118_v54 = vld [vmem:[#allocation9 + $0xfb0] sm:$0xff] }
 0x32f   : > { %6570 = vmatpush1.bf16.msra.mxu1 %v6569_v14  ;;  %6444 = vmatprep.subr.bf16.mxu0 %v6443_v15  ;;  %v2015_v14 = vld [vmem:[#allocation9 + $0xc78] sm:$0xff]  ;;  %v6461_v15 = vpack.c.bf16 %v1996_v10, %v1988_v9  ;;  %v6605_v9 = vpack.c.bf16 %v2062_v63, %v2054_v3  ;;  %v6479_v10 = vpack.c.bf16 %v2077_v4, %v2069_v44  ;;  %v2126_v55 = vld [vmem:[#allocation9 + $0xff0] sm:$0xff]  ;;  %v3045_v44 = vld [vmem:[#allocation12] sm:$0xff] }
 0x330   : > { %6572 = vmatprep.subr.bf16.mxu1 %v6571_v19  ;;  %v2012_v19 = vld [vmem:[#allocation9 + $0xc60] sm:$0xff]  ;;  %v6591_v20 = vpack.c.bf16 %v2015_v14, %v2007_v13  ;;  %v2085_v13 = vld [vmem:[#allocation9 + $0xea8] sm:$0xff] }
 0x331   : > { %v2093_v14 = vld [vmem:[#allocation9 + $0xee8] sm:$0xff] }
 0x332   : > { %6446 = vmatpush1.bf16.msra.mxu0 %v6445_v24  ;;  %v2023_v24 = vld [vmem:[#allocation9 + $0xcb8] sm:$0xff]  ;;  %v3046_v3 = vld [vmem:[#allocation12 + $0x8] sm:$0xff]  ;;  %v3049_v4 = vld [vmem:[#allocation12 + $0x20] sm:$0xff] }
 0x333   : > { %6574 = vmatpush1.bf16.msra.mxu1 %v6573_v25  ;;  %6448 = vmatprep.subr.bf16.mxu0 %v6447_v26  ;;  %v2031_v25 = vld [vmem:[#allocation9 + $0xcf8] sm:$0xff]  ;;  %v6465_v26 = vpack.c.bf16 %v2012_v19, %v2004_v18  ;;  %v6609_v18 = vpack.c.bf16 %v2078_v51, %v2070_v62  ;;  %v6483_v19 = vpack.c.bf16 %v2093_v14, %v2085_v13  ;;  %v3062_v62 = vld [vmem:[#allocation12 + $0x88] sm:$0xff]  ;;  %v3061_v13 = vld [vmem:[#allocation12 + $0x80] sm:$0xff] }
 0x334   : > { %6576 = vmatprep.subr.bf16.mxu1 %v6575_v33  ;;  %v2028_v33 = vld [vmem:[#allocation9 + $0xce0] sm:$0xff]  ;;  %v6595_v35 = vpack.c.bf16 %v2031_v25, %v2023_v24  ;;  %v2101_v24 = vld [vmem:[#allocation9 + $0xf28] sm:$0xff] }
 0x335   : > { %v2109_v25 = vld [vmem:[#allocation9 + $0xf68] sm:$0xff] }
 0x336   : > { %6450 = vmatpush1.bf16.msra.mxu0 %v6449_v40  ;;  %v2039_v40 = vld [vmem:[#allocation9 + $0xd38] sm:$0xff]  ;;  %v3065_v14 = vld [vmem:[#allocation12 + $0xa0] sm:$0xff] }
 0x337   : > { %6578 = vmatpush1.bf16.msra.mxu1 %v6577_v41  ;;  %6452 = vmatprep.subr.bf16.mxu0 %v6451_v42  ;;  %v2047_v41 = vld [vmem:[#allocation9 + $0xd78] sm:$0xff]  ;;  %v6469_v42 = vpack.c.bf16 %v2028_v33, %v2020_v32  ;;  %v6613_v32 = vpack.c.bf16 %v2094_v23, %v2086_v21  ;;  %v6487_v33 = vpack.c.bf16 %v2109_v25, %v2101_v24  ;;  %v3078_v21 = vld [vmem:[#allocation12 + $0x108] sm:$0xff]  ;;  %v3077_v24 = vld [vmem:[#allocation12 + $0x100] sm:$0xff] }
 0x338   : > { %6580 = vmatprep.subr.bf16.mxu1 %v6579_v49  ;;  %v2044_v49 = vld [vmem:[#allocation9 + $0xd60] sm:$0xff]  ;;  %v6599_v47 = vpack.c.bf16 %v2047_v41, %v2039_v40  ;;  %v2117_v40 = vld [vmem:[#allocation9 + $0xfa8] sm:$0xff] }
 0x339   : > { %v2125_v41 = vld [vmem:[#allocation9 + $0xfe8] sm:$0xff] }
 0x33a   : > { %6454 = vmatpush1.bf16.msra.mxu0 %v6453_v56  ;;  %v2055_v56 = vld [vmem:[#allocation9 + $0xdb8] sm:$0xff]  ;;  %v3081_v25 = vld [vmem:[#allocation12 + $0x120] sm:$0xff] }
 0x33b   : > { %6582 = vmatpush1.bf16.msra.mxu1 %v6581_v43  ;;  %6456 = vmatprep.subr.bf16.mxu0 %v6455_v57  ;;  %v2063_v43 = vld [vmem:[#allocation9 + $0xdf8] sm:$0xff]  ;;  %v6473_v57 = vpack.c.bf16 %v2044_v49, %v2036_v48  ;;  %v6617_v48 = vpack.c.bf16 %v2110_v38, %v2102_v36  ;;  %v6491_v49 = vpack.c.bf16 %v2125_v41, %v2117_v40  ;;  %v3094_v36 = vld [vmem:[#allocation12 + $0x188] sm:$0xff]  ;;  %v3093_v40 = vld [vmem:[#allocation12 + $0x180] sm:$0xff] }
 0x33c   : > { %6584 = vmatprep.subr.bf16.mxu1 %v6583_v60  ;;  %v2060_v60 = vld [vmem:[#allocation9 + $0xde0] sm:$0xff]  ;;  %v6603_v61 = vpack.c.bf16 %v2063_v43, %v2055_v56  ;;  %v6621_v43 = vpack.c.bf16 %v2126_v55, %v2118_v54  ;;  %v3114_v54 = vld [vmem:[#allocation12 + $0x228] sm:$0xff] }
 0x33d   : > { %v3097_v41 = vld [vmem:[#allocation12 + $0x1a0] sm:$0xff] }
 0x33e   : > { %6458 = vmatpush1.bf16.msra.mxu0 %v6457_v5  ;;  %v2071_v5 = vld [vmem:[#allocation9 + $0xe38] sm:$0xff] }
 0x33f   : > { %6586 = vmatpush1.bf16.msra.mxu1 %v6585_v6  ;;  %6460 = vmatprep.subr.bf16.mxu0 %v6459_v7  ;;  %v2079_v6 = vld [vmem:[#allocation9 + $0xe78] sm:$0xff]  ;;  %v6477_v7 = vpack.c.bf16 %v2060_v60, %v2052_v8  ;;  %v5562_v60 = vld [vmem:[%s8707_s3 + $0x8] sm:$0xff] }
 0x340   : > { %6588 = vmatprep.subr.bf16.mxu1 %v6587_v11  ;;  %v2076_v11 = vld [vmem:[#allocation9 + $0xe60] sm:$0xff]  ;;  %v6607_v12 = vpack.c.bf16 %v2079_v6, %v2071_v5  ;;  %v6625_v5 = vpack.c.bf16 %v3049_v4, %v3045_v44  ;;  %v3054_v6 = vld [vmem:[#allocation12 + $0x48] sm:$0xff] }
 0x341   : > { %v3125_v4 = vld [vmem:[#allocation12 + $0x280] sm:$0xff] }
 0x342   : > { %6462 = vmatpush1.bf16.msra.mxu0 %v6461_v15  ;;  %v2087_v15 = vld [vmem:[#allocation9 + $0xeb8] sm:$0xff] }
 0x343   : > { %6590 = vmatpush1.bf16.msra.mxu1 %v6589_v16  ;;  %6464 = vmatprep.subr.bf16.mxu0 %v6463_v17  ;;  %v2095_v16 = vld [vmem:[#allocation9 + $0xef8] sm:$0xff]  ;;  %v6481_v17 = vpack.c.bf16 %v2076_v11, %v2068_v52  ;;  %v3057_v52 = vld [vmem:[#allocation12 + $0x60] sm:$0xff] }
 0x344   : > { %6592 = vmatprep.subr.bf16.mxu1 %v6591_v20  ;;  %v2092_v20 = vld [vmem:[#allocation9 + $0xee0] sm:$0xff]  ;;  %v6611_v22 = vpack.c.bf16 %v2095_v16, %v2087_v15  ;;  %v6633_v15 = vpack.c.bf16 %v3065_v14, %v3061_v13  ;;  %v3070_v16 = vld [vmem:[#allocation12 + $0xc8] sm:$0xff] }
 0x346   : > { %6466 = vmatpush1.bf16.msra.mxu0 %v6465_v26  ;;  %v2103_v26 = vld [vmem:[#allocation9 + $0xf38] sm:$0xff] }
 0x347   : > { %6594 = vmatpush1.bf16.msra.mxu1 %v6593_v28  ;;  %6468 = vmatprep.subr.bf16.mxu0 %v6467_v30  ;;  %v2111_v28 = vld [vmem:[#allocation9 + $0xf78] sm:$0xff]  ;;  %v6485_v30 = vpack.c.bf16 %v2092_v20, %v2084_v39  ;;  %v3073_v39 = vld [vmem:[#allocation12 + $0xe0] sm:$0xff] }
 0x348   : > { %6596 = vmatprep.subr.bf16.mxu1 %v6595_v35  ;;  %v2108_v35 = vld [vmem:[#allocation9 + $0xf60] sm:$0xff]  ;;  %v6615_v37 = vpack.c.bf16 %v2111_v28, %v2103_v26  ;;  %v6641_v26 = vpack.c.bf16 %v3081_v25, %v3077_v24  ;;  %v3086_v28 = vld [vmem:[#allocation12 + $0x148] sm:$0xff]  ;;  %v3055_v25 = vld [vmem:[#allocation12 + $0x50] sm:$0xff] }
 0x34a   : > { %6470 = vmatpush1.bf16.msra.mxu0 %v6469_v42  ;;  %v2119_v42 = vld [vmem:[#allocation9 + $0xfb8] sm:$0xff] }
 0x34b   : > { %6598 = vmatpush1.bf16.msra.mxu1 %v6597_v45  ;;  %6472 = vmatprep.subr.bf16.mxu0 %v6471_v46  ;;  %v2127_v45 = vld [vmem:[#allocation9 + $0xff8] sm:$0xff]  ;;  %v6489_v46 = vpack.c.bf16 %v2108_v35, %v2100_v34  ;;  %v3089_v34 = vld [vmem:[#allocation12 + $0x160] sm:$0xff] }
 0x34c   : > { %6600 = vmatprep.subr.bf16.mxu1 %v6599_v47  ;;  %v2124_v47 = vld [vmem:[#allocation9 + $0xfe0] sm:$0xff]  ;;  %v6619_v53 = vpack.c.bf16 %v2127_v45, %v2119_v42  ;;  %v6649_v42 = vpack.c.bf16 %v3097_v41, %v3093_v40  ;;  %v3102_v45 = vld [vmem:[#allocation12 + $0x1c8] sm:$0xff]  ;;  %v3071_v41 = vld [vmem:[#allocation12 + $0xd0] sm:$0xff] }
 0x34d   : > { %v6493_v56 = vpack.c.bf16 %v2124_v47, %v2116_v50  ;;  %v3105_v50 = vld [vmem:[#allocation12 + $0x1e0] sm:$0xff] }
 0x34e   : > { %6474 = vmatpush1.bf16.msra.mxu0 %v6473_v57 }
 0x34f   : > { %6602 = vmatpush1.bf16.msra.mxu1 %v6601_v58  ;;  %6476 = vmatprep.subr.bf16.mxu0 %v6475_v59 }
 0x350   : > { %6604 = vmatprep.subr.bf16.mxu1 %v6603_v61  ;;  %v3050_v61 = vld [vmem:[#allocation12 + $0x28] sm:$0xff] }
 0x351   : > { %v6623_v63 = vpack.c.bf16 %v3050_v61, %v3046_v3  ;;  %v3126_v61 = vld [vmem:[#allocation12 + $0x288] sm:$0xff] }
 0x352   : > { %6478 = vmatpush1.bf16.msra.mxu0 %v6477_v7  ;;  %v3058_v7 = vld [vmem:[#allocation12 + $0x68] sm:$0xff] }
 0x353   : > { %6606 = vmatpush1.bf16.msra.mxu1 %v6605_v9  ;;  %6480 = vmatprep.subr.bf16.mxu0 %v6479_v10  ;;  %v6627_v9 = vpack.c.bf16 %v3058_v7, %v3054_v6  ;;  %v3053_v10 = vld [vmem:[#allocation12 + $0x40] sm:$0xff]  ;;  %v3134_v7 = vld [vmem:[#allocation12 + $0x2c8] sm:$0xff] }
 0x354   : > { %6608 = vmatprep.subr.bf16.mxu1 %v6607_v12  ;;  %v6629_v11 = vpack.c.bf16 %v3057_v52, %v3053_v10  ;;  %v3066_v12 = vld [vmem:[#allocation12 + $0xa8] sm:$0xff]  ;;  %v3133_v52 = vld [vmem:[#allocation12 + $0x2c0] sm:$0xff] }
 0x355   : > { %v6631_v51 = vpack.c.bf16 %v3066_v12, %v3062_v62  ;;  %v3048_v12 = vld [vmem:[#allocation12 + $0x18] sm:$0xff] }
 0x356   : > { %6482 = vmatpush1.bf16.msra.mxu0 %v6481_v17  ;;  %v3074_v17 = vld [vmem:[#allocation12 + $0xe8] sm:$0xff] }
 0x357   : > { %6610 = vmatpush1.bf16.msra.mxu1 %v6609_v18  ;;  %6484 = vmatprep.subr.bf16.mxu0 %v6483_v19  ;;  %v6635_v18 = vpack.c.bf16 %v3074_v17, %v3070_v16  ;;  %v3069_v19 = vld [vmem:[#allocation12 + $0xc0] sm:$0xff] }
 0x358   : > { %6612 = vmatprep.subr.bf16.mxu1 %v6611_v22  ;;  %v6637_v20 = vpack.c.bf16 %v3073_v39, %v3069_v19  ;;  %v3082_v22 = vld [vmem:[#allocation12 + $0x128] sm:$0xff]  ;;  %v3047_v19 = vld [vmem:[#allocation12 + $0x10] sm:$0xff] }
 0x359   : > { %v6639_v23 = vpack.c.bf16 %v3082_v22, %v3078_v21  ;;  %v5569_v16 = vld [vmem:[%s8707_s3 + $0x10] sm:$0xff]  ;;  %v3051_v39 = vld [vmem:[#allocation12 + $0x30] sm:$0xff]  ;;  %v3060_v21 = vld [vmem:[#allocation12 + $0x78] sm:$0xff] }
 0x35a   : > { %6486 = vmatpush1.bf16.msra.mxu0 %v6485_v30  ;;  %v3090_v30 = vld [vmem:[#allocation12 + $0x168] sm:$0xff] }
 0x35b   : > { %6614 = vmatpush1.bf16.msra.mxu1 %v6613_v32  ;;  %6488 = vmatprep.subr.bf16.mxu0 %v6487_v33  ;;  %v6643_v32 = vpack.c.bf16 %v3090_v30, %v3086_v28  ;;  %v3085_v33 = vld [vmem:[#allocation12 + $0x140] sm:$0xff]  ;;  %v5573_v22 = vld [vmem:[%s8707_s3 + $0x18] sm:$0xff]  ;;  %v3064_v28 = vld [vmem:[#allocation12 + $0x98] sm:$0xff] }
 0x35c   : > { %6616 = vmatprep.subr.bf16.mxu1 %v6615_v37  ;;  %v6645_v35 = vpack.c.bf16 %v3089_v34, %v3085_v33  ;;  %v3098_v37 = vld [vmem:[#allocation12 + $0x1a8] sm:$0xff]  ;;  %v3068_v30 = vld [vmem:[#allocation12 + $0xb8] sm:$0xff]  ;;  %v3063_v34 = vld [vmem:[#allocation12 + $0x90] sm:$0xff] }
 0x35d   : > { %v6647_v38 = vpack.c.bf16 %v3098_v37, %v3094_v36  ;;  %v6695_v33 = vpack.c.bf16 %v3068_v30, %v3064_v28  ;;  %v3072_v36 = vld [vmem:[#allocation12 + $0xd8] sm:$0xff]  ;;  %v3139_v28 = vld [vmem:[#allocation12 + $0x2f0] sm:$0xff] }
 0x35e   : > { %6490 = vmatpush1.bf16.msra.mxu0 %v6489_v46  ;;  %v3106_v46 = vld [vmem:[#allocation12 + $0x1e8] sm:$0xff]  ;;  %v3076_v37 = vld [vmem:[#allocation12 + $0xf8] sm:$0xff] }
 0x35f   : > { %6618 = vmatpush1.bf16.msra.mxu1 %v6617_v48  ;;  %6492 = vmatprep.subr.bf16.mxu0 %v6491_v49  ;;  %v6651_v48 = vpack.c.bf16 %v3106_v46, %v3102_v45  ;;  %v3101_v49 = vld [vmem:[#allocation12 + $0x1c0] sm:$0xff]  ;;  %v6699_v40 = vpack.c.bf16 %v3076_v37, %v3072_v36  ;;  %v3080_v45 = vld [vmem:[#allocation12 + $0x118] sm:$0xff] }
 0x360   : > { %6620 = vmatprep.subr.bf16.mxu1 %v6619_v53  ;;  %v6653_v47 = vpack.c.bf16 %v3105_v50, %v3101_v49  ;;  %v3110_v53 = vld [vmem:[#allocation12 + $0x208] sm:$0xff]  ;;  %v3084_v46 = vld [vmem:[#allocation12 + $0x138] sm:$0xff]  ;;  %v3079_v50 = vld [vmem:[#allocation12 + $0x110] sm:$0xff] }
 0x361   : > { %v6655_v55 = vpack.c.bf16 %v3114_v54, %v3110_v53  ;;  %v6703_v49 = vpack.c.bf16 %v3084_v46, %v3080_v45  ;;  %v3088_v53 = vld [vmem:[#allocation12 + $0x158] sm:$0xff]  ;;  %v3141_v37 = vld [vmem:[#allocation12 + $0x300] sm:$0xff] }
 0x362   : > { %6494 = vmatpush1.bf16.msra.mxu0 %v6493_v56  ;;  %v3109_v56 = vld [vmem:[#allocation12 + $0x200] sm:$0xff]  ;;  %v3092_v54 = vld [vmem:[#allocation12 + $0x178] sm:$0xff] }
 0x363   : > { %6622 = vmatpush1.bf16.msra.mxu1 %v6621_v43  ;;  %v3113_v43 = vld [vmem:[#allocation12 + $0x220] sm:$0xff]  ;;  %v3148_v36 = vld [vmem:[#allocation12 + $0x338] sm:$0xff] }
 0x364   : > { %6624 = vmatprep.subr.bf16.mxu1 %v6623_v63  ;;  %v3130_v63 = vld [vmem:[#allocation12 + $0x2a8] sm:$0xff] }
 0x365   : > { %2548 = vmatmul.mubr.f32.vlgmr.msra.gmra.mrb[8].mxu0 %v8240_v27  ;;  %v6663_v44 = vpack.c.bf16 %v3130_v63, %v3126_v61  ;;  %v3104_v61 = vld [vmem:[#allocation12 + $0x1d8] sm:$0xff] }
 0x366   : > { %2690 = vmatmul.mubr.f32.vlgmr.msra.gmra.mrb[12].mxu1 %v8240_v27  ;;  %2774 = vmatprep.mubr.f32.mxu0 %v7649_v1  ;;  %v2696_v27 = vld [vmem:[%s8707_s3] sm:$0xff] }
 0x367   : > { %6626 = vmatpush1.bf16.msra.mxu1 %v6625_v5  ;;  %v3129_v5 = vld [vmem:[#allocation12 + $0x2a0] sm:$0xff]  ;;  %v3108_v63 = vld [vmem:[#allocation12 + $0x1f8] sm:$0xff] }
 0x368   : > { %6628 = vmatprep.subr.bf16.mxu1 %v6627_v9  ;;  %v6665_v6 = vpack.c.bf16 %v3129_v5, %v3125_v4  ;;  %v3138_v9 = vld [vmem:[#allocation12 + $0x2e8] sm:$0xff]  ;;  %v6715_v4 = vpack.c.bf16 %v3108_v63, %v3104_v61  ;;  %v3103_v5 = vld [vmem:[#allocation12 + $0x1d0] sm:$0xff] }
 0x369   : > { %v6667_v10 = vpack.c.bf16 %v3138_v9, %v3134_v7  ;;  %v3112_v7 = vld [vmem:[#allocation12 + $0x218] sm:$0xff] }
 0x36a   : > { %v3116_v9 = vld [vmem:[#allocation12 + $0x238] sm:$0xff] }
 0x36b   : > { %6630 = vmatpush1.bf16.msra.mxu1 %v6629_v11  ;;  %v3137_v11 = vld [vmem:[#allocation12 + $0x2e0] sm:$0xff] }
 0x36c   : > { %6632 = vmatprep.subr.bf16.mxu1 %v6631_v51  ;;  %v6669_v62 = vpack.c.bf16 %v3137_v11, %v3133_v52  ;;  %v3052_v51 = vld [vmem:[#allocation12 + $0x38] sm:$0xff]  ;;  %v6719_v52 = vpack.c.bf16 %v3116_v9, %v3112_v7  ;;  %v3111_v11 = vld [vmem:[#allocation12 + $0x210] sm:$0xff]  ;;  %v3166_v9 = vld [vmem:[#allocation12 + $0x3c8] sm:$0xff] }
 0x36d   : > { %v3163_v7 = vld [vmem:[#allocation12 + $0x3b0] sm:$0xff] }
 0x36f   : > { %6634 = vmatpush1.bf16.msra.mxu1 %v6633_v15 }
 0x370   : > { %6636 = vmatprep.subr.bf16.mxu1 %v6635_v18  ;;  %v6687_v18 = vpack.c.bf16 %v3052_v51, %v3048_v12  ;;  %v3120_v12 = vld [vmem:[#allocation12 + $0x258] sm:$0xff] }
 0x371   : > { %v3124_v51 = vld [vmem:[#allocation12 + $0x278] sm:$0xff] }
 0x373   : > { %6638 = vmatpush1.bf16.msra.mxu1 %v6637_v20  ;;  %v3056_v20 = vld [vmem:[#allocation12 + $0x58] sm:$0xff] }
 0x374   : > { %6640 = vmatprep.subr.bf16.mxu1 %v6639_v23  ;;  %v6689_v23 = vpack.c.bf16 %v3051_v39, %v3047_v19  ;;  %v6691_v24 = vpack.c.bf16 %v3060_v21, %v3056_v20  ;;  %v3127_v20 = vld [vmem:[#allocation12 + $0x290] sm:$0xff] }
 0x375   : > { %v3131_v21 = vld [vmem:[#allocation12 + $0x2b0] sm:$0xff] }
 0x377   : > { %6642 = vmatpush1.bf16.msra.mxu1 %v6641_v26  ;;  %v3059_v26 = vld [vmem:[#allocation12 + $0x70] sm:$0xff] }
 0x378   : > { %6644 = vmatprep.subr.bf16.mxu1 %v6643_v32  ;;  %v6693_v32 = vpack.c.bf16 %v3059_v26, %v3055_v25  ;;  %v3135_v26 = vld [vmem:[#allocation12 + $0x2d0] sm:$0xff] }
 0x379   : > { %v6733_v30 = vpack.c.bf16 %v3139_v28, %v3135_v26  ;;  %v5577_v28 = vld [vmem:[%s8708_s19 + $0x10] sm:$0xff] }
 0x37b   : > { %6646 = vmatpush1.bf16.msra.mxu1 %v6645_v35  ;;  %v3067_v35 = vld [vmem:[#allocation12 + $0xb0] sm:$0xff] }
 0x37c   : > { %6648 = vmatprep.subr.bf16.mxu1 %v6647_v38  ;;  %v6697_v38 = vpack.c.bf16 %v3067_v35, %v3063_v34  ;;  %v3144_v34 = vld [vmem:[#allocation12 + $0x318] sm:$0xff] }
 0x37f   : > { %6650 = vmatpush1.bf16.msra.mxu1 %v6649_v42  ;;  %v3075_v42 = vld [vmem:[#allocation12 + $0xf0] sm:$0xff] }
 0x380   : > { %6652 = vmatprep.subr.bf16.mxu1 %v6651_v48  ;;  %v6701_v48 = vpack.c.bf16 %v3075_v42, %v3071_v41  ;;  %v3143_v41 = vld [vmem:[#allocation12 + $0x310] sm:$0xff] }
 0x381   : > { %v3147_v42 = vld [vmem:[#allocation12 + $0x330] sm:$0xff] }
 0x382   : > { %v6737_v46 = vpack.c.bf16 %v3147_v42, %v3143_v41  ;;  %v3675_v41 = vld [vmem:[#allocation15 + $0x48] sm:$0xff]  ;;  %v3677_v42 = vld [vmem:[#allocation15 + $0x58] sm:$0xff] }
 0x383   : > { %6654 = vmatpush1.bf16.msra.mxu1 %v6653_v47  ;;  %v3083_v47 = vld [vmem:[#allocation12 + $0x130] sm:$0xff] }
 0x384   : > { %6656 = vmatprep.subr.bf16.mxu1 %v6655_v55  ;;  %v6705_v55 = vpack.c.bf16 %v3083_v47, %v3079_v50  ;;  %v3152_v50 = vld [vmem:[#allocation12 + $0x358] sm:$0xff] }
 0x3b8   : > { %v2265_v57 = vpop.f32.mrb[6].mxu0  ;;  %v2407_v58 = vpop.f32.mrb[10].mxu1 }
 0x3b9   : > { %v2267_v59 = vpop.f32.mrb[7].mxu0  ;;  %v2409_v8 = vpop.f32.mrb[11].mxu1 }
 0x3ba   : > { %5563 = vmatprep.subr.msk.mxu0 %vm2703_vm1, %v2409_v8 }
 0x3bb   : > { %5564 = vmatpush1.msk.msra.mxu0 %vm2703_vm1, %v2407_v58  ;;  %v3118_v58 = vld [vmem:[#allocation12 + $0x248] sm:$0xff] }
 0x3bc   : > { %5566 = vmatprep.subr.msk.mxu0 %vm2703_vm1, %v2267_v59  ;;  %5565 = vmatmul.mubr.msk.f32.vlgmr.msra.gmra.mrb[10].mxu0 %vm2699_vm2, %v5562_v60  ;;  %v3122_v59 = vld [vmem:[#allocation12 + $0x268] sm:$0xff]  ;;  %v3117_v60 = vld [vmem:[#allocation12 + $0x240] sm:$0xff] }
 0x3bd   : > { %5567 = vmatpush1.msk.msra.mxu0 %vm2703_vm1, %v2265_v57  ;;  %2854 = vmatprep.mubr.f32.mxu0 %v7649_v1  ;;  %v6657_v57 = vpack.c.bf16 %v3113_v43, %v3109_v56  ;;  %v6659_v8 = vpack.c.bf16 %v3122_v59, %v3118_v58  ;;  %v6707_v56 = vpack.c.bf16 %v3092_v54, %v3088_v53  ;;  %v3087_v43 = vld [vmem:[#allocation12 + $0x150] sm:$0xff]  ;;  %v3096_v58 = vld [vmem:[#allocation12 + $0x198] sm:$0xff]  ;;  %v3149_v54 = vld [vmem:[#allocation12 + $0x340] sm:$0xff] }
 0x3be   : > { %v3100_v59 = vld [vmem:[#allocation12 + $0x1b8] sm:$0xff] }
 0x3bf   : > { %6658 = vmatpush1.bf16.msra.mxu1 %v6657_v57  ;;  %v3091_v57 = vld [vmem:[#allocation12 + $0x170] sm:$0xff]  ;;  %v3156_v53 = vld [vmem:[#allocation12 + $0x378] sm:$0xff] }
 0x3c0   : > { %6660 = vmatprep.subr.bf16.mxu1 %v6659_v8  ;;  %v6709_v8 = vpack.c.bf16 %v3091_v57, %v3087_v43  ;;  %v3151_v57 = vld [vmem:[#allocation12 + $0x350] sm:$0xff] }
 0x3c4   : > { %5568 = vmatmul.mubr.msk.f32.vlgmr.msra.gmra.mrb[10].mxu0 %vm2699_vm2, %v2696_v27  ;;  %v3121_v27 = vld [vmem:[#allocation12 + $0x260] sm:$0xff] }
 0x3c5   : > { %2936 = vmatprep.mubr.f32.mxu0 %v7649_v1  ;;  %v6661_v3 = vpack.c.bf16 %v3121_v27, %v3117_v60  ;;  %v6711_v60 = vpack.c.bf16 %v3100_v59, %v3096_v58  ;;  %v3095_v27 = vld [vmem:[#allocation12 + $0x190] sm:$0xff]  ;;  %v3158_v59 = vld [vmem:[#allocation12 + $0x388] sm:$0xff] }
 0x3c6   : > { %v3155_v58 = vld [vmem:[#allocation12 + $0x370] sm:$0xff] }
 0x3c7   : > { %6662 = vmatpush1.bf16.msra.mxu1 %v6661_v3  ;;  %v3099_v3 = vld [vmem:[#allocation12 + $0x1b0] sm:$0xff] }
 0x3c8   : > { %6664 = vmatprep.subr.bf16.mxu1 %v6663_v44  ;;  %v6713_v44 = vpack.c.bf16 %v3099_v3, %v3095_v27  ;;  %v3160_v27 = vld [vmem:[#allocation12 + $0x398] sm:$0xff] }
 0x3c9   : > { %v3164_v3 = vld [vmem:[#allocation12 + $0x3b8] sm:$0xff] }
 0x3ca   : > { %v6743_v63 = vpack.c.bf16 %v3164_v3, %v3160_v27 }
 0x3cb   : > { %6666 = vmatpush1.bf16.msra.mxu1 %v6665_v6  ;;  %v3107_v6 = vld [vmem:[#allocation12 + $0x1f0] sm:$0xff] }
 0x3cc   : > { %6668 = vmatprep.subr.bf16.mxu1 %v6667_v10  ;;  %v6717_v10 = vpack.c.bf16 %v3107_v6, %v3103_v5  ;;  %v3159_v5 = vld [vmem:[#allocation12 + $0x390] sm:$0xff] }
 0x3cf   : > { %6670 = vmatpush1.bf16.msra.mxu1 %v6669_v62  ;;  %v3115_v62 = vld [vmem:[#allocation12 + $0x230] sm:$0xff] }
 0x438   : > { %v2549_v13 = vpop.f32.mrb[8].mxu0 }
 0x439   : > { %v2691_v14 = vpop.f32.mrb[12].mxu1  ;;  %v2551_v15 = vpop.f32.mrb[9].mxu0 }
 0x43a   : > { %v2693_v17 = vpop.f32.mrb[13].mxu1  ;;  %5570 = vmatprep.subr.msk.mxu0 %vm2703_vm1, %v2551_v15  ;;  %v3119_v15 = vld [vmem:[#allocation12 + $0x250] sm:$0xff] }
 0x43b   : > { %5571 = vmatpush1.msk.msra.mxu0 %vm2703_vm1, %v2549_v13  ;;  %v6721_v13 = vpack.c.bf16 %v3115_v62, %v3111_v11  ;;  %v3168_v62 = vld [vmem:[#allocation12 + $0x3d8] sm:$0xff] }
 0x43c   : > { %5572 = vmatmul.mubr.msk.f32.vlgmr.msra.gmra.mrb[10].mxu0 %vm2699_vm2, %v5569_v16  ;;  %5574 = vmatprep.subr.msk.mxu0 %vm2703_vm1, %v2693_v17  ;;  %v3123_v16 = vld [vmem:[#allocation12 + $0x270] sm:$0xff]  ;;  %v3128_v17 = vld [vmem:[#allocation12 + $0x298] sm:$0xff] }
 0x43d   : > { %5575 = vmatpush1.msk.msra.mxu0 %vm2703_vm1, %v2691_v14  ;;  %3020 = vmatprep.mubr.f32.mxu0 %v7649_v1  ;;  %v6723_v14 = vpack.c.bf16 %v3124_v51, %v3120_v12  ;;  %v6725_v19 = vpack.c.bf16 %v3123_v16, %v3119_v15  ;;  %v3172_v12 = vld [vmem:[#allocation12 + $0x3f8] sm:$0xff]  ;;  %v3165_v51 = vld [vmem:[#allocation12 + $0x3c0] sm:$0xff]  ;;  %v3167_v15 = vld [vmem:[#allocation12 + $0x3d0] sm:$0xff] }
 0x43e   : > { %6688 = vmatprep.subr.bf16.mxu0 %v6687_v18  ;;  %v3132_v18 = vld [vmem:[#allocation12 + $0x2b8] sm:$0xff]  ;;  %v3171_v16 = vld [vmem:[#allocation12 + $0x3f0] sm:$0xff] }
 0x43f   : > { %v6727_v39 = vpack.c.bf16 %v3132_v18, %v3128_v17  ;;  %v6749_v18 = vpack.c.bf16 %v3171_v16, %v3167_v15  ;;  %v3691_v15 = vld [vmem:[#allocation15 + $0xc8] sm:$0xff]  ;;  %v3693_v16 = vld [vmem:[#allocation15 + $0xd8] sm:$0xff] }
 0x444   : > { %5576 = vmatmul.mubr.msk.f32.vlgmr.msra.gmra.mrb[10].mxu0 %vm2699_vm2, %v5573_v22  ;;  %v3136_v22 = vld [vmem:[#allocation12 + $0x2d8] sm:$0xff] }
 0x445   : > { %6690 = vmatpush1.bf16.msra.mxu0 %v6689_v23  ;;  %v3140_v23 = vld [vmem:[#allocation12 + $0x2f8] sm:$0xff] }
 0x446   : > { %6692 = vmatprep.subr.bf16.mxu0 %v6691_v24  ;;  %v6729_v24 = vpack.c.bf16 %v3131_v21, %v3127_v20  ;;  %v6731_v25 = vpack.c.bf16 %v3140_v23, %v3136_v22 }
 0x449   : > { %6694 = vmatpush1.bf16.msra.mxu0 %v6693_v32  ;;  %v3142_v32 = vld [vmem:[#allocation12 + $0x308] sm:$0xff] }
 0x44a   : > { %6696 = vmatprep.subr.bf16.mxu0 %v6695_v33  ;;  %v3146_v33 = vld [vmem:[#allocation12 + $0x328] sm:$0xff] }
 0x44b   : > { %v6671_v35 = vpack.c.bf16 %v3146_v33, %v3142_v32  ;;  %v3668_v33 = vld [vmem:[#allocation15 + $0x10] sm:$0xff] }
 0x44d   : > { %6698 = vmatpush1.bf16.msra.mxu0 %v6697_v38  ;;  %v6735_v38 = vpack.c.bf16 %v3148_v36, %v3144_v34  ;;  %6672 = vmatprep.subr.bf16.mxu1 %v6671_v35  ;;  %v3671_v34 = vld [vmem:[#allocation15 + $0x28] sm:$0xff]  ;;  %v3673_v35 = vld [vmem:[#allocation15 + $0x38] sm:$0xff] }
 0x44e   : > { %6700 = vmatprep.subr.bf16.mxu0 %v6699_v40  ;;  %v3145_v40 = vld [vmem:[#allocation12 + $0x320] sm:$0xff] }
 0x44f   : > { %v6673_v45 = vpack.c.bf16 %v3145_v40, %v3141_v37  ;;  %v6755_v37 = vpack.c.bf16 %v3673_v35, %v3671_v34  ;;  %v3672_v40 = vld [vmem:[#allocation15 + $0x30] sm:$0xff] }
 0x450   : > { %v5592_v35 = vld [vmem:[%s8709_s17 + $0x20] sm:$0xff] }
 0x451   : > { %6702 = vmatpush1.bf16.msra.mxu0 %v6701_v48  ;;  %v3150_v48 = vld [vmem:[#allocation12 + $0x348] sm:$0xff]  ;;  %6674 = vmatpush1.bf16.msra.mxu1 %v6673_v45 }
 0x452   : > { %6704 = vmatprep.subr.bf16.mxu0 %v6703_v49  ;;  %v3154_v49 = vld [vmem:[#allocation12 + $0x368] sm:$0xff] }
 0x453   : > { %v6675_v47 = vpack.c.bf16 %v3154_v49, %v3150_v48  ;;  %v3674_v48 = vld [vmem:[#allocation15 + $0x40] sm:$0xff]  ;;  %v3676_v49 = vld [vmem:[#allocation15 + $0x50] sm:$0xff] }
 0x455   : > { %6706 = vmatpush1.bf16.msra.mxu0 %v6705_v55  ;;  %v3153_v55 = vld [vmem:[#allocation12 + $0x360] sm:$0xff]  ;;  %6676 = vmatprep.subr.bf16.mxu1 %v6675_v47 }
 0x456   : > { %6708 = vmatprep.subr.bf16.mxu0 %v6707_v56  ;;  %v6739_v56 = vpack.c.bf16 %v3156_v53, %v3152_v50  ;;  %v6677_v43 = vpack.c.bf16 %v3153_v55, %v3149_v54  ;;  %v3679_v50 = vld [vmem:[#allocation15 + $0x68] sm:$0xff]  ;;  %v3681_v47 = vld [vmem:[#allocation15 + $0x78] sm:$0xff]  ;;  %v6761_v53 = vpack.c.bf16 %v3676_v49, %v3674_v48  ;;  %v3678_v55 = vld [vmem:[#allocation15 + $0x60] sm:$0xff] }
 0x457   : > { %v6763_v54 = vpack.c.bf16 %v3681_v47, %v3679_v50  ;;  %v5593_v50 = vld [vmem:[%s8709_s17 + $0x28] sm:$0xff]  ;;  %v5594_v47 = vld [vmem:[%s8709_s17 + $0x30] sm:$0xff] }
 0x458   : > { %6678 = vmatpush1.bf16.msra.mxu1 %v6677_v43  ;;  %v3683_v43 = vld [vmem:[#allocation15 + $0x88] sm:$0xff] }
 0x459   : > { %6710 = vmatpush1.bf16.msra.mxu0 %v6709_v8  ;;  %v6741_v8 = vpack.c.bf16 %v3155_v58, %v3151_v57  ;;  %v3685_v57 = vld [vmem:[#allocation15 + $0x98] sm:$0xff] }
 0x45a   : > { %6712 = vmatprep.subr.bf16.mxu0 %v6711_v60  ;;  %v3162_v60 = vld [vmem:[#allocation12 + $0x3a8] sm:$0xff] }
 0x45b   : > { %v6679_v61 = vpack.c.bf16 %v3162_v60, %v3158_v59  ;;  %v6767_v59 = vpack.c.bf16 %v3685_v57, %v3683_v43  ;;  %v3776_v57 = vld [vmem:[%s8709_s17 + $0x8] sm:$0xff] }
 0x45d   : > { %6714 = vmatpush1.bf16.msra.mxu0 %v6713_v44  ;;  %v3157_v44 = vld [vmem:[#allocation12 + $0x380] sm:$0xff]  ;;  %6680 = vmatprep.subr.bf16.mxu1 %v6679_v61  ;;  %v5578_v61 = vld [vmem:[%s8708_s19 + $0x18] sm:$0xff] }
 0x45e   : > { %6716 = vmatprep.subr.bf16.mxu0 %v6715_v4  ;;  %v3161_v4 = vld [vmem:[#allocation12 + $0x3a0] sm:$0xff] }
 0x45f   : > { %v6681_v6 = vpack.c.bf16 %v3161_v4, %v3157_v44  ;;  %v3316_v44 = vld [vmem:[%s8708_s19 + $0x8] sm:$0xff]  ;;  %v5583_v4 = vld [vmem:[%s8708_s19 + $0x20] sm:$0xff] }
 0x461   : > { %6718 = vmatpush1.bf16.msra.mxu0 %v6717_v10  ;;  %v3170_v10 = vld [vmem:[#allocation12 + $0x3e8] sm:$0xff]  ;;  %6682 = vmatpush1.bf16.msra.mxu1 %v6681_v6 }
 0x462   : > { %6720 = vmatprep.subr.bf16.mxu0 %v6719_v52  ;;  %v6745_v52 = vpack.c.bf16 %v3163_v7, %v3159_v5  ;;  %v6683_v11 = vpack.c.bf16 %v3170_v10, %v3166_v9  ;;  %v5584_v5 = vld [vmem:[%s8708_s19 + $0x28] sm:$0xff]  ;;  %v5587_v6 = vld [vmem:[%s8708_s19 + $0x30] sm:$0xff]  ;;  %v5588_v7 = vld [vmem:[%s8708_s19 + $0x38] sm:$0xff] }
 0x463   : > { %v3682_v9 = vld [vmem:[#allocation15 + $0x80] sm:$0xff]  ;;  %v3684_v10 = vld [vmem:[#allocation15 + $0x90] sm:$0xff] }
 0x464   : > { %6684 = vmatprep.subr.bf16.mxu1 %v6683_v11  ;;  %v3687_v11 = vld [vmem:[#allocation15 + $0xa8] sm:$0xff] }
 0x465   : > { %6722 = vmatpush1.bf16.msra.mxu0 %v6721_v13  ;;  %v6747_v13 = vpack.c.bf16 %v3172_v12, %v3168_v62  ;;  %v3689_v62 = vld [vmem:[#allocation15 + $0xb8] sm:$0xff] }
 0x466   : > { %6724 = vmatprep.subr.bf16.mxu0 %v6723_v14  ;;  %v3169_v14 = vld [vmem:[#allocation12 + $0x3e0] sm:$0xff]  ;;  %v6771_v12 = vpack.c.bf16 %v3689_v62, %v3687_v11 }
 0x467   : > { %v6685_v17 = vpack.c.bf16 %v3169_v14, %v3165_v51  ;;  %v3686_v51 = vld [vmem:[#allocation15 + $0xa0] sm:$0xff] }
 0x468   : > { %v4226_v62 = vld [vmem:[#allocation18 + $0x20] sm:$0xff] }
 0x469   : > { %6726 = vmatpush1.bf16.msra.mxu0 %v6725_v19  ;;  %6686 = vmatpush1.bf16.msra.mxu1 %v6685_v17  ;;  %v3029_v19 = vld [vmem:[#allocation11] sm:$0x3]  ;;  %v3690_v17 = vld [vmem:[#allocation15 + $0xc0] sm:$0xff] }
 0x46a   : > { %6728 = vmatprep.subr.bf16.mxu0 %v6727_v39  ;;  %v3034_v39 = vrot.slane %v3029_v19, %v8183_v31  ;;  %v3038_v20 = vrot.slane %v3029_v19, %v1594_v0  ;;  %v3669_v0 = vld [vmem:[#allocation15 + $0x18] sm:$0xff]  ;;  %v3692_v19 = vld [vmem:[#allocation15 + $0xd0] sm:$0xff] }
 0x46b   : > { %v6751_v32 = vpack.c.bf16 %v3669_v0, %v3667_v29 }
 0x46d   : > { %6730 = vmatpush1.bf16.msra.mxu0 %v6729_v24 }
 0x46e   : > { %6732 = vmatprep.subr.bf16.mxu0 %v6731_v25 }
 0x471   : > { %6734 = vmatpush1.bf16.msra.mxu0 %v6733_v30  ;;  %v3666_v30 = vld [vmem:[#allocation15] sm:$0xff] }
 0x472   : > { %6736 = vmatprep.subr.bf16.mxu0 %v6735_v38  ;;  %v6753_v36 = vpack.c.bf16 %v3668_v33, %v3666_v30  ;;  %v3670_v38 = vld [vmem:[#allocation15 + $0x20] sm:$0xff] }
 0x473   : > { %v6757_v45 = vpack.c.bf16 %v3672_v40, %v3670_v38 }
 0x475   : > { %6738 = vmatpush1.bf16.msra.mxu0 %v6737_v46  ;;  %v6759_v46 = vpack.c.bf16 %v3677_v42, %v3675_v41 }
 0x476   : > { %6740 = vmatprep.subr.bf16.mxu0 %v6739_v56  ;;  %v3680_v56 = vld [vmem:[#allocation15 + $0x70] sm:$0xff] }
 0x477   : > { %v6765_v58 = vpack.c.bf16 %v3680_v56, %v3678_v55  ;;  %v3775_v55 = vld [vmem:[%s8709_s17] sm:$0xff] }
 0x479   : > { %6742 = vmatpush1.bf16.msra.mxu0 %v6741_v8 }
 0x47a   : > { %6744 = vmatprep.subr.bf16.mxu0 %v6743_v63  ;;  %v3315_v63 = vld [vmem:[%s8708_s19] sm:$0xff] }
 0x47d   : > { %6746 = vmatpush1.bf16.msra.mxu0 %v6745_v52  ;;  %v6769_v52 = vpack.c.bf16 %v3684_v10, %v3682_v9  ;;  %v4224_v10 = vld [vmem:[#allocation18 + $0x10] sm:$0xff] }
 0x47e   : > { %6748 = vmatprep.subr.bf16.mxu0 %v6747_v13  ;;  %v3688_v13 = vld [vmem:[#allocation15 + $0xb0] sm:$0xff] }
 0x47f   : > { %v6773_v14 = vpack.c.bf16 %v3688_v13, %v3686_v51  ;;  %v4228_v13 = vld [vmem:[#allocation18 + $0x30] sm:$0xff] }
 0x481   : > { %6750 = vmatpush1.bf16.msra.mxu0 %v6749_v18  ;;  %v6775_v18 = vpack.c.bf16 %v3693_v16, %v3691_v15  ;;  %v5620_v16 = vld [vmem:[#allocation17] ss:$0 sm:$0xff] }
 0x482   : > { %6752 = vmatprep.subr.bf16.mxu0 %v6751_v32 }
 0x517   : > { %v3022_v21 = vpop.f32.mrb[10].mxu0 }
 0x518   : > { %v3041_v22 = vadd.f32 %v3034_v39, %v3022_v21  ;;  %v3024_v23 = vpop.f32.mrb[11].mxu0  ;;  %v3695_v39 = vld [vmem:[#allocation15 + $0xe8] sm:$0xff]  ;;  %v6777_v21 = vpack.c.bf16 %v3692_v19, %v3690_v17 }
 0x519   : > { %v3042_v24 = vadd.f32 %v3038_v20, %v3024_v23  ;;  %v3697_v20 = vld [vmem:[#allocation15 + $0xf8] sm:$0xff]  ;;  %v3694_v23 = vld [vmem:[#allocation15 + $0xe0] sm:$0xff] }
 0x51b   : > { %7166 = vtanh.f32 %v3042_v24  ;;  %v3696_v24 = vld [vmem:[#allocation15 + $0xf0] sm:$0xff] }
 0x51c   : > { %7168 = vtanh.f32 %v3041_v22  ;;  %v6779_v22 = vpack.c.bf16 %v3697_v20, %v3695_v39 }
 0x525   : > { %v7167_v25 = vpop.eup %7166 }
 0x526   : > { %v7169_v26 = vpop.eup %7168  ;;  %3237 = vmatprep.mubr.f32.mxu1 %v7167_v25  ;;  %3308 = vmatprep.mubr.f32.mxu0 %v7167_v25  ;;  %v6781_v25 = vpack.c.bf16 %v3696_v24, %v3694_v23 }
 0x527   : > { %3238 = vmatmul.mubr.f32.vlgmr.msra.gmra.mrb[14].mxu1 %v7169_v26  ;;  %3309 = vmatmul.mubr.f32.vlgmr.msra.gmra.mrb[12].mxu0 %v7169_v26  ;;  %v5591_v26 = vld [vmem:[#allocation14] ss:$0 sm:$0xff] }
 0x528   : > { %3762 = vmatprep.mubr.f32.mxu0 %v7649_v1  ;;  %5803 = vmatprep.mubr.msk.f32.mxu1 %vm3320_vm3, %v5577_v28 }
 0x529   : > { %6754 = vmatpush1.bf16.msra.mxu0 %v6753_v36 }
 0x52a   : > { %6756 = vmatprep.subr.bf16.mxu0 %v6755_v37 }
 0x52d   : > { %6758 = vmatpush1.bf16.msra.mxu0 %v6757_v45 }
 0x52e   : > { %6760 = vmatprep.subr.bf16.mxu0 %v6759_v46 }
 0x531   : > { %6762 = vmatpush1.bf16.msra.mxu0 %v6761_v53 }
 0x532   : > { %6764 = vmatprep.subr.bf16.mxu0 %v6763_v54  ;;  %v5595_v54 = vld [vmem:[%s8709_s17 + $0x38] sm:$0xff] }
 0x535   : > { %6766 = vmatpush1.bf16.msra.mxu0 %v6765_v58  ;;  %v3777_v58 = vld [vmem:[%s8709_s17 + $0x10] sm:$0xff] }
 0x536   : > { %6768 = vmatprep.subr.bf16.mxu0 %v6767_v59 }
 0x539   : > { %6770 = vmatpush1.bf16.msra.mxu0 %v6769_v52  ;;  %v4225_v52 = vld [vmem:[#allocation18 + $0x18] sm:$0xff] }
 0x53a   : > { %6772 = vmatprep.subr.bf16.mxu0 %v6771_v12  ;;  %v6803_v11 = vpack.c.bf16 %v4225_v52, %v4224_v10  ;;  %v4227_v12 = vld [vmem:[#allocation18 + $0x28] sm:$0xff]  ;;  %v4332_v52 = vld [vmem:[%s8710_s4 + $0x28] sm:$0xff] }
 0x53b   : > { %v6807_v51 = vpack.c.bf16 %v4227_v12, %v4226_v62  ;;  %v4334_v12 = vld [vmem:[%s8710_s4 + $0x38] sm:$0xff] }
 0x53d   : > { %6774 = vmatpush1.bf16.msra.mxu0 %v6773_v14  ;;  %v4229_v14 = vld [vmem:[#allocation18 + $0x38] sm:$0xff] }
 0x53e   : > { %6776 = vmatprep.subr.bf16.mxu0 %v6775_v18  ;;  %v6811_v15 = vpack.c.bf16 %v4229_v14, %v4228_v13 }
 0x541   : > { %6778 = vmatpush1.bf16.msra.mxu0 %v6777_v21 }
 0x542   : > { %6780 = vmatprep.subr.bf16.mxu0 %v6779_v22 }
 0x545   : > { %6782 = vmatpush1.bf16.msra.mxu0 %v6781_v25 }
 0x5fa   : > { %v3239_v8 = vpop.f32.mrb[14].mxu1  ;;  %v3310_v60 = vpop.f32.mrb[12].mxu0 }
 0x5fb   : > { %v3241_v27 = vpop.f32.mrb[15].mxu1  ;;  %v3312_v3 = vpop.f32.mrb[13].mxu0 }
 0x5fc   : > { %5801 = vmatprep.subr.mxu1 %v3241_v27 }
 0x5fd   : > { %5802 = vmatpush3.msra.mxu1 %v3241_v27  ;;  %v5605_v27 = vld [vmem:[%s8709_s17 + $0x48] sm:$0xff] }
 0x5fe   : > { %5804 = vmatmul.mubr.msk.f32.vlgmr.msra.gmra.mrb[16].mxu1 %vm3320_vm3, %v5578_v61  ;;  %5806 = vmatprep.subr.mxu1 %v3239_v8  ;;  %v5607_v61 = vld [vmem:[%s8709_s17 + $0x58] sm:$0xff] }
 0x5ff   : > { %5807 = vmatpush3.msra.mxu1 %v3239_v8  ;;  %5808 = vmatprep.mubr.msk.f32.mxu1 %vm3320_vm3, %v3315_v63  ;;  %v3778_v8 = vld [vmem:[%s8709_s17 + $0x18] sm:$0xff]  ;;  %v5612_v63 = vld [vmem:[%s8709_s17 + $0x60] sm:$0xff] }
 0x600   : > { %5811 = vmatprep.subr.mxu1 %v3310_v60 }
 0x606   : > { %5809 = vmatmul.mubr.msk.f32.vlgmr.msra.gmra.mrb[16].mxu1 %vm3320_vm3, %v3316_v44  ;;  %v5613_v44 = vld [vmem:[%s8709_s17 + $0x68] sm:$0xff] }
 0x607   : > { %5812 = vmatpush3.msra.mxu1 %v3310_v60  ;;  %5813 = vmatprep.mubr.msk.f32.mxu1 %vm3320_vm3, %v5583_v4  ;;  %v5604_v60 = vld [vmem:[%s8709_s17 + $0x40] sm:$0xff]  ;;  %v5614_v4 = vld [vmem:[%s8709_s17 + $0x70] sm:$0xff] }
 0x608   : > { %5816 = vmatprep.subr.mxu1 %v3312_v3 }
 0x60e   : > { %5814 = vmatmul.mubr.msk.f32.vlgmr.msra.gmra.mrb[16].mxu1 %vm3320_vm3, %v5584_v5  ;;  %v5615_v5 = vld [vmem:[%s8709_s17 + $0x78] sm:$0xff] }
 0x60f   : > { %5817 = vmatpush3.msra.mxu1 %v3312_v3  ;;  %5818 = vmatprep.mubr.msk.f32.mxu1 %vm3320_vm3, %v5587_v6  ;;  %v5606_v3 = vld [vmem:[%s8709_s17 + $0x50] sm:$0xff] }
 0x610   : > { %v4222_v6 = vld [vmem:[#allocation18] sm:$0xff] }
 0x616   : > { %5819 = vmatmul.mubr.msk.f32.vlgmr.msra.gmra.mrb[16].mxu1 %vm3320_vm3, %v5588_v7  ;;  %v4223_v7 = vld [vmem:[#allocation18 + $0x8] sm:$0xff] }
 0x617   : > { %5825 = vmatprep.mubr.msk.f32.mxu1 %vm3792_vm4, %v5592_v35  ;;  %v6799_v9 = vpack.c.bf16 %v4223_v7, %v4222_v6  ;;  %v4330_v7 = vld [vmem:[%s8710_s4 + $0x18] sm:$0xff] }
 0x6e9   : > { %v5820_v28 = vpop.f32.mrb[16].mxu1 }
 0x6ea   : > { %v3644_v29 = vpop.f32.mrb[17].mxu1  ;;  %v3663_v30 = vadd.f32 %v5820_v28, %v5591_v26 }
 0x6eb   : > { %v3662_v0 = vadd.f32 %v5591_v26, %v3644_v29 }
 0x6ed   : > { %7170 = vtanh.f32 %v3662_v0 }
 0x6ee   : > { %7172 = vtanh.f32 %v3663_v30  ;;  %v5625_v30 = vld [vmem:[%s8710_s4 + $0x40] sm:$0xff] }
 0x6f7   : > { %v7171_v32 = vpop.eup %7170 }
 0x6f8   : > { %3763 = vmatmul.mubr.f32.vlgmr.msra.gmra.mrb[14].mxu0 %v7171_v32  ;;  %v7173_v33 = vpop.eup %7172 }
 0x6f9   : > { %3768 = vmatprep.mubr.f32.mxu0 %v7649_v1 }
 0x6fc   : > { %3769 = vmatmul.mubr.f32.gmra.mrb[16].mxu0 %v7173_v33 }
 0x6fd   : > { %5891 = vmatprep.mubr.msk.f32.mxu0 %vm4360_vm5, %v5625_v30  ;;  %v4958_v30 = vld [vmem:[%s8712_s8] sm:$0xff] }
 0x7cb   : > { %v3764_v34 = vpop.f32.mrb[14].mxu0 }
 0x7cc   : > { %v3766_v36 = vpop.f32.mrb[15].mxu0 }
 0x7cf   : > { %v3770_v37 = vpop.f32.mrb[16].mxu0 }
 0x7d0   : > { %v7087_v38 = vpack.i.bf16 %v3770_v37, %v3764_v34  ;;  %v6787_v40 = vpack.c.bf16 %v3770_v37, %v3764_v34  ;;  %v3772_v41 = vpop.f32.mrb[17].mxu0 }
 0x7d1   : > { %v7092_v42 = vpack.i.bf16 %v3772_v41, %v3766_v36  ;;  %v6791_v45 = vpack.c.bf16 %v3772_v41, %v3766_v36 }
 0x7d2   : > { %7088 = vrot.lane.b32.xlu0 %v7087_v38, %s8653_s26 }
 0x7d3   : > { %7093 = vrot.lane.b32.xlu1 %v7092_v42, %s8653_s26  ;;  %s8713_s26 = sld [smem:[#allocation47_spill]] }
 0x7d9   : > { %s8573_s0 = scalar_lea.hbm %s8713_s26, %s5690_s10 }
 0x844   : > { %v7089_v1 = vpop.permute.xlu0 %7088 }
 0x845   : > { %v7091_v46 = vunpack.i.h.bf16 %v7089_v1  ;;  %v7090_v48 = vunpack.i.l.bf16 %v7089_v1  ;;  %v7094_v53 = vpop.permute.xlu1 %7093 }
 0x846   : > { %v7096_v56 = vunpack.i.h.bf16 %v7094_v53  ;;  %v7095_v43 = vunpack.i.l.bf16 %v7094_v53 }
 0x847   : > { %v6783_v49 = vpack.c.bf16 %v7091_v46, %v7090_v48 }
 0x848   : > { %v6795_v59 = vpack.c.bf16 %v7096_v56, %v7095_v43  ;;  %v5629_v56 = vld [vmem:[%s8710_s4 + $0x60] sm:$0xff] }
 0x849   : > { %6784 = vmatprep.subr.bf16.mxu1 %v6783_v49 }
 0x84a   : > { %6786 = vmatpush3.bf16.msra.mxu1 %v6783_v49 }
 0x84b   : > { %6788 = vmatprep.subr.bf16.mxu1 %v6787_v40 }
 0x84d   : > { %5826 = vmatmul.mubr.msk.f32.vlgmr.msra.gmra.mrb[18].mxu1 %vm3792_vm4, %v5593_v50  ;;  %v5626_v50 = vld [vmem:[%s8710_s4 + $0x48] sm:$0xff] }
 0x84e   : > { %6790 = vmatpush3.bf16.msra.mxu1 %v6787_v40  ;;  %5828 = vmatprep.mubr.msk.f32.mxu1 %vm3792_vm4, %v5594_v47  ;;  %v5627_v47 = vld [vmem:[%s8710_s4 + $0x50] sm:$0xff] }
 0x84f   : > { %6792 = vmatprep.subr.bf16.mxu1 %v6791_v45 }
 0x851   : > { %5829 = vmatmul.mubr.msk.f32.gmra.mrb[20].mxu1 %vm3792_vm4, %v5595_v54 }
 0x852   : > { %5835 = vmatprep.mubr.msk.f32.mxu1 %vm3792_vm4, %v3775_v55  ;;  %v5628_v55 = vld [vmem:[%s8710_s4 + $0x58] sm:$0xff] }
 0x855   : > { %5836 = vmatmul.mubr.msk.f32.vlgmr.msra.gmra.mrb[18].mxu1 %vm3792_vm4, %v3776_v57  ;;  %v5630_v57 = vld [vmem:[%s8710_s4 + $0x68] sm:$0xff] }
 0x856   : > { %6794 = vmatpush3.bf16.msra.mxu1 %v6791_v45  ;;  %5838 = vmatprep.mubr.msk.f32.mxu1 %vm3792_vm4, %v3777_v58  ;;  %v5631_v58 = vld [vmem:[%s8710_s4 + $0x70] sm:$0xff] }
 0x857   : > { %6796 = vmatprep.subr.bf16.mxu1 %v6795_v59 }
 0x859   : > { %5839 = vmatmul.mubr.msk.f32.gmra.mrb[20].mxu1 %vm3792_vm4, %v3778_v8  ;;  %v5632_v8 = vld [vmem:[%s8710_s4 + $0x78] sm:$0xff] }
 0x85a   : > { %5845 = vmatprep.mubr.msk.f32.mxu1 %vm3792_vm4, %v5604_v60  ;;  %v4327_v60 = vld [vmem:[%s8710_s4] sm:$0xff] }
 0x85d   : > { %5846 = vmatmul.mubr.msk.f32.vlgmr.msra.gmra.mrb[18].mxu1 %vm3792_vm4, %v5605_v27 }
 0x85e   : > { %6798 = vmatpush3.bf16.msra.mxu1 %v6795_v59  ;;  %5848 = vmatprep.mubr.msk.f32.mxu1 %vm3792_vm4, %v5606_v3 }
 0x85f   : > { %6800 = vmatprep.subr.bf16.mxu1 %v6799_v9 }
 0x861   : > { %5849 = vmatmul.mubr.msk.f32.gmra.mrb[20].mxu1 %vm3792_vm4, %v5607_v61 }
 0x862   : > { %5855 = vmatprep.mubr.msk.f32.mxu1 %vm3792_vm4, %v5612_v63  ;;  %v4328_v63 = vld [vmem:[%s8710_s4 + $0x8] sm:$0xff] }
 0x865   : > { %5856 = vmatmul.mubr.msk.f32.vlgmr.msra.gmra.mrb[18].mxu1 %vm3792_vm4, %v5613_v44  ;;  %v4329_v44 = vld [vmem:[%s8710_s4 + $0x10] sm:$0xff] }
 0x866   : > { %5858 = vmatprep.mubr.msk.f32.mxu1 %vm3792_vm4, %v5614_v4  ;;  %6802 = vmatpush3.bf16.msra.mxu1 %v6799_v9  ;;  %v4331_v9 = vld [vmem:[%s8710_s4 + $0x20] sm:$0xff] }
 0x867   : > { %6804 = vmatprep.subr.bf16.mxu1 %v6803_v11 }
 0x869   : > { %5859 = vmatmul.mubr.msk.f32.gmra.mrb[20].mxu1 %vm3792_vm4, %v5615_v5 }
 0x86a   : > { %6806 = vmatpush3.bf16.msra.mxu1 %v6803_v11  ;;  %v4333_v11 = vld [vmem:[%s8710_s4 + $0x30] sm:$0xff] }
 0x86b   : > { %6808 = vmatprep.subr.bf16.mxu1 %v6807_v51 }
 0x86e   : > { %6810 = vmatpush3.bf16.msra.mxu1 %v6807_v51  ;;  %v5649_v51 = vld [vmem:[%s8710_s4 + $0x80] sm:$0xff] }
 0x86f   : > { %6812 = vmatprep.subr.bf16.mxu1 %v6811_v15 }
 0x872   : > { %6814 = vmatpush3.bf16.msra.mxu1 %v6811_v15  ;;  %v5650_v15 = vld [vmem:[%s8710_s4 + $0x88] sm:$0xff] }
 0x938   : > { %v5857_v17 = vpop.f32.mrb[18].mxu1 }
 0x939   : > { %v4215_v18 = vadd.f32 %v5857_v17, %v5620_v16  ;;  %v4184_v19 = vpop.f32.mrb[19].mxu1 }
 0x93a   : > { %v4214_v39 = vadd.f32 %v5620_v16, %v4184_v19  ;;  %v5653_v19 = vld [vmem:[%s8710_s4 + $0xa0] sm:$0xff] }
 0x93c   : > { %7174 = vtanh.f32 %v4214_v39  ;;  %v5860_v20 = vpop.f32.mrb[20].mxu1  ;;  %v5654_v39 = vld [vmem:[%s8710_s4 + $0xa8] sm:$0xff] }
 0x93d   : > { %7176 = vtanh.f32 %v4215_v18  ;;  %v4217_v21 = vadd.f32 %v5860_v20, %v5620_v16  ;;  %v4194_v22 = vpop.f32.mrb[21].mxu1  ;;  %v5652_v18 = vld [vmem:[%s8710_s4 + $0x98] sm:$0xff]  ;;  %v5655_v20 = vld [vmem:[%s8710_s4 + $0xb0] sm:$0xff] }
 0x93e   : > { %v4216_v23 = vadd.f32 %v5620_v16, %v4194_v22  ;;  %v5651_v16 = vld [vmem:[%s8710_s4 + $0x90] sm:$0xff]  ;;  %v5665_v22 = vld [vmem:[%s8710_s4 + $0xc0] sm:$0xff] }
 0x940   : > { %7178 = vtanh.f32 %v4216_v23  ;;  %v5666_v23 = vld [vmem:[%s8710_s4 + $0xc8] sm:$0xff] }
 0x941   : > { %7180 = vtanh.f32 %v4217_v21  ;;  %v5656_v21 = vld [vmem:[%s8710_s4 + $0xb8] sm:$0xff] }
 0x946   : > { %v7175_v24 = vpop.eup %7174 }
 0x947   : > { %v7177_v25 = vpop.eup %7176  ;;  %5877 = vmatprep.mubr.msk.f32.mxu1 %vm895_vm0, %v7175_v24  ;;  %v5667_v24 = vld [vmem:[%s8710_s4 + $0xd0] sm:$0xff] }
 0x948   : > { %5878 = vmatmul.mubr.msk.f32.vlgmr.msra.gmra.mrb[22].mxu1 %vm895_vm0, %v7177_v25  ;;  %v5668_v25 = vld [vmem:[%s8710_s4 + $0xd8] sm:$0xff] }
 0x94a   : > { %v7179_v26 = vpop.eup %7178 }
 0x94b   : > { %v7181_v28 = vpop.eup %7180  ;;  %5880 = vmatprep.mubr.msk.f32.mxu1 %vm895_vm0, %v7179_v26  ;;  %v5669_v26 = vld [vmem:[%s8710_s4 + $0xe0] sm:$0xff] }
 0x94c   : > { %5881 = vmatmul.mubr.msk.f32.gmra.mrb[24].mxu1 %vm895_vm0, %v7181_v28  ;;  %v5670_v28 = vld [vmem:[%s8710_s4 + $0xe8] sm:$0xff] }
 0xa1b   : > { %v5879_v29 = vpop.f32.mrb[22].mxu1 }
 0xa1c   : > { %v4308_v0 = vpop.f32.mrb[23].mxu1 }
 0xa1d   : > { %v7097_v32 = vpack.i.bf16 %v5879_v29, %v4308_v0  ;;  %v6823_v33 = vpack.c.bf16 %v5879_v29, %v4308_v0  ;;  %v5671_v29 = vld [vmem:[%s8710_s4 + $0xf0] sm:$0xff]  ;;  %v5672_v0 = vld [vmem:[%s8710_s4 + $0xf8] sm:$0xff]  ;;  %s7540_s4 = sshll.u32 %s7657_s23, 4  ;;  %s7541_s4 = int_to_ptr.vmem [resolvable:$false] %s7540_s4 }
 0xa1f   : > { %7098 = vrot.lane.b32.xlu0 %v7097_v32, %s7652_s9  ;;  %v5882_v34 = vpop.f32.mrb[24].mxu1 }
 0xa20   : > { %v4318_v35 = vpop.f32.mrb[25].mxu1 }
 0xa21   : > { %v7102_v36 = vpack.i.bf16 %v5882_v34, %v4318_v35  ;;  %v6827_v37 = vpack.c.bf16 %v5882_v34, %v4318_v35  ;;  %v4960_v34 = vld [vmem:[%s8712_s8 + $0x10] sm:$0xff]  ;;  %v4961_v35 = vld [vmem:[%s8712_s8 + $0x18] sm:$0xff] }
 0xa23   : > { %7108 = vrot.lane.b32.xlu0 %v7097_v32, %s8711_s7  ;;  %7103 = vrot.lane.b32.xlu1 %v7102_v36, %s7652_s9 }
 0xa27   : > { %7118 = vrot.lane.b32.xlu0 %v7097_v32, %s7653_s12  ;;  %7113 = vrot.lane.b32.xlu1 %v7102_v36, %s8711_s7  ;;  %v4959_v32 = vld [vmem:[%s8712_s8 + $0x8] sm:$0xff]  ;;  %s765_s7 = scalar_lea.vmem [#allocation23], %s8106_s6  ;;  %s7542_s8 = scalar_lea.vmem %s7541_s4, 32 }
 0xa2b   : > { %7123 = vrot.lane.b32.xlu1 %v7102_v36, %s7653_s12  ;;  %v6851_v36 = vpack.c.bf16 %v4961_v35, %v4960_v34  ;;  %v5149_v35 = vld [vmem:[#allocation21 + $0x48] sm:$0xff]  ;;  %s5356_s12 = sshll.u32 %s765_s7, 4  ;;  %s8575_s12 = int_to_ptr.vmem [resolvable:$true] %s5356_s12 }
 0xa2c   : > { %s7536_s9 = scalar_lea.vmem %s8575_s12, 16  ;;  %p7543_p4 = scmp.lt.s32.totalorder %s8575_s12, %s7541_s4 }
 0xa2d   : > { %p7537_p13 = scmp.ne.s32.totalorder %s8575_s12, %s7536_s9  ;;  %p7544_p8 = scmp.lt.s32.totalorder %s7542_s8, %s7536_s9 }
 0xa2f   : > { %p7538_p7 = pnand %p7537_p13, %p8714_p3  ;;  %p7545_p0 = por %p7544_p8, %p7543_p4 }
 0xa31   : > { %p7539_p9 = pneg %p7538_p7 }
 0xa33   : > { %p7546_p2 = pnand %p7545_p0, %p7539_p9 }
 0xa91   : > { %v7099_v38 = vpop.permute.xlu0 %7098 }
 0xa92   : > { %v7101_v40 = vunpack.i.h.bf16 %v7099_v38  ;;  %v7100_v41 = vunpack.i.l.bf16 %v7099_v38  ;;  %v5681_v38 = vld [vmem:[#allocation20] ss:$0 sm:$0xff] }
 0xa94   : > { %v6815_v42 = vpack.c.bf16 %v7101_v40, %v7100_v41 }
 0xa95   : > { %v7104_v45 = vpop.permute.xlu1 %7103  ;;  %v7109_v49 = vpop.permute.xlu0 %7108 }
 0xa96   : > { %v7106_v1 = vunpack.i.h.bf16 %v7104_v45  ;;  %v7105_v46 = vunpack.i.l.bf16 %v7104_v45  ;;  %6816 = vmatprep.subr.bf16.mxu0 %v6815_v42  ;;  %v7111_v53 = vunpack.i.h.bf16 %v7109_v49  ;;  %v7110_v54 = vunpack.i.l.bf16 %v7109_v49 }
 0xa97   : > { %6818 = vmatpush3.bf16.msra.mxu0 %v6815_v42 }
 0xa98   : > { %v6819_v48 = vpack.c.bf16 %v7106_v1, %v7105_v46  ;;  %v6831_v43 = vpack.c.bf16 %v7111_v53, %v7110_v54 }
 0xa99   : > { %v7114_v59 = vpop.permute.xlu1 %7113  ;;  %v7119_v61 = vpop.permute.xlu0 %7118 }
 0xa9a   : > { %6820 = vmatprep.subr.bf16.mxu0 %v6819_v48  ;;  %v7116_v27 = vunpack.i.h.bf16 %v7114_v59  ;;  %v7115_v3 = vunpack.i.l.bf16 %v7114_v59  ;;  %v7121_v4 = vunpack.i.h.bf16 %v7119_v61  ;;  %v7120_v5 = vunpack.i.l.bf16 %v7119_v61 }
 0xa9b   : > { %6822 = vmatpush3.bf16.msra.mxu0 %v6819_v48 }
 0xa9c   : > { %6824 = vmatprep.subr.bf16.mxu0 %v6823_v33  ;;  %v6835_v6 = vpack.c.bf16 %v7116_v27, %v7115_v3  ;;  %v6839_v10 = vpack.c.bf16 %v7121_v4, %v7120_v5 }
 0xa9d   : > { %v7124_v62 = vpop.permute.xlu1 %7123 }
 0xa9e   : > { %5892 = vmatmul.mubr.msk.f32.vlgmr.msra.gmra.mrb[18].mxu0 %vm4360_vm5, %v5626_v50  ;;  %v7126_v13 = vunpack.i.h.bf16 %v7124_v62  ;;  %v7125_v14 = vunpack.i.l.bf16 %v7124_v62 }
 0xa9f   : > { %6826 = vmatpush3.bf16.msra.mxu0 %v6823_v33  ;;  %5894 = vmatprep.mubr.msk.f32.mxu0 %vm4360_vm5, %v5627_v47  ;;  %v6847_v33 = vpack.c.bf16 %v4959_v32, %v4958_v30  ;;  %v5148_v32 = vld [vmem:[#allocation21 + $0x40] sm:$0xff] }
 0xaa0   : > { %6828 = vmatprep.subr.bf16.mxu0 %v6827_v37  ;;  %v6843_v17 = vpack.c.bf16 %v7126_v13, %v7125_v14 }
 0xaa1   : > { %6848 = vmatprep.subr.bf16.mxu1 %v6847_v33 }
 0xaa2   : > { %5895 = vmatmul.mubr.msk.f32.gmra.mrb[20].mxu0 %vm4360_vm5, %v5628_v55  ;;  %6850 = vmatpush3.bf16.msra.mxu1 %v6847_v33  ;;  %v5150_v33 = vld [vmem:[#allocation21 + $0x50] sm:$0xff] }
 0xaa3   : > { %6830 = vmatpush3.bf16.msra.mxu0 %v6827_v37  ;;  %5897 = vmatprep.mubr.msk.f32.mxu0 %vm4360_vm5, %v5629_v56  ;;  %v7654_v37 = vmov 3  }
 0xaa4   : > { %6832 = vmatprep.subr.bf16.mxu0 %v6831_v43  ;;  %6852 = vmatprep.subr.bf16.mxu1 %v6851_v36 }
 0xaa5   : > { %7129 = vset.pattern.permute.xlu0 %v7654_v37 }
 0xaa6   : > { %5898 = vmatmul.mubr.msk.f32.gmra.mrb[22].mxu0 %vm4360_vm5, %v5630_v57  ;;  %6854 = vmatpush3.bf16.msra.mxu1 %v6851_v36  ;;  %v5091_v36 = vld [vmem:[#allocation21] sm:$0xff] }
 0xaa7   : > { %5900 = vmatprep.mubr.msk.f32.mxu0 %vm4360_vm5, %v5631_v58 }
 0xaaa   : > { %5901 = vmatmul.mubr.msk.f32.gmra.mrb[24].mxu0 %vm4360_vm5, %v5632_v8 }
 0xaab   : > { %5911 = vmatprep.mubr.msk.f32.mxu0 %vm4360_vm5, %v4327_v60 }
 0xaae   : > { %5912 = vmatmul.mubr.msk.f32.vlgmr.msra.gmra.mrb[18].mxu0 %vm4360_vm5, %v4328_v63 }
 0xaaf   : > { %6834 = vmatpush3.bf16.msra.mxu0 %v6831_v43  ;;  %5914 = vmatprep.mubr.msk.f32.mxu0 %vm4360_vm5, %v4329_v44 }
 0xab0   : > { %6836 = vmatprep.subr.bf16.mxu0 %v6835_v6 }
 0xab2   : > { %5915 = vmatmul.mubr.msk.f32.gmra.mrb[20].mxu0 %vm4360_vm5, %v4330_v7 }
 0xab3   : > { %6838 = vmatpush3.bf16.msra.mxu0 %v6835_v6  ;;  %5917 = vmatprep.mubr.msk.f32.mxu0 %vm4360_vm5, %v4331_v9  ;;  %v7655_v6 = vmov 1  }
 0xab4   : > { %6840 = vmatprep.subr.bf16.mxu0 %v6839_v10 }
 0xab6   : > { %5918 = vmatmul.mubr.msk.f32.gmra.mrb[22].mxu0 %vm4360_vm5, %v4332_v52  ;;  %v7656_v52 = vmov 2  }
 0xab7   : > { %5920 = vmatprep.mubr.msk.f32.mxu0 %vm4360_vm5, %v4333_v11 }
 0xaba   : > { %5921 = vmatmul.mubr.msk.f32.gmra.mrb[24].mxu0 %vm4360_vm5, %v4334_v12  ;;  %v5331_v12 = vld [vmem:[#allocation2] sm:$0x1] }
 0xabb   : > { %5931 = vmatprep.mubr.msk.f32.mxu0 %vm4360_vm5, %v5649_v51 }
 0xabe   : > { %5932 = vmatmul.mubr.msk.f32.vlgmr.msra.gmra.mrb[18].mxu0 %vm4360_vm5, %v5650_v15 }
 0xabf   : > { %6842 = vmatpush3.bf16.msra.mxu0 %v6839_v10  ;;  %5934 = vmatprep.mubr.msk.f32.mxu0 %vm4360_vm5, %v5651_v16 }
 0xac0   : > { %6844 = vmatprep.subr.bf16.mxu0 %v6843_v17 }
 0xac2   : > { %5935 = vmatmul.mubr.msk.f32.gmra.mrb[20].mxu0 %vm4360_vm5, %v5652_v18 }
 0xac3   : > { %6846 = vmatpush3.bf16.msra.mxu0 %v6843_v17  ;;  %5937 = vmatprep.mubr.msk.f32.mxu0 %vm4360_vm5, %v5653_v19 }
 0xac6   : > { %5938 = vmatmul.mubr.msk.f32.gmra.mrb[22].mxu0 %vm4360_vm5, %v5654_v39 }
 0xac7   : > { %5940 = vmatprep.mubr.msk.f32.mxu0 %vm4360_vm5, %v5655_v20 }
 0xaca   : > { %5941 = vmatmul.mubr.msk.f32.gmra.mrb[24].mxu0 %vm4360_vm5, %v5656_v21 }
 0xacb   : > { %5951 = vmatprep.mubr.msk.f32.mxu0 %vm4360_vm5, %v5665_v22 }
 0xace   : > { %5952 = vmatmul.mubr.msk.f32.vlgmr.msra.gmra.mrb[18].mxu0 %vm4360_vm5, %v5666_v23 }
 0xacf   : > { %5954 = vmatprep.mubr.msk.f32.mxu0 %vm4360_vm5, %v5667_v24 }
 0xad2   : > { %5955 = vmatmul.mubr.msk.f32.gmra.mrb[20].mxu0 %vm4360_vm5, %v5668_v25 }
 0xad3   : > { %5957 = vmatprep.mubr.msk.f32.mxu0 %vm4360_vm5, %v5669_v26 }
 0xad6   : > { %5958 = vmatmul.mubr.msk.f32.gmra.mrb[22].mxu0 %vm4360_vm5, %v5670_v28 }
 0xad7   : > { %5960 = vmatprep.mubr.msk.f32.mxu0 %vm4360_vm5, %v5671_v29 }
 0xada   : > { %5961 = vmatmul.mubr.msk.f32.gmra.mrb[24].mxu0 %vm4360_vm5, %v5672_v0 }
 0xba1   : > { %v5953_v40 = vpop.f32.mrb[18].mxu0 }
 0xba2   : > { %v4943_v41 = vadd.f32 %v5953_v40, %v5681_v38  ;;  %v4888_v42 = vpop.f32.mrb[19].mxu0 }
 0xba3   : > { %v4942_v45 = vadd.f32 %v5681_v38, %v4888_v42  ;;  %v5092_v42 = vld [vmem:[#allocation21 + $0x8] sm:$0xff] }
 0xba5   : > { %7182 = vtanh.f32 %v4942_v45  ;;  %v5956_v1 = vpop.f32.mrb[20].mxu0  ;;  %v5206_v45 = vld [vmem:[#allocation21 + $0x88] sm:$0xff] }
 0xba6   : > { %7184 = vtanh.f32 %v4943_v41  ;;  %v4945_v46 = vadd.f32 %v5956_v1, %v5681_v38  ;;  %v4898_v48 = vpop.f32.mrb[21].mxu0 }
 0xba7   : > { %v4944_v49 = vadd.f32 %v5681_v38, %v4898_v48 }
 0xba9   : > { %7186 = vtanh.f32 %v4944_v49  ;;  %v5959_v50 = vpop.f32.mrb[22].mxu0 }
 0xbaa   : > { %7188 = vtanh.f32 %v4945_v46  ;;  %v4947_v47 = vadd.f32 %v5959_v50, %v5681_v38  ;;  %v4908_v53 = vpop.f32.mrb[23].mxu0 }
 0xbab   : > { %v4946_v54 = vadd.f32 %v5681_v38, %v4908_v53 }
 0xbad   : > { %7190 = vtanh.f32 %v4946_v54  ;;  %v5962_v55 = vpop.f32.mrb[24].mxu0  ;;  %v5152_v54 = vld [vmem:[#allocation21 + $0x60] sm:$0xff] }
 0xbae   : > { %7192 = vtanh.f32 %v4947_v47  ;;  %v4949_v56 = vadd.f32 %v5962_v55, %v5681_v38  ;;  %v4918_v43 = vpop.f32.mrb[25].mxu0  ;;  %v5207_v47 = vld [vmem:[#allocation21 + $0x90] sm:$0xff] }
 0xbaf   : > { %v7183_v57 = vpop.eup %7182  ;;  %v4948_v58 = vadd.f32 %v5681_v38, %v4918_v43  ;;  %v5093_v38 = vld [vmem:[#allocation21 + $0x10] sm:$0xff] }
 0xbb0   : > { %v7185_v59 = vpop.eup %7184  ;;  %5971 = vmatprep.mubr.msk.f32.mxu1 %vm4360_vm5, %v7183_v57 }
 0xbb1   : > { %7194 = vtanh.f32 %v4948_v58  ;;  %5972 = vmatmul.mubr.msk.f32.vlgmr.msra.gmra.mrb[26].mxu1 %vm4360_vm5, %v7185_v59  ;;  %v5262_v58 = vld [vmem:[#allocation21 + $0xc0] sm:$0xff] }
 0xbb2   : > { %7196 = vtanh.f32 %v4949_v56  ;;  %v5095_v59 = vld [vmem:[#allocation21 + $0x20] sm:$0xff] }
 0xbb3   : > { %v7187_v8 = vpop.eup %7186 }
 0xbb4   : > { %v7189_v60 = vpop.eup %7188  ;;  %5974 = vmatprep.mubr.msk.f32.mxu1 %vm4360_vm5, %v7187_v8 }
 0xbb5   : > { %5975 = vmatmul.mubr.msk.f32.gmra.mrb[28].mxu1 %vm4360_vm5, %v7189_v60 }
 0xbb7   : > { %v7191_v27 = vpop.eup %7190 }
 0xbb8   : > { %v7193_v3 = vpop.eup %7192  ;;  %5977 = vmatprep.mubr.msk.f32.mxu1 %vm4360_vm5, %v7191_v27  ;;  %v5151_v27 = vld [vmem:[#allocation21 + $0x58] sm:$0xff] }
 0xbb9   : > { %5978 = vmatmul.mubr.msk.f32.gmra.mrb[30].mxu1 %vm4360_vm5, %v7193_v3 }
 0xbbb   : > { %v7195_v61 = vpop.eup %7194 }
 0xbbc   : > { %v7197_v63 = vpop.eup %7196  ;;  %5980 = vmatprep.mubr.msk.f32.mxu1 %vm4360_vm5, %v7195_v61 }
 0xbbd   : > { %5981 = vmatmul.mubr.msk.f32.gmra.mrb[32].mxu1 %vm4360_vm5, %v7197_v63 }
 0xc84   : > { %v5973_v44 = vpop.f32.mrb[26].mxu1 }
 0xc85   : > { %5275 = vperm.xlu0 %7129, %v5973_v44   ;;  %5106 = vperm.xlu1 %7086, %v5973_v44   ;;  %v5052_v4 = vpop.f32.mrb[27].mxu1 }
 0xc88   : > { %v5976_v5 = vpop.f32.mrb[28].mxu1 }
 0xc89   : > { %7130 = vset.pattern.permute.xlu0 %v7650_v2  ;;  %7127 = vset.pattern.permute.xlu1 %v7655_v6  ;;  %v5062_v7 = vpop.f32.mrb[29].mxu1 }
 0xc8a   : > { %5161 = vperm.xlu1 %7127, %v5973_v44   ;;  %5101 = vperm.xlu0 %7130, %v5052_v4  }
 0xc8c   : > { %v5979_v9 = vpop.f32.mrb[30].mxu1 }
 0xc8d   : > { %v5072_v10 = vpop.f32.mrb[31].mxu1 }
 0xc8e   : > { %7128 = vset.pattern.permute.xlu1 %v7656_v52  ;;  %7131 = vset.pattern.permute.xlu0 %v7655_v6 }
 0xc8f   : > { %5218 = vperm.xlu1 %7128, %v5973_v44   ;;  %5157 = vperm.xlu0 %7131, %v5052_v4   ;;  %v5263_v44 = vld [vmem:[#allocation21 + $0xc8] sm:$0xff] }
 0xc90   : > { %v5982_v11 = vpop.f32.mrb[32].mxu1 }
 0xc91   : > { %v5082_v62 = vpop.f32.mrb[33].mxu1 }
 0xc93   : > { %7133 = vset.pattern.permute.xlu1 %v7654_v37  ;;  %7132 = vset.pattern.permute.xlu0 %v7656_v52 }
 0xc94   : > { %5271 = vperm.xlu1 %7133, %v5052_v4   ;;  %5214 = vperm.xlu0 %7132, %v5052_v4   ;;  %v5264_v4 = vld [vmem:[#allocation21 + $0xd0] sm:$0xff] }
 0xc98   : > { %7134 = vset.pattern.permute.xlu1 %v7650_v2  ;;  %7138 = vset.pattern.permute.xlu0 %v7650_v2 }
 0xc99   : > { %5116 = vperm.xlu1 %7134, %v5976_v5   ;;  %5111 = vperm.xlu0 %7138, %v5062_v7  }
 0xc9d   : > { %7135 = vset.pattern.permute.xlu1 %v7655_v6  ;;  %7140 = vset.pattern.permute.xlu0 %v7656_v52 }
 0xc9e   : > { %5169 = vperm.xlu1 %7135, %v5976_v5   ;;  %5222 = vperm.xlu0 %7140, %v5062_v7  }
 0xca2   : > { %7136 = vset.pattern.permute.xlu1 %v7656_v52  ;;  %7141 = vset.pattern.permute.xlu0 %v7654_v37 }
 0xca3   : > { %5226 = vperm.xlu1 %7136, %v5976_v5   ;;  %5279 = vperm.xlu0 %7141, %v5062_v7  }
 0xca7   : > { %7137 = vset.pattern.permute.xlu1 %v7654_v37  ;;  %7144 = vset.pattern.permute.xlu0 %v7656_v52 }
 0xca8   : > { %5283 = vperm.xlu1 %7137, %v5976_v5   ;;  %5234 = vperm.xlu0 %7144, %v5979_v9  }
 0xcac   : > { %7139 = vset.pattern.permute.xlu1 %v7655_v6  ;;  %7146 = vset.pattern.permute.xlu0 %v7650_v2 }
 0xcad   : > { %5165 = vperm.xlu1 %7139, %v5062_v7   ;;  %5121 = vperm.xlu0 %7146, %v5072_v10   ;;  %v5094_v7 = vld [vmem:[#allocation21 + $0x18] sm:$0xff] }
 0xcb1   : > { %7142 = vset.pattern.permute.xlu1 %v7650_v2  ;;  %7148 = vset.pattern.permute.xlu0 %v7656_v52 }
 0xcb2   : > { %5126 = vperm.xlu1 %7142, %v5979_v9   ;;  %5230 = vperm.xlu0 %7148, %v5072_v10  }
 0xcb6   : > { %7143 = vset.pattern.permute.xlu1 %v7655_v6  ;;  %7151 = vset.pattern.permute.xlu0 %v7655_v6 }
 0xcb7   : > { %5177 = vperm.xlu1 %7143, %v5979_v9   ;;  %5185 = vperm.xlu0 %7151, %v5982_v11  }
 0xcbb   : > { %7145 = vset.pattern.permute.xlu1 %v7654_v37  ;;  %7152 = vset.pattern.permute.xlu0 %v7650_v2 }
 0xcbc   : > { %5291 = vperm.xlu1 %7145, %v5979_v9   ;;  %5131 = vperm.xlu0 %7152, %v5082_v62   ;;  %v5208_v9 = vld [vmem:[#allocation21 + $0x98] sm:$0xff] }
 0xcc0   : > { %7147 = vset.pattern.permute.xlu1 %v7655_v6  ;;  %7153 = vset.pattern.permute.xlu0 %v7656_v52 }
 0xcc1   : > { %5173 = vperm.xlu1 %7147, %v5072_v10   ;;  %5242 = vperm.xlu0 %7153, %v5982_v11  }
 0xcc5   : > { %7149 = vset.pattern.permute.xlu1 %v7654_v37  ;;  %7157 = vset.pattern.permute.xlu0 %v7650_v2 }
 0xcc6   : > { %5287 = vperm.xlu1 %7149, %v5072_v10   ;;  %5334 = vperm.xlu0 %7157, %v5331_v12   ;;  %v5153_v12 = vld [vmem:[#allocation21 + $0x68] sm:$0xff] }
 0xcca   : > { %7150 = vset.pattern.permute.xlu1 %v7650_v2 }
 0xccb   : > { %5136 = vperm.xlu1 %7150, %v5982_v11  }
 0xccf   : > { %7154 = vset.pattern.permute.xlu1 %v7655_v6 }
 0xcd0   : > { %5181 = vperm.xlu1 %7154, %v5082_v62  }
 0xcd4   : > { %7155 = vset.pattern.permute.xlu1 %v7656_v52 }
 0xcd5   : > { %5238 = vperm.xlu1 %7155, %v5082_v62  }
 0xcd9   : > { %7156 = vset.pattern.permute.xlu1 %v7654_v37  ;;  %v5205_v37 = vld [vmem:[#allocation21 + $0x80] sm:$0xff] }
 0xcda   : > { %5295 = vperm.xlu1 %7156, %v5082_v62   ;;  %v5209_v62 = vld [vmem:[#allocation21 + $0xa0] sm:$0xff] }
 0xcde   : > { %5299 = vperm.xlu1 %7156, %v5982_v11  }
 0xd04   : > { %v5107_v51 = vpop.permute.xlu1 %5106  ;;  %v5276_v15 = vpop.permute.xlu0 %5275 }
 0xd05   : > { %v5140_v55 = vmul.f32 %v5107_v51, %v5092_v42 }
 0xd09   : > { %v5162_v13 = vpop.permute.xlu1 %5161  ;;  %v5102_v17 = vpop.permute.xlu0 %5101 }
 0xd0a   : > { %v5189_v46 = vmul.f32 %v5162_v13, %v5149_v35  ;;  %v5139_v48 = vmul.f32 %v5102_v17, %v5091_v36  ;;  %v5303_v13 = vmul.f32 %v5276_v15, %v5263_v44  ;;  %v5210_v15 = vld [vmem:[#allocation21 + $0xa8] sm:$0xff] }
 0xd0c   : > { %v5197_v8 = vadd.f32 %v5189_v46, %v5140_v55  ;;  %v5211_v46 = vld [vmem:[#allocation21 + $0xb0] sm:$0xff] }
 0xd0e   : > { %v5219_v14 = vpop.permute.xlu1 %5218  ;;  %v5158_v19 = vpop.permute.xlu0 %5157 }
 0xd0f   : > { %v5188_v40 = vmul.f32 %v5158_v19, %v5148_v32  ;;  %v5246_v56 = vmul.f32 %v5219_v14, %v5206_v45  ;;  %v5265_v19 = vld [vmem:[#allocation21 + $0xd8] sm:$0xff] }
 0xd10   : > { %v5098_v45 = vld [vmem:[#allocation21 + $0x38] sm:$0xff] }
 0xd11   : > { %v5196_v43 = vadd.f32 %v5188_v40, %v5139_v48  ;;  %v5254_v5 = vadd.f32 %v5246_v56, %v5197_v8 }
 0xd13   : > { %v5272_v16 = vpop.permute.xlu1 %5271  ;;  %v5215_v20 = vpop.permute.xlu0 %5214 }
 0xd14   : > { %v5245_v49 = vmul.f32 %v5215_v20, %v5205_v37  ;;  %v5302_v6 = vmul.f32 %v5272_v16, %v5262_v58  ;;  %v5311_v16 = vadd.f32 %v5303_v13, %v5254_v5  ;;  %v5154_v37 = vld [vmem:[#allocation21 + $0x70] sm:$0xff] }
 0xd16   : > { %v5253_v60 = vadd.f32 %v5245_v49, %v5196_v43  ;;  %v5155_v49 = vld [vmem:[#allocation21 + $0x78] sm:$0xff] }
 0xd18   : > { %v8552_v18 = vpop.permute.xlu1 %5116  ;;  %v5112_v22 = vpop.permute.xlu0 %5111  ;;  %v5310_v14 = vadd.f32 %v5302_v6, %v5253_v60 }
 0xd19   : > { %v5141_v50 = vmul.f32 %v5112_v22, %v5093_v38  ;;  %v5142_v22 = vmul.f32 %v8552_v18, %v5094_v7  ;;  %v5097_v18 = vld [vmem:[#allocation21 + $0x30] sm:$0xff] }
 0xd1a   : > { %v5318_v38 = vadd.f32 %v5311_v16, %v5310_v14 }
 0xd1d   : > { %v5170_v39 = vpop.permute.xlu1 %5169  ;;  %v5223_v24 = vpop.permute.xlu0 %5222 }
 0xd1e   : > { %v5247_v3 = vmul.f32 %v5223_v24, %v5207_v47  ;;  %v5191_v11 = vmul.f32 %v5170_v39, %v5151_v27  ;;  %v5096_v24 = vld [vmem:[#allocation21 + $0x28] sm:$0xff]  ;;  %v5212_v27 = vld [vmem:[#allocation21 + $0xb8] sm:$0xff] }
 0xd22   : > { %v5227_v2 = vpop.permute.xlu1 %5226  ;;  %v5280_v26 = vpop.permute.xlu0 %5279 }
 0xd23   : > { %v5304_v17 = vmul.f32 %v5280_v26, %v5264_v4 }
 0xd27   : > { %v8554_v21 = vpop.permute.xlu1 %5283  ;;  %v8558_v29 = vpop.permute.xlu0 %5234 }
 0xd28   : > { %v5305_v39 = vmul.f32 %v8554_v21, %v5265_v19  ;;  %v5250_v21 = vmul.f32 %v8558_v29, %v5210_v15  ;;  %v5269_v29 = vld [vmem:[#allocation21 + $0xf8] sm:$0xff] }
 0xd2c   : > { %v5166_v23 = vpop.permute.xlu1 %5165  ;;  %v5122_v34 = vpop.permute.xlu0 %5121 }
 0xd2d   : > { %v5190_v41 = vmul.f32 %v5166_v23, %v5150_v33  ;;  %v5143_v52 = vmul.f32 %v5122_v34, %v5095_v59  ;;  %v5248_v23 = vmul.f32 %v5227_v2, %v5208_v9  ;;  %v5199_v34 = vadd.f32 %v5191_v11, %v5142_v22 }
 0xd2f   : > { %v5198_v57 = vadd.f32 %v5190_v41, %v5141_v50  ;;  %v5256_v42 = vadd.f32 %v5248_v23, %v5199_v34 }
 0xd31   : > { %v8556_v25 = vpop.permute.xlu1 %5126  ;;  %v5231_v53 = vpop.permute.xlu0 %5230  ;;  %v5255_v10 = vadd.f32 %v5247_v3, %v5198_v57 }
 0xd32   : > { %v5249_v35 = vmul.f32 %v5231_v53, %v5209_v62  ;;  %v5144_v26 = vmul.f32 %v8556_v25, %v5096_v24  ;;  %v5313_v53 = vadd.f32 %v5305_v39, %v5256_v42 }
 0xd33   : > { %v5312_v33 = vadd.f32 %v5304_v17, %v5255_v10 }
 0xd35   : > { %v5319_v50 = vadd.f32 %v5318_v38, %v5312_v33 }
 0xd36   : > { %v5178_v28 = vpop.permute.xlu1 %5177  ;;  %v5186_v51 = vpop.permute.xlu0 %5185 }
 0xd37   : > { %v5193_v36 = vmul.f32 %v5178_v28, %v5153_v12  ;;  %v5195_v57 = vmul.f32 %v5186_v51, %v5155_v49  ;;  %v5320_v8 = vadd.f32 %v5319_v50, %v5313_v53 }
 0xd39   : > { %v5201_v48 = vadd.f32 %v5193_v36, %v5144_v26 }
 0xd3b   : > { %v8560_v0 = vpop.permute.xlu1 %5291  ;;  %v5132_v2 = vpop.permute.xlu0 %5131  ;;  %v5258_v58 = vadd.f32 %v5250_v21, %v5201_v48 }
 0xd3c   : > { %v5145_v55 = vmul.f32 %v5132_v2, %v5097_v18 }
 0xd40   : > { %v5174_v30 = vpop.permute.xlu1 %5173  ;;  %v5243_v3 = vpop.permute.xlu0 %5242 }
 0xd41   : > { %v5192_v61 = vmul.f32 %v5174_v30, %v5152_v54  ;;  %v5266_v30 = vld [vmem:[#allocation21 + $0xe0] sm:$0xff]  ;;  %v5267_v54 = vld [vmem:[#allocation21 + $0xe8] sm:$0xff]  ;;  %v5252_v9 = vmul.f32 %v5243_v3, %v5212_v27 }
 0xd42   : > { %v5307_v59 = vmul.f32 %v8560_v0, %v5267_v54 }
 0xd43   : > { %v5200_v20 = vadd.f32 %v5192_v61, %v5143_v52 }
 0xd44   : > { %v5315_v7 = vadd.f32 %v5307_v59, %v5258_v58 }
 0xd45   : > { %v5288_v1 = vpop.permute.xlu1 %5287  ;;  %v5257_v40 = vadd.f32 %v5249_v35, %v5200_v20  ;;  %v5335_v19 = vpop.permute.xlu0 %5334 }
 0xd46   : > { %v5306_v41 = vmul.f32 %v5288_v1, %v5266_v30  ;;  %v5268_v1 = vld [vmem:[#allocation21 + $0xf0] sm:$0xff]  ;;  %v5340_v23 = vrot.slane %v5335_v19, %v8183_v31 }
 0xd48   : > { %v5314_v56 = vadd.f32 %v5306_v41, %v5257_v40 }
 0xd4a   : > { %v5137_v63 = vpop.permute.xlu1 %5136  ;;  %v5321_v44 = vadd.f32 %v5320_v8, %v5314_v56 }
 0xd4b   : > { %v5146_v43 = vmul.f32 %v5137_v63, %v5098_v45 }
 0xd4c   : > { %v5322_v52 = vadd.f32 %v5321_v44, %v5315_v7 }
 0xd4d   : > { %v5203_v4 = vadd.f32 %v5195_v57, %v5146_v43 }
 0xd4f   : > { %v5182_v32 = vpop.permute.xlu1 %5181  ;;  %v5260_v11 = vadd.f32 %v5252_v9, %v5203_v4 }
 0xd50   : > { %v5194_v47 = vmul.f32 %v5182_v32, %v5154_v37 }
 0xd52   : > { %v5202_v60 = vadd.f32 %v5194_v47, %v5145_v55 }
 0xd54   : > { %v5239_v28 = vpop.permute.xlu1 %5238 }
 0xd55   : > { %v5251_v25 = vmul.f32 %v5239_v28, %v5211_v46 }
 0xd57   : > { %v5259_v5 = vadd.f32 %v5251_v25, %v5202_v60 }
 0xd59   : > { %v5296_v61 = vpop.permute.xlu1 %5295 }
 0xd5a   : > { %v5308_v6 = vmul.f32 %v5296_v61, %v5268_v1 }
 0xd5c   : > { %v5316_v63 = vadd.f32 %v5308_v6, %v5259_v5 }
 0xd5d   : > { %v5300_v10 = vpop.permute.xlu1 %5299 }
 0xd5e   : > { %v5309_v62 = vmul.f32 %v5300_v10, %v5269_v29  ;;  %v5323_v0 = vadd.f32 %v5322_v52, %v5316_v63 }
 0xd60   : > { %v5317_v12 = vadd.f32 %v5309_v62, %v5260_v11 }
 0xd62   : > { %v5324_v51 = vadd.f32 %v5323_v0, %v5317_v12 }
 0xd64   : > { %v5325_v13 = vrot.slane %v5324_v51, 4 }
 0xd66   : > { %v5326_v14 = vadd.f32 %v5325_v13, %v5324_v51 }
 0xd68   : > { %v5327_v17 = vrot.slane %v5326_v14, 2 }
 0xd6a   : > { %v5328_v20 = vadd.f32 %v5327_v17, %v5326_v14 }
 0xd6c   : > { %v5329_v22 = vrot.slane %v5328_v20, 1 }
 0xd6e   : > { %v5330_v24 = vadd.f32 %v5329_v22, %v5328_v20 }
 0xd70   : > { %v5341_v30 = vadd.f32 %v5340_v23, %v5330_v24 }
 0xd72   : > { %5342 = vst [vmem:[%s765_s7] sm:$0x1] %v5341_v30 }
 0xd73   : > { %7549 = shalt.err (!%p7546_p2)
}
 0xd74   : > { %s7550_s6 = scalar_lea.hbm %s8573_s0, 16  ;;  %s7554_s3 = scalar_lea.hbm %s8713_s26, 32 }
 0xd75   : > { %p7551_p6 = scmp.ne.s32.totalorder %s8573_s0, %s7550_s6  ;;  %p7555_p1 = scmp.lt.u32.totalorder %s8573_s0, %s8713_s26 }
 0xd76   : > { %p7556_p11 = scmp.lt.u32.totalorder %s7554_s3, %s7550_s6  ;;  %p7558_p13 = scmp.lt.u32.totalorder %s7550_s6, %s8573_s0 }
 0xd77   : > { %p7552_p5 = pnand %p7551_p6, %p8714_p3 }
 0xd78   : > { %p7557_p12 = por %p7556_p11, %p7555_p1 }
 0xd79   : > { %p7553_p10 = pneg %p7552_p5 }
 0xd7a   : > { %p7559_p7 = por %p7558_p13, %p7557_p12 }
 0xd7c   : > { %p7560_p9 = pnand %p7559_p7, %p7553_p10 }
 0xd7e   : > { %7563 = shalt.err (!%p7560_p9)
}
 0xd7f   : > { %6957 = dma.vmem_to_hbm [thread:$0]  (%p8714_p3), %s8575_s12, 16, %s8573_s0, %s5344_s27  }
 0xd80 PF: > { %s5368_s8 = sand.u32 1, %s7614_s20   ;;  %p8715_p4 = scmp.ne.s32.totalorder %s8689_s28, 0 }
 0xd81   : > { %p8716_p8 = scmp.ge.s32.totalorder %s7626_s22, 2  ;;  %s5369_s9 = scalar_lea.sflag [#allocation5], %s5368_s8 }
 0xd83   : > { %p6998_p0 = pnand %p8716_p8, %p8715_p4 }
 0xd85   : > { %7609 = dma.done.wait (!%p6998_p0), %s5369_s9, 16  }
 0xd86   : > { %7611 = vsyncadd (!%p6998_p0), %s5369_s9, 4294967280  ;;  %p40_p2 = scmp.ge.s32.totalorder %s8030_s25, 4   ;;  %s8717_s20 = smov %s7618_s21 }
 0xd87   : > { %s8718_s21 = smov %s7622_s1  ;;  %s8719_s1 = smov %s8041_s2 }
 0xd88   : > { %s8720_s22 = smov %s8030_s25  ;;  %42 = sbr.rel (!%p40_p2) target bundleno = 27 (0x1b), region = 203 }
 0xd8f   :  { %5373 = vsyncpa [#allocation4], 1 }
 0xd90   :  { %5375 = vsyncpa [#allocation4 + $0x1], 1 }
 0xd91   :  { %5376 = vsyncpa [#allocation7], 1 }
 0xd92   :  { %5377 = vsyncpa [#allocation10], 1 }
 0xd93   :  { %5378 = vsyncpa [#allocation13], 1 }
 0xd94   :  { %5379 = vsyncpa [#allocation16], 1 }
 0xd95   :  { %5380 = vsyncpa [#allocation19], 1 }
 0xd96   :  { %5381 = vsyncpa [#allocation22], 1 }
 0xd97   :  { %5382 = vsyncpa [#allocation5], 1 }
 0xd98   :  { %5384 = vsyncpa [#allocation5 + $0x1], 1 }

</bundles_post_ra>
